<compile_context>
chip_gen: v7x
topology: tpu7x:2x2x1
jax: 0.10.0
libtpu: 0.0.40
codegen_flags: <defaults>
</compile_context>

<pallas_src>
import functools

import jax
import jax.numpy as jnp
from jax import lax
from jax.experimental import pallas as pl
from jax.experimental.pallas import tpu as pltpu


# ---------------------------------------------------------------------------
# Fused decoder kernel: one batch image per grid step.
# In-kernel layout: channels on sublanes, pixels on lanes.
# ---------------------------------------------------------------------------
def _decoder_kernel(W,                                     # static image width
                    x_ref, rad_ref, m7_ref, m3_ref,
                    w1a_ref, b1a_ref, w2a_ref, b2a_ref,
                    w1b_ref, b1b_ref, w2b_ref, b2b_ref,
                    wf_ref, bf_ref,
                    feat_ref, accum_ref,
                    lhs_sc, xs_sc, fs_sc):
    C = x_ref.shape[1]
    HW = x_ref.shape[2]
    Cout = feat_ref.shape[1]
    P7 = 3 * W + 3                      # zero pad (each side) of the 7x7 stream
    P3 = W + 1                          # zero pad (each side) of 3x3 / radiance
    L7 = xs_sc.shape[1]
    L3 = fs_sc.shape[1]

    def convformer(xc, w1T_ref, b1_ref, w2T_ref, b2_ref):
        # Flattened zero-padded activation stream (pixels on lanes).  Border
        # zeros are rewritten every step (see header: per-core scratch +
        # "parallel" grid axis makes a program_id==0 guard unsafe).
        xs_sc[:, 0:P7] = jnp.zeros((C, P7), jnp.bfloat16)
        xs_sc[:, P7 + HW:L7] = jnp.zeros((C, L7 - P7 - HW), jnp.bfloat16)
        xs_sc[:, P7:P7 + HW] = xc.astype(jnp.bfloat16)
        stream = xs_sc[...]
        # One x-wrap-masked copy of the stream per kernel column offset.
        ms = [stream * m7_ref[d:d + 1, :].astype(jnp.bfloat16)
              for d in range(7)]
        # Pack all 49 tap-shifted copies along the contraction axis so the
        # depthwise 7x7 + 1x1 expansion become a single MXU matmul (K = 49*C).
        for dy in range(7):
            for dx in range(7):
                t = dy * 7 + dx
                s = dy * W + dx
                lhs_sc[t * C:(t + 1) * C, :] = ms[dx][:, s:s + HW]
        h = jnp.dot(w1T_ref[...], lhs_sc[...],
                    preferred_element_type=jnp.float32)          # (4C, HW)
        h = jnp.maximum(h + b1_ref[...], 0.0)
        y = jnp.dot(w2T_ref[...], h.astype(jnp.bfloat16),
                    preferred_element_type=jnp.float32)          # (C, HW)
        return xc + y + b2_ref[...]                              # residual, f32

    x = x_ref[0]                                                 # (C, HW) f32
    x = convformer(x, w1a_ref, b1a_ref, w2a_ref, b2a_ref)
    x = convformer(x, w1b_ref, b1b_ref, w2b_ref, b2b_ref)

    # Final 3x3 conv with merged [features | predicted-kernel] weights.
    fs_sc[:, 0:P3] = jnp.zeros((C, P3), jnp.bfloat16)
    fs_sc[:, P3 + HW:L3] = jnp.zeros((C, L3 - P3 - HW), jnp.bfloat16)
    fs_sc[:, P3:P3 + HW] = x.astype(jnp.bfloat16)
    fstream = fs_sc[...]
    fms = [fstream * m3_ref[d:d + 1, :].astype(jnp.bfloat16)
           for d in range(3)]
    for ky in range(3):
        for kx in range(3):
            t = ky * 3 + kx
            s = ky * W + kx
            lhs_sc[t * C:(t + 1) * C, :] = fms[kx][:, s:s + HW]
    dec = jnp.dot(wf_ref[...], lhs_sc[0:9 * C, :],
                  preferred_element_type=jnp.float32) + bf_ref[...]   # (Cp, HW)
    feat_ref[0] = dec[0:Cout, :].astype(feat_ref.dtype)

    # Kernel-prediction apply on the flattened zero-padded radiance stream
    # (lane-dense; every tap is a static lane slice, x-wrap handled by masks).
    rad = rad_ref[0]                                             # (3, L3) f32
    mrad = [rad * m3_ref[d:d + 1, :] for d in range(3)]
    acc = jnp.zeros((3, HW), jnp.float32)
    for ky in range(3):
        for kx in range(3):
            k = ky * 3 + kx
            s = ky * W + kx
            acc = acc + dec[Cout + k:Cout + k + 1, :] * mrad[kx][:, s:s + HW]
    accum_ref[0] = acc.astype(accum_ref.dtype)


# ---------------------------------------------------------------------------
# Host wrapper: weight merging, stream padding, column masks, pallas_call.
# ---------------------------------------------------------------------------
def _col_masks(W, ksize, L):
    """Full-stream x-wrap validity masks, one row per kernel column offset."""
    half = ksize // 2
    q = jnp.arange(L, dtype=jnp.int32)
    rows = []
    for d in range(ksize):
        col = (q - d) % W                 # output-pixel column seen at offset d
        rows.append((col >= half - d) & (col <= W - 1 + half - d))
    return jnp.stack(rows).astype(jnp.float32)


def kernel_matching_decoder_kp(params, input_nchw, radiance_nchw):
    B, Cin, H, W = input_nchw.shape
    Cout = params["final_wf"].shape[3]
    HW = H * W
    L7 = HW + 2 * (3 * W + 3)
    L3 = HW + 2 * (W + 1)
    Ctot = Cout + 9
    Cp = ((Ctot + 7) // 8) * 8
    C4 = params["cf0_pw1_w"].shape[1]

    # NCHW -> (B, C, H*W) is a free reshape; no input transpose at all.
    x = input_nchw.reshape(B, Cin, HW).astype(jnp.float32)
    rad = jnp.pad(radiance_nchw.reshape(B, 3, HW).astype(jnp.float32),
                  ((0, 0), (0, 0), (W + 1, W + 1)))

    m7 = _col_masks(W, 7, L7)
    m3 = _col_masks(W, 3, L3)

    def block_weights(blk):
        dw_w = params[f"cf{blk}_dw_w"]
        dw_b = params[f"cf{blk}_dw_b"]
        pw1_w = params[f"cf{blk}_pw1_w"]
        pw1_b = params[f"cf{blk}_pw1_b"]
        pw2_w = params[f"cf{blk}_pw2_w"]
        pw2_b = params[f"cf{blk}_pw2_b"]
        # Depthwise 7x7 merged with the 1x1 expansion (exact algebra — no
        # nonlinearity in between): W1[tap] = dw_w[tap][:, None] * pw1_w.
        w1 = dw_w.reshape(49, Cin)[:, :, None] * pw1_w[None, :, :]   # (49,C,4C)
        w1T = jnp.transpose(w1, (2, 0, 1)).reshape(C4, 49 * Cin)     # (4C,49C)
        b1 = (pw1_b + dw_b @ pw1_w).reshape(C4, 1)
        return (w1T.astype(jnp.bfloat16), b1.astype(jnp.float32),
                pw2_w.T.astype(jnp.bfloat16),
                pw2_b.reshape(Cin, 1).astype(jnp.float32))

    w1a, b1a, w2a, b2a = block_weights(0)
    w1b, b1b, w2b, b2b = block_weights(1)

    # Final conv: merged [wf | wk] weights, channel-padded to a sublane multiple.
    w_all = jnp.concatenate([params["final_wf"], params["final_wk"]], axis=3)
    w_all = jnp.pad(w_all, ((0, 0), (0, 0), (0, 0), (0, Cp - Ctot)))
    wf_m = jnp.transpose(w_all.reshape(9, Cin, Cp), (2, 0, 1)).reshape(Cp, 9 * Cin)
    bf_m = jnp.pad(jnp.concatenate([params["final_bf"], params["final_bk"]]),
                   (0, Cp - Ctot)).reshape(Cp, 1)
    wf_m = wf_m.astype(jnp.bfloat16)
    bf_m = bf_m.astype(jnp.float32)

    def const_spec(shape):
        nd = len(shape)
        return pl.BlockSpec(shape, lambda b: (0,) * nd)

    feat, accum = pl.pallas_call(
        functools.partial(_decoder_kernel, W),
        out_shape=(jax.ShapeDtypeStruct((B, Cout, HW), jnp.float32),
                   jax.ShapeDtypeStruct((B, 3, HW), jnp.float32)),
        grid=(B,),
        in_specs=[
            pl.BlockSpec((1, Cin, HW), lambda b: (b, 0, 0)),
            pl.BlockSpec((1, 3, L3), lambda b: (b, 0, 0)),
            const_spec((7, L7)),
            const_spec((3, L3)),
            const_spec((C4, 49 * Cin)), const_spec((C4, 1)),
            const_spec((Cin, C4)), const_spec((Cin, 1)),
            const_spec((C4, 49 * Cin)), const_spec((C4, 1)),
            const_spec((Cin, C4)), const_spec((Cin, 1)),
            const_spec((Cp, 9 * Cin)), const_spec((Cp, 1)),
        ],
        out_specs=(pl.BlockSpec((1, Cout, HW), lambda b: (b, 0, 0)),
                   pl.BlockSpec((1, 3, HW), lambda b: (b, 0, 0))),
        scratch_shapes=[
            pltpu.VMEM((49 * Cin, HW), jnp.bfloat16),   # grouped-tap matmul LHS
            pltpu.VMEM((Cin, L7), jnp.bfloat16),        # 7x7 zero-padded stream
            pltpu.VMEM((Cin, L3), jnp.bfloat16),        # 3x3 zero-padded stream
        ],
        compiler_params=pltpu.CompilerParams(
            dimension_semantics=("parallel",),
            vmem_limit_bytes=48 * 1024 * 1024,
        ),
    )(x, rad, m7, m3, w1a, b1a, w2a, b2a, w1b, b1b, w2b, b2b, wf_m, bf_m)

    # Minor-dim splits are free; outputs are already channel-major (NCHW).
    return feat.reshape(B, Cout, H, W), accum.reshape(B, 3, H, W)


# ---------------------------------------------------------------------------
# Parameters (deterministic, synthetic).
# ---------------------------------------------------------------------------
def init_params(key, cin, cout):
    ks = jax.random.split(key, 12)
    nrm = lambda k, shape, s: jax.random.normal(k, shape, jnp.float32) * s
    p = {}
    for blk in range(2):
        p[f"cf{blk}_dw_w"] = nrm(ks[blk * 4 + 0], (7, 7, cin), 0.05)
        p[f"cf{blk}_dw_b"] = nrm(ks[blk * 4 + 1], (cin,), 0.01)
        p[f"cf{blk}_pw1_w"] = nrm(ks[blk * 4 + 2], (cin, 4 * cin), 0.05)
        p[f"cf{blk}_pw1_b"] = jnp.zeros((4 * cin,), jnp.float32)
        p[f"cf{blk}_pw2_w"] = nrm(ks[blk * 4 + 3], (4 * cin, cin), 0.05)
        p[f"cf{blk}_pw2_b"] = jnp.zeros((cin,), jnp.float32)
    p["final_wf"] = nrm(ks[8], (3, 3, cin, cout), 0.05)
    p["final_bf"] = nrm(ks[9], (cout,), 0.01)
    p["final_wk"] = nrm(ks[10], (3, 3, cin, 9), 0.05)
    p["final_bk"] = nrm(ks[11], (9,), 0.01)
    return p


# ---------------------------------------------------------------------------
# Pure-JAX reference (unfused, f32 HIGHEST precision) for a tolerance check.
# ---------------------------------------------------------------------------
def reference_forward(params, input_nchw, radiance_nchw):
    P = lax.Precision.HIGHEST
    x = jnp.transpose(input_nchw, (0, 2, 3, 1)).astype(jnp.float32)
    B, H, W, C = x.shape
    for blk in range(2):
        dw_w = params[f"cf{blk}_dw_w"]
        dw_b = params[f"cf{blk}_dw_b"]
        xp = jnp.pad(x, ((0, 0), (3, 3), (3, 3), (0, 0)))
        dw = jnp.zeros_like(x)
        for dy in range(7):
            for dx in range(7):
                dw = dw + xp[:, dy:dy + H, dx:dx + W, :] * dw_w[dy, dx]
        dw = dw + dw_b
        h = jnp.maximum(
            jnp.einsum("bhwc,cd->bhwd", dw, params[f"cf{blk}_pw1_w"],
                       precision=P) + params[f"cf{blk}_pw1_b"], 0.0)
        h = jnp.einsum("bhwd,dc->bhwc", h, params[f"cf{blk}_pw2_w"],
                       precision=P) + params[f"cf{blk}_pw2_b"]
        x = x + h
    wf, bf = params["final_wf"], params["final_bf"]
    wk, bk = params["final_wk"], params["final_bk"]
    Cout = wf.shape[3]
    xp = jnp.pad(x, ((0, 0), (1, 1), (1, 1), (0, 0)))
    feat = jnp.zeros((B, H, W, Cout), jnp.float32)
    ker = jnp.zeros((B, H, W, 9), jnp.float32)
    for dy in range(3):
        for dx in range(3):
            patch = xp[:, dy:dy + H, dx:dx + W, :]
            feat = feat + jnp.einsum("bhwc,co->bhwo", patch, wf[dy, dx],
                                     precision=P)
            ker = ker + jnp.einsum("bhwc,co->bhwo", patch, wk[dy, dx],
                                   precision=P)
    feat = feat + bf
    ker = ker + bk
    radp = jnp.pad(jnp.transpose(radiance_nchw, (0, 2, 3, 1)),
                   ((0, 0), (1, 1), (1, 1), (0, 0)))
    accum = jnp.zeros((B, H, W, 3), jnp.float32)
    for ky in range(3):
        for kx in range(3):
            k = ky * 3 + kx
            accum = accum + ker[..., k:k + 1] * radp[:, ky:ky + H, kx:kx + W, :]
    return (jnp.transpose(feat, (0, 3, 1, 2)),
            jnp.transpose(accum, (0, 3, 1, 2)))


if __name__ == "__main__":
    B, Cin, Cout, H, W = 2, 16, 3, 16, 16
    key = jax.random.PRNGKey(0)
    k_par, k_in, k_rad = jax.random.split(key, 3)
    params = init_params(k_par, Cin, Cout)
    inp = jax.random.normal(k_in, (B, Cin, H, W), jnp.float32)
    rad = jax.random.normal(k_rad, (B, 3, H, W), jnp.float32)

    fwd = jax.jit(kernel_matching_decoder_kp)
    features, accum = fwd(params, inp, rad)
    jax.block_until_ready((features, accum))

    assert features.shape == (B, Cout, H, W), features.shape
    assert accum.shape == (B, 3, H, W), accum.shape

    feat_r, accum_r = jax.jit(reference_forward)(params, inp, rad)
    err_f = float(jnp.max(jnp.abs(features - feat_r)))
    err_a = float(jnp.max(jnp.abs(accum - accum_r)))
    assert bool(jnp.allclose(features, feat_r, atol=5e-2, rtol=5e-2)), err_f
    assert bool(jnp.allclose(accum, accum_r, atol=5e-2, rtol=5e-2)), err_a

    print("KERNEL_OK")
</pallas_src>

<mosaic_0001>
module attributes {stable_mosaic.version = 11 : i64} {
  func.func @_decoder_kernel(%arg0: i32, %arg1: memref<1x16x256xf32, #tpu.memory_space<vmem>>, %arg2: memref<1x3x290xf32, #tpu.memory_space<vmem>>, %arg3: memref<7x358xf32, #tpu.memory_space<vmem>>, %arg4: memref<3x290xf32, #tpu.memory_space<vmem>>, %arg5: memref<64x784xbf16, #tpu.memory_space<vmem>>, %arg6: memref<64x1xf32, #tpu.memory_space<vmem>>, %arg7: memref<16x64xbf16, #tpu.memory_space<vmem>>, %arg8: memref<16x1xf32, #tpu.memory_space<vmem>>, %arg9: memref<64x784xbf16, #tpu.memory_space<vmem>>, %arg10: memref<64x1xf32, #tpu.memory_space<vmem>>, %arg11: memref<16x64xbf16, #tpu.memory_space<vmem>>, %arg12: memref<16x1xf32, #tpu.memory_space<vmem>>, %arg13: memref<16x144xbf16, #tpu.memory_space<vmem>>, %arg14: memref<16x1xf32, #tpu.memory_space<vmem>>, %arg15: memref<1x3x256xf32, #tpu.memory_space<vmem>>, %arg16: memref<1x3x256xf32, #tpu.memory_space<vmem>>, %arg17: memref<784x256xbf16, #tpu.memory_space<vmem>>, %arg18: memref<16x358xbf16, #tpu.memory_space<vmem>>, %arg19: memref<16x290xbf16, #tpu.memory_space<vmem>>) attributes {dimension_semantics = [#tpu.dimension_semantics<parallel>], iteration_bounds = array<i64: 2>, scalar_prefetch = 0 : i64, scratch_operands = 3 : i64, tpu.core_type = #tpu.core_type<tc>, window_params = [{transform_indices = @transform_0, window_bounds = array<i64: 1, 16, 256>}, {transform_indices = @transform_1, window_bounds = array<i64: 1, 3, 290>}, {pipeline_mode = #tpu.pipeline_mode<synchronous>, transform_indices = @transform_2, window_bounds = array<i64: 7, 358>}, {pipeline_mode = #tpu.pipeline_mode<synchronous>, transform_indices = @transform_3, window_bounds = array<i64: 3, 290>}, {pipeline_mode = #tpu.pipeline_mode<synchronous>, transform_indices = @transform_4, window_bounds = array<i64: 64, 784>}, {pipeline_mode = #tpu.pipeline_mode<synchronous>, transform_indices = @transform_5, window_bounds = array<i64: 64, 1>}, {pipeline_mode = #tpu.pipeline_mode<synchronous>, transform_indices = @transform_6, window_bounds = array<i64: 16, 64>}, {pipeline_mode = #tpu.pipeline_mode<synchronous>, transform_indices = @transform_7, window_bounds = array<i64: 16, 1>}, {pipeline_mode = #tpu.pipeline_mode<synchronous>, transform_indices = @transform_8, window_bounds = array<i64: 64, 784>}, {pipeline_mode = #tpu.pipeline_mode<synchronous>, transform_indices = @transform_9, window_bounds = array<i64: 64, 1>}, {pipeline_mode = #tpu.pipeline_mode<synchronous>, transform_indices = @transform_10, window_bounds = array<i64: 16, 64>}, {pipeline_mode = #tpu.pipeline_mode<synchronous>, transform_indices = @transform_11, window_bounds = array<i64: 16, 1>}, {pipeline_mode = #tpu.pipeline_mode<synchronous>, transform_indices = @transform_12, window_bounds = array<i64: 16, 144>}, {pipeline_mode = #tpu.pipeline_mode<synchronous>, transform_indices = @transform_13, window_bounds = array<i64: 16, 1>}, {transform_indices = @transform_14, window_bounds = array<i64: 1, 3, 256>}, {transform_indices = @transform_15, window_bounds = array<i64: 1, 3, 256>}]} {
    %c0 = arith.constant 0 : index
    %c0_0 = arith.constant 0 : index
    %c0_1 = arith.constant 0 : index
    %0 = vector.load %arg1[%c0, %c0_0, %c0_1] : memref<1x16x256xf32, #tpu.memory_space<vmem>>, vector<1x16x256xf32>
    %1 = vector.shape_cast %0 : vector<1x16x256xf32> to vector<16x256xf32>
    %cst = arith.constant 0.000000e+00 : bf16
    %2 = vector.broadcast %cst : bf16 to vector<16x51xbf16>
    %c0_2 = arith.constant 0 : index
    %c0_3 = arith.constant 0 : index
    %3 = vector.load %arg18[%c0_2, %c0_3] : memref<16x358xbf16, #tpu.memory_space<vmem>>, vector<16x51xbf16>
    tpu.vector_store %arg18[%c0_2, %c0_3], %2 {strides = array<i32>} : memref<16x358xbf16, #tpu.memory_space<vmem>>, vector<16x51xbf16>,
    %cst_4 = arith.constant 0.000000e+00 : bf16
    %4 = vector.broadcast %cst_4 : bf16 to vector<16x51xbf16>
    %c0_5 = arith.constant 0 : index
    %c307 = arith.constant 307 : index
    %5 = vector.load %arg18[%c0_5, %c307] : memref<16x358xbf16, #tpu.memory_space<vmem>>, vector<16x51xbf16>
    tpu.vector_store %arg18[%c0_5, %c307], %4 {strides = array<i32>} : memref<16x358xbf16, #tpu.memory_space<vmem>>, vector<16x51xbf16>,
    %6 = arith.truncf %1 : vector<16x256xf32> to vector<16x256xbf16>
    %c0_6 = arith.constant 0 : index
    %c51 = arith.constant 51 : index
    %7 = vector.load %arg18[%c0_6, %c51] : memref<16x358xbf16, #tpu.memory_space<vmem>>, vector<16x256xbf16>
    tpu.vector_store %arg18[%c0_6, %c51], %6 {strides = array<i32>} : memref<16x358xbf16, #tpu.memory_space<vmem>>, vector<16x256xbf16>,
    %c0_7 = arith.constant 0 : index
    %c0_8 = arith.constant 0 : index
    %8 = vector.load %arg18[%c0_7, %c0_8] : memref<16x358xbf16, #tpu.memory_space<vmem>>, vector<16x358xbf16>
    %c0_9 = arith.constant 0 : index
    %c0_10 = arith.constant 0 : index
    %9 = vector.load %arg3[%c0_9, %c0_10] : memref<7x358xf32, #tpu.memory_space<vmem>>, vector<1x358xf32>
    %10 = arith.truncf %9 : vector<1x358xf32> to vector<1x358xbf16>
    %11 = vector.broadcast %10 : vector<1x358xbf16> to vector<16x358xbf16>
    %12 = arith.mulf %8, %11 : vector<16x358xbf16>
    %c1 = arith.constant 1 : index
    %c0_11 = arith.constant 0 : index
    %13 = vector.load %arg3[%c1, %c0_11] : memref<7x358xf32, #tpu.memory_space<vmem>>, vector<1x358xf32>
    %14 = arith.truncf %13 : vector<1x358xf32> to vector<1x358xbf16>
    %15 = vector.broadcast %14 : vector<1x358xbf16> to vector<16x358xbf16>
    %16 = arith.mulf %8, %15 : vector<16x358xbf16>
    %c2 = arith.constant 2 : index
    %c0_12 = arith.constant 0 : index
    %17 = vector.load %arg3[%c2, %c0_12] : memref<7x358xf32, #tpu.memory_space<vmem>>, vector<1x358xf32>
    %18 = arith.truncf %17 : vector<1x358xf32> to vector<1x358xbf16>
    %19 = vector.broadcast %18 : vector<1x358xbf16> to vector<16x358xbf16>
    %20 = arith.mulf %8, %19 : vector<16x358xbf16>
    %c3 = arith.constant 3 : index
    %c0_13 = arith.constant 0 : index
    %21 = vector.load %arg3[%c3, %c0_13] : memref<7x358xf32, #tpu.memory_space<vmem>>, vector<1x358xf32>
    %22 = arith.truncf %21 : vector<1x358xf32> to vector<1x358xbf16>
    %23 = vector.broadcast %22 : vector<1x358xbf16> to vector<16x358xbf16>
    %24 = arith.mulf %8, %23 : vector<16x358xbf16>
    %c4 = arith.constant 4 : index
    %c0_14 = arith.constant 0 : index
    %25 = vector.load %arg3[%c4, %c0_14] : memref<7x358xf32, #tpu.memory_space<vmem>>, vector<1x358xf32>
    %26 = arith.truncf %25 : vector<1x358xf32> to vector<1x358xbf16>
    %27 = vector.broadcast %26 : vector<1x358xbf16> to vector<16x358xbf16>
    %28 = arith.mulf %8, %27 : vector<16x358xbf16>
    %c5 = arith.constant 5 : index
    %c0_15 = arith.constant 0 : index
    %29 = vector.load %arg3[%c5, %c0_15] : memref<7x358xf32, #tpu.memory_space<vmem>>, vector<1x358xf32>
    %30 = arith.truncf %29 : vector<1x358xf32> to vector<1x358xbf16>
    %31 = vector.broadcast %30 : vector<1x358xbf16> to vector<16x358xbf16>
    %32 = arith.mulf %8, %31 : vector<16x358xbf16>
    %c6 = arith.constant 6 : index
    %c0_16 = arith.constant 0 : index
    %33 = vector.load %arg3[%c6, %c0_16] : memref<7x358xf32, #tpu.memory_space<vmem>>, vector<1x358xf32>
    %34 = arith.truncf %33 : vector<1x358xf32> to vector<1x358xbf16>
    %35 = vector.broadcast %34 : vector<1x358xbf16> to vector<16x358xbf16>
    %36 = arith.mulf %8, %35 : vector<16x358xbf16>
    %37 = vector.extract_strided_slice %12 {offsets = [0, 0], sizes = [16, 256], strides = [1, 1]} : vector<16x358xbf16> to vector<16x256xbf16>
    %c0_17 = arith.constant 0 : index
    %c0_18 = arith.constant 0 : index
    %38 = vector.load %arg17[%c0_17, %c0_18] : memref<784x256xbf16, #tpu.memory_space<vmem>>, vector<16x256xbf16>
    tpu.vector_store %arg17[%c0_17, %c0_18], %37 {strides = array<i32>} : memref<784x256xbf16, #tpu.memory_space<vmem>>, vector<16x256xbf16>,
    %39 = vector.extract_strided_slice %16 {offsets = [0, 1], sizes = [16, 256], strides = [1, 1]} : vector<16x358xbf16> to vector<16x256xbf16>
    %c16 = arith.constant 16 : index
    %c0_19 = arith.constant 0 : index
    %40 = vector.load %arg17[%c16, %c0_19] : memref<784x256xbf16, #tpu.memory_space<vmem>>, vector<16x256xbf16>
    tpu.vector_store %arg17[%c16, %c0_19], %39 {strides = array<i32>} : memref<784x256xbf16, #tpu.memory_space<vmem>>, vector<16x256xbf16>,
    %41 = vector.extract_strided_slice %20 {offsets = [0, 2], sizes = [16, 256], strides = [1, 1]} : vector<16x358xbf16> to vector<16x256xbf16>
    %c32 = arith.constant 32 : index
    %c0_20 = arith.constant 0 : index
    %42 = vector.load %arg17[%c32, %c0_20] : memref<784x256xbf16, #tpu.memory_space<vmem>>, vector<16x256xbf16>
    tpu.vector_store %arg17[%c32, %c0_20], %41 {strides = array<i32>} : memref<784x256xbf16, #tpu.memory_space<vmem>>, vector<16x256xbf16>,
    %43 = vector.extract_strided_slice %24 {offsets = [0, 3], sizes = [16, 256], strides = [1, 1]} : vector<16x358xbf16> to vector<16x256xbf16>
    %c48 = arith.constant 48 : index
    %c0_21 = arith.constant 0 : index
    %44 = vector.load %arg17[%c48, %c0_21] : memref<784x256xbf16, #tpu.memory_space<vmem>>, vector<16x256xbf16>
    tpu.vector_store %arg17[%c48, %c0_21], %43 {strides = array<i32>} : memref<784x256xbf16, #tpu.memory_space<vmem>>, vector<16x256xbf16>,
    %45 = vector.extract_strided_slice %28 {offsets = [0, 4], sizes = [16, 256], strides = [1, 1]} : vector<16x358xbf16> to vector<16x256xbf16>
    %c64 = arith.constant 64 : index
    %c0_22 = arith.constant 0 : index
    %46 = vector.load %arg17[%c64, %c0_22] : memref<784x256xbf16, #tpu.memory_space<vmem>>, vector<16x256xbf16>
    tpu.vector_store %arg17[%c64, %c0_22], %45 {strides = array<i32>} : memref<784x256xbf16, #tpu.memory_space<vmem>>, vector<16x256xbf16>,
    %47 = vector.extract_strided_slice %32 {offsets = [0, 5], sizes = [16, 256], strides = [1, 1]} : vector<16x358xbf16> to vector<16x256xbf16>
    %c80 = arith.constant 80 : index
    %c0_23 = arith.constant 0 : index
    %48 = vector.load %arg17[%c80, %c0_23] : memref<784x256xbf16, #tpu.memory_space<vmem>>, vector<16x256xbf16>
    tpu.vector_store %arg17[%c80, %c0_23], %47 {strides = array<i32>} : memref<784x256xbf16, #tpu.memory_space<vmem>>, vector<16x256xbf16>,
    %49 = vector.extract_strided_slice %36 {offsets = [0, 6], sizes = [16, 256], strides = [1, 1]} : vector<16x358xbf16> to vector<16x256xbf16>
    %c96 = arith.constant 96 : index
    %c0_24 = arith.constant 0 : index
    %50 = vector.load %arg17[%c96, %c0_24] : memref<784x256xbf16, #tpu.memory_space<vmem>>, vector<16x256xbf16>
    tpu.vector_store %arg17[%c96, %c0_24], %49 {strides = array<i32>} : memref<784x256xbf16, #tpu.memory_space<vmem>>, vector<16x256xbf16>,
    %51 = vector.extract_strided_slice %12 {offsets = [0, 16], sizes = [16, 256], strides = [1, 1]} : vector<16x358xbf16> to vector<16x256xbf16>
    %c112 = arith.constant 112 : index
    %c0_25 = arith.constant 0 : index
    %52 = vector.load %arg17[%c112, %c0_25] : memref<784x256xbf16, #tpu.memory_space<vmem>>, vector<16x256xbf16>
    tpu.vector_store %arg17[%c112, %c0_25], %51 {strides = array<i32>} : memref<784x256xbf16, #tpu.memory_space<vmem>>, vector<16x256xbf16>,
    %53 = vector.extract_strided_slice %16 {offsets = [0, 17], sizes = [16, 256], strides = [1, 1]} : vector<16x358xbf16> to vector<16x256xbf16>
    %c128 = arith.constant 128 : index
    %c0_26 = arith.constant 0 : index
    %54 = vector.load %arg17[%c128, %c0_26] : memref<784x256xbf16, #tpu.memory_space<vmem>>, vector<16x256xbf16>
    tpu.vector_store %arg17[%c128, %c0_26], %53 {strides = array<i32>} : memref<784x256xbf16, #tpu.memory_space<vmem>>, vector<16x256xbf16>,
    %55 = vector.extract_strided_slice %20 {offsets = [0, 18], sizes = [16, 256], strides = [1, 1]} : vector<16x358xbf16> to vector<16x256xbf16>
    %c144 = arith.constant 144 : index
    %c0_27 = arith.constant 0 : index
    %56 = vector.load %arg17[%c144, %c0_27] : memref<784x256xbf16, #tpu.memory_space<vmem>>, vector<16x256xbf16>
    tpu.vector_store %arg17[%c144, %c0_27], %55 {strides = array<i32>} : memref<784x256xbf16, #tpu.memory_space<vmem>>, vector<16x256xbf16>,
    %57 = vector.extract_strided_slice %24 {offsets = [0, 19], sizes = [16, 256], strides = [1, 1]} : vector<16x358xbf16> to vector<16x256xbf16>
    %c160 = arith.constant 160 : index
    %c0_28 = arith.constant 0 : index
    %58 = vector.load %arg17[%c160, %c0_28] : memref<784x256xbf16, #tpu.memory_space<vmem>>, vector<16x256xbf16>
    tpu.vector_store %arg17[%c160, %c0_28], %57 {strides = array<i32>} : memref<784x256xbf16, #tpu.memory_space<vmem>>, vector<16x256xbf16>,
    %59 = vector.extract_strided_slice %28 {offsets = [0, 20], sizes = [16, 256], strides = [1, 1]} : vector<16x358xbf16> to vector<16x256xbf16>
    %c176 = arith.constant 176 : index
    %c0_29 = arith.constant 0 : index
    %60 = vector.load %arg17[%c176, %c0_29] : memref<784x256xbf16, #tpu.memory_space<vmem>>, vector<16x256xbf16>
    tpu.vector_store %arg17[%c176, %c0_29], %59 {strides = array<i32>} : memref<784x256xbf16, #tpu.memory_space<vmem>>, vector<16x256xbf16>,
    %61 = vector.extract_strided_slice %32 {offsets = [0, 21], sizes = [16, 256], strides = [1, 1]} : vector<16x358xbf16> to vector<16x256xbf16>
    %c192 = arith.constant 192 : index
    %c0_30 = arith.constant 0 : index
    %62 = vector.load %arg17[%c192, %c0_30] : memref<784x256xbf16, #tpu.memory_space<vmem>>, vector<16x256xbf16>
    tpu.vector_store %arg17[%c192, %c0_30], %61 {strides = array<i32>} : memref<784x256xbf16, #tpu.memory_space<vmem>>, vector<16x256xbf16>,
    %63 = vector.extract_strided_slice %36 {offsets = [0, 22], sizes = [16, 256], strides = [1, 1]} : vector<16x358xbf16> to vector<16x256xbf16>
    %c208 = arith.constant 208 : index
    %c0_31 = arith.constant 0 : index
    %64 = vector.load %arg17[%c208, %c0_31] : memref<784x256xbf16, #tpu.memory_space<vmem>>, vector<16x256xbf16>
    tpu.vector_store %arg17[%c208, %c0_31], %63 {strides = array<i32>} : memref<784x256xbf16, #tpu.memory_space<vmem>>, vector<16x256xbf16>,
    %65 = vector.extract_strided_slice %12 {offsets = [0, 32], sizes = [16, 256], strides = [1, 1]} : vector<16x358xbf16> to vector<16x256xbf16>
    %c224 = arith.constant 224 : index
    %c0_32 = arith.constant 0 : index
    %66 = vector.load %arg17[%c224, %c0_32] : memref<784x256xbf16, #tpu.memory_space<vmem>>, vector<16x256xbf16>
    tpu.vector_store %arg17[%c224, %c0_32], %65 {strides = array<i32>} : memref<784x256xbf16, #tpu.memory_space<vmem>>, vector<16x256xbf16>,
    %67 = vector.extract_strided_slice %16 {offsets = [0, 33], sizes = [16, 256], strides = [1, 1]} : vector<16x358xbf16> to vector<16x256xbf16>
    %c240 = arith.constant 240 : index
    %c0_33 = arith.constant 0 : index
    %68 = vector.load %arg17[%c240, %c0_33] : memref<784x256xbf16, #tpu.memory_space<vmem>>, vector<16x256xbf16>
    tpu.vector_store %arg17[%c240, %c0_33], %67 {strides = array<i32>} : memref<784x256xbf16, #tpu.memory_space<vmem>>, vector<16x256xbf16>,
    %69 = vector.extract_strided_slice %20 {offsets = [0, 34], sizes = [16, 256], strides = [1, 1]} : vector<16x358xbf16> to vector<16x256xbf16>
    %c256 = arith.constant 256 : index
    %c0_34 = arith.constant 0 : index
    %70 = vector.load %arg17[%c256, %c0_34] : memref<784x256xbf16, #tpu.memory_space<vmem>>, vector<16x256xbf16>
    tpu.vector_store %arg17[%c256, %c0_34], %69 {strides = array<i32>} : memref<784x256xbf16, #tpu.memory_space<vmem>>, vector<16x256xbf16>,
    %71 = vector.extract_strided_slice %24 {offsets = [0, 35], sizes = [16, 256], strides = [1, 1]} : vector<16x358xbf16> to vector<16x256xbf16>
    %c272 = arith.constant 272 : index
    %c0_35 = arith.constant 0 : index
    %72 = vector.load %arg17[%c272, %c0_35] : memref<784x256xbf16, #tpu.memory_space<vmem>>, vector<16x256xbf16>
    tpu.vector_store %arg17[%c272, %c0_35], %71 {strides = array<i32>} : memref<784x256xbf16, #tpu.memory_space<vmem>>, vector<16x256xbf16>,
    %73 = vector.extract_strided_slice %28 {offsets = [0, 36], sizes = [16, 256], strides = [1, 1]} : vector<16x358xbf16> to vector<16x256xbf16>
    %c288 = arith.constant 288 : index
    %c0_36 = arith.constant 0 : index
    %74 = vector.load %arg17[%c288, %c0_36] : memref<784x256xbf16, #tpu.memory_space<vmem>>, vector<16x256xbf16>
    tpu.vector_store %arg17[%c288, %c0_36], %73 {strides = array<i32>} : memref<784x256xbf16, #tpu.memory_space<vmem>>, vector<16x256xbf16>,
    %75 = vector.extract_strided_slice %32 {offsets = [0, 37], sizes = [16, 256], strides = [1, 1]} : vector<16x358xbf16> to vector<16x256xbf16>
    %c304 = arith.constant 304 : index
    %c0_37 = arith.constant 0 : index
    %76 = vector.load %arg17[%c304, %c0_37] : memref<784x256xbf16, #tpu.memory_space<vmem>>, vector<16x256xbf16>
    tpu.vector_store %arg17[%c304, %c0_37], %75 {strides = array<i32>} : memref<784x256xbf16, #tpu.memory_space<vmem>>, vector<16x256xbf16>,
    %77 = vector.extract_strided_slice %36 {offsets = [0, 38], sizes = [16, 256], strides = [1, 1]} : vector<16x358xbf16> to vector<16x256xbf16>
    %c320 = arith.constant 320 : index
    %c0_38 = arith.constant 0 : index
    %78 = vector.load %arg17[%c320, %c0_38] : memref<784x256xbf16, #tpu.memory_space<vmem>>, vector<16x256xbf16>
    tpu.vector_store %arg17[%c320, %c0_38], %77 {strides = array<i32>} : memref<784x256xbf16, #tpu.memory_space<vmem>>, vector<16x256xbf16>,
    %79 = vector.extract_strided_slice %12 {offsets = [0, 48], sizes = [16, 256], strides = [1, 1]} : vector<16x358xbf16> to vector<16x256xbf16>
    %c336 = arith.constant 336 : index
    %c0_39 = arith.constant 0 : index
    %80 = vector.load %arg17[%c336, %c0_39] : memref<784x256xbf16, #tpu.memory_space<vmem>>, vector<16x256xbf16>
    tpu.vector_store %arg17[%c336, %c0_39], %79 {strides = array<i32>} : memref<784x256xbf16, #tpu.memory_space<vmem>>, vector<16x256xbf16>,
    %81 = vector.extract_strided_slice %16 {offsets = [0, 49], sizes = [16, 256], strides = [1, 1]} : vector<16x358xbf16> to vector<16x256xbf16>
    %c352 = arith.constant 352 : index
    %c0_40 = arith.constant 0 : index
    %82 = vector.load %arg17[%c352, %c0_40] : memref<784x256xbf16, #tpu.memory_space<vmem>>, vector<16x256xbf16>
    tpu.vector_store %arg17[%c352, %c0_40], %81 {strides = array<i32>} : memref<784x256xbf16, #tpu.memory_space<vmem>>, vector<16x256xbf16>,
    %83 = vector.extract_strided_slice %20 {offsets = [0, 50], sizes = [16, 256], strides = [1, 1]} : vector<16x358xbf16> to vector<16x256xbf16>
    %c368 = arith.constant 368 : index
    %c0_41 = arith.constant 0 : index
    %84 = vector.load %arg17[%c368, %c0_41] : memref<784x256xbf16, #tpu.memory_space<vmem>>, vector<16x256xbf16>
    tpu.vector_store %arg17[%c368, %c0_41], %83 {strides = array<i32>} : memref<784x256xbf16, #tpu.memory_space<vmem>>, vector<16x256xbf16>,
    %85 = vector.extract_strided_slice %24 {offsets = [0, 51], sizes = [16, 256], strides = [1, 1]} : vector<16x358xbf16> to vector<16x256xbf16>
    %c384 = arith.constant 384 : index
    %c0_42 = arith.constant 0 : index
    %86 = vector.load %arg17[%c384, %c0_42] : memref<784x256xbf16, #tpu.memory_space<vmem>>, vector<16x256xbf16>
    tpu.vector_store %arg17[%c384, %c0_42], %85 {strides = array<i32>} : memref<784x256xbf16, #tpu.memory_space<vmem>>, vector<16x256xbf16>,
    %87 = vector.extract_strided_slice %28 {offsets = [0, 52], sizes = [16, 256], strides = [1, 1]} : vector<16x358xbf16> to vector<16x256xbf16>
    %c400 = arith.constant 400 : index
    %c0_43 = arith.constant 0 : index
    %88 = vector.load %arg17[%c400, %c0_43] : memref<784x256xbf16, #tpu.memory_space<vmem>>, vector<16x256xbf16>
    tpu.vector_store %arg17[%c400, %c0_43], %87 {strides = array<i32>} : memref<784x256xbf16, #tpu.memory_space<vmem>>, vector<16x256xbf16>,
    %89 = vector.extract_strided_slice %32 {offsets = [0, 53], sizes = [16, 256], strides = [1, 1]} : vector<16x358xbf16> to vector<16x256xbf16>
    %c416 = arith.constant 416 : index
    %c0_44 = arith.constant 0 : index
    %90 = vector.load %arg17[%c416, %c0_44] : memref<784x256xbf16, #tpu.memory_space<vmem>>, vector<16x256xbf16>
    tpu.vector_store %arg17[%c416, %c0_44], %89 {strides = array<i32>} : memref<784x256xbf16, #tpu.memory_space<vmem>>, vector<16x256xbf16>,
    %91 = vector.extract_strided_slice %36 {offsets = [0, 54], sizes = [16, 256], strides = [1, 1]} : vector<16x358xbf16> to vector<16x256xbf16>
    %c432 = arith.constant 432 : index
    %c0_45 = arith.constant 0 : index
    %92 = vector.load %arg17[%c432, %c0_45] : memref<784x256xbf16, #tpu.memory_space<vmem>>, vector<16x256xbf16>
    tpu.vector_store %arg17[%c432, %c0_45], %91 {strides = array<i32>} : memref<784x256xbf16, #tpu.memory_space<vmem>>, vector<16x256xbf16>,
    %93 = vector.extract_strided_slice %12 {offsets = [0, 64], sizes = [16, 256], strides = [1, 1]} : vector<16x358xbf16> to vector<16x256xbf16>
    %c448 = arith.constant 448 : index
    %c0_46 = arith.constant 0 : index
    %94 = vector.load %arg17[%c448, %c0_46] : memref<784x256xbf16, #tpu.memory_space<vmem>>, vector<16x256xbf16>
    tpu.vector_store %arg17[%c448, %c0_46], %93 {strides = array<i32>} : memref<784x256xbf16, #tpu.memory_space<vmem>>, vector<16x256xbf16>,
    %95 = vector.extract_strided_slice %16 {offsets = [0, 65], sizes = [16, 256], strides = [1, 1]} : vector<16x358xbf16> to vector<16x256xbf16>
    %c464 = arith.constant 464 : index
    %c0_47 = arith.constant 0 : index
    %96 = vector.load %arg17[%c464, %c0_47] : memref<784x256xbf16, #tpu.memory_space<vmem>>, vector<16x256xbf16>
    tpu.vector_store %arg17[%c464, %c0_47], %95 {strides = array<i32>} : memref<784x256xbf16, #tpu.memory_space<vmem>>, vector<16x256xbf16>,
    %97 = vector.extract_strided_slice %20 {offsets = [0, 66], sizes = [16, 256], strides = [1, 1]} : vector<16x358xbf16> to vector<16x256xbf16>
    %c480 = arith.constant 480 : index
    %c0_48 = arith.constant 0 : index
    %98 = vector.load %arg17[%c480, %c0_48] : memref<784x256xbf16, #tpu.memory_space<vmem>>, vector<16x256xbf16>
    tpu.vector_store %arg17[%c480, %c0_48], %97 {strides = array<i32>} : memref<784x256xbf16, #tpu.memory_space<vmem>>, vector<16x256xbf16>,
    %99 = vector.extract_strided_slice %24 {offsets = [0, 67], sizes = [16, 256], strides = [1, 1]} : vector<16x358xbf16> to vector<16x256xbf16>
    %c496 = arith.constant 496 : index
    %c0_49 = arith.constant 0 : index
    %100 = vector.load %arg17[%c496, %c0_49] : memref<784x256xbf16, #tpu.memory_space<vmem>>, vector<16x256xbf16>
    tpu.vector_store %arg17[%c496, %c0_49], %99 {strides = array<i32>} : memref<784x256xbf16, #tpu.memory_space<vmem>>, vector<16x256xbf16>,
    %101 = vector.extract_strided_slice %28 {offsets = [0, 68], sizes = [16, 256], strides = [1, 1]} : vector<16x358xbf16> to vector<16x256xbf16>
    %c512 = arith.constant 512 : index
    %c0_50 = arith.constant 0 : index
    %102 = vector.load %arg17[%c512, %c0_50] : memref<784x256xbf16, #tpu.memory_space<vmem>>, vector<16x256xbf16>
    tpu.vector_store %arg17[%c512, %c0_50], %101 {strides = array<i32>} : memref<784x256xbf16, #tpu.memory_space<vmem>>, vector<16x256xbf16>,
    %103 = vector.extract_strided_slice %32 {offsets = [0, 69], sizes = [16, 256], strides = [1, 1]} : vector<16x358xbf16> to vector<16x256xbf16>
    %c528 = arith.constant 528 : index
    %c0_51 = arith.constant 0 : index
    %104 = vector.load %arg17[%c528, %c0_51] : memref<784x256xbf16, #tpu.memory_space<vmem>>, vector<16x256xbf16>
    tpu.vector_store %arg17[%c528, %c0_51], %103 {strides = array<i32>} : memref<784x256xbf16, #tpu.memory_space<vmem>>, vector<16x256xbf16>,
    %105 = vector.extract_strided_slice %36 {offsets = [0, 70], sizes = [16, 256], strides = [1, 1]} : vector<16x358xbf16> to vector<16x256xbf16>
    %c544 = arith.constant 544 : index
    %c0_52 = arith.constant 0 : index
    %106 = vector.load %arg17[%c544, %c0_52] : memref<784x256xbf16, #tpu.memory_space<vmem>>, vector<16x256xbf16>
    tpu.vector_store %arg17[%c544, %c0_52], %105 {strides = array<i32>} : memref<784x256xbf16, #tpu.memory_space<vmem>>, vector<16x256xbf16>,
    %107 = vector.extract_strided_slice %12 {offsets = [0, 80], sizes = [16, 256], strides = [1, 1]} : vector<16x358xbf16> to vector<16x256xbf16>
    %c560 = arith.constant 560 : index
    %c0_53 = arith.constant 0 : index
    %108 = vector.load %arg17[%c560, %c0_53] : memref<784x256xbf16, #tpu.memory_space<vmem>>, vector<16x256xbf16>
    tpu.vector_store %arg17[%c560, %c0_53], %107 {strides = array<i32>} : memref<784x256xbf16, #tpu.memory_space<vmem>>, vector<16x256xbf16>,
    %109 = vector.extract_strided_slice %16 {offsets = [0, 81], sizes = [16, 256], strides = [1, 1]} : vector<16x358xbf16> to vector<16x256xbf16>
    %c576 = arith.constant 576 : index
    %c0_54 = arith.constant 0 : index
    %110 = vector.load %arg17[%c576, %c0_54] : memref<784x256xbf16, #tpu.memory_space<vmem>>, vector<16x256xbf16>
    tpu.vector_store %arg17[%c576, %c0_54], %109 {strides = array<i32>} : memref<784x256xbf16, #tpu.memory_space<vmem>>, vector<16x256xbf16>,
    %111 = vector.extract_strided_slice %20 {offsets = [0, 82], sizes = [16, 256], strides = [1, 1]} : vector<16x358xbf16> to vector<16x256xbf16>
    %c592 = arith.constant 592 : index
    %c0_55 = arith.constant 0 : index
    %112 = vector.load %arg17[%c592, %c0_55] : memref<784x256xbf16, #tpu.memory_space<vmem>>, vector<16x256xbf16>
    tpu.vector_store %arg17[%c592, %c0_55], %111 {strides = array<i32>} : memref<784x256xbf16, #tpu.memory_space<vmem>>, vector<16x256xbf16>,
    %113 = vector.extract_strided_slice %24 {offsets = [0, 83], sizes = [16, 256], strides = [1, 1]} : vector<16x358xbf16> to vector<16x256xbf16>
    %c608 = arith.constant 608 : index
    %c0_56 = arith.constant 0 : index
    %114 = vector.load %arg17[%c608, %c0_56] : memref<784x256xbf16, #tpu.memory_space<vmem>>, vector<16x256xbf16>
    tpu.vector_store %arg17[%c608, %c0_56], %113 {strides = array<i32>} : memref<784x256xbf16, #tpu.memory_space<vmem>>, vector<16x256xbf16>,
    %115 = vector.extract_strided_slice %28 {offsets = [0, 84], sizes = [16, 256], strides = [1, 1]} : vector<16x358xbf16> to vector<16x256xbf16>
    %c624 = arith.constant 624 : index
    %c0_57 = arith.constant 0 : index
    %116 = vector.load %arg17[%c624, %c0_57] : memref<784x256xbf16, #tpu.memory_space<vmem>>, vector<16x256xbf16>
    tpu.vector_store %arg17[%c624, %c0_57], %115 {strides = array<i32>} : memref<784x256xbf16, #tpu.memory_space<vmem>>, vector<16x256xbf16>,
    %117 = vector.extract_strided_slice %32 {offsets = [0, 85], sizes = [16, 256], strides = [1, 1]} : vector<16x358xbf16> to vector<16x256xbf16>
    %c640 = arith.constant 640 : index
    %c0_58 = arith.constant 0 : index
    %118 = vector.load %arg17[%c640, %c0_58] : memref<784x256xbf16, #tpu.memory_space<vmem>>, vector<16x256xbf16>
    tpu.vector_store %arg17[%c640, %c0_58], %117 {strides = array<i32>} : memref<784x256xbf16, #tpu.memory_space<vmem>>, vector<16x256xbf16>,
    %119 = vector.extract_strided_slice %36 {offsets = [0, 86], sizes = [16, 256], strides = [1, 1]} : vector<16x358xbf16> to vector<16x256xbf16>
    %c656 = arith.constant 656 : index
    %c0_59 = arith.constant 0 : index
    %120 = vector.load %arg17[%c656, %c0_59] : memref<784x256xbf16, #tpu.memory_space<vmem>>, vector<16x256xbf16>
    tpu.vector_store %arg17[%c656, %c0_59], %119 {strides = array<i32>} : memref<784x256xbf16, #tpu.memory_space<vmem>>, vector<16x256xbf16>,
    %121 = vector.extract_strided_slice %12 {offsets = [0, 96], sizes = [16, 256], strides = [1, 1]} : vector<16x358xbf16> to vector<16x256xbf16>
    %c672 = arith.constant 672 : index
    %c0_60 = arith.constant 0 : index
    %122 = vector.load %arg17[%c672, %c0_60] : memref<784x256xbf16, #tpu.memory_space<vmem>>, vector<16x256xbf16>
    tpu.vector_store %arg17[%c672, %c0_60], %121 {strides = array<i32>} : memref<784x256xbf16, #tpu.memory_space<vmem>>, vector<16x256xbf16>,
    %123 = vector.extract_strided_slice %16 {offsets = [0, 97], sizes = [16, 256], strides = [1, 1]} : vector<16x358xbf16> to vector<16x256xbf16>
    %c688 = arith.constant 688 : index
    %c0_61 = arith.constant 0 : index
    %124 = vector.load %arg17[%c688, %c0_61] : memref<784x256xbf16, #tpu.memory_space<vmem>>, vector<16x256xbf16>
    tpu.vector_store %arg17[%c688, %c0_61], %123 {strides = array<i32>} : memref<784x256xbf16, #tpu.memory_space<vmem>>, vector<16x256xbf16>,
    %125 = vector.extract_strided_slice %20 {offsets = [0, 98], sizes = [16, 256], strides = [1, 1]} : vector<16x358xbf16> to vector<16x256xbf16>
    %c704 = arith.constant 704 : index
    %c0_62 = arith.constant 0 : index
    %126 = vector.load %arg17[%c704, %c0_62] : memref<784x256xbf16, #tpu.memory_space<vmem>>, vector<16x256xbf16>
    tpu.vector_store %arg17[%c704, %c0_62], %125 {strides = array<i32>} : memref<784x256xbf16, #tpu.memory_space<vmem>>, vector<16x256xbf16>,
    %127 = vector.extract_strided_slice %24 {offsets = [0, 99], sizes = [16, 256], strides = [1, 1]} : vector<16x358xbf16> to vector<16x256xbf16>
    %c720 = arith.constant 720 : index
    %c0_63 = arith.constant 0 : index
    %128 = vector.load %arg17[%c720, %c0_63] : memref<784x256xbf16, #tpu.memory_space<vmem>>, vector<16x256xbf16>
    tpu.vector_store %arg17[%c720, %c0_63], %127 {strides = array<i32>} : memref<784x256xbf16, #tpu.memory_space<vmem>>, vector<16x256xbf16>,
    %129 = vector.extract_strided_slice %28 {offsets = [0, 100], sizes = [16, 256], strides = [1, 1]} : vector<16x358xbf16> to vector<16x256xbf16>
    %c736 = arith.constant 736 : index
    %c0_64 = arith.constant 0 : index
    %130 = vector.load %arg17[%c736, %c0_64] : memref<784x256xbf16, #tpu.memory_space<vmem>>, vector<16x256xbf16>
    tpu.vector_store %arg17[%c736, %c0_64], %129 {strides = array<i32>} : memref<784x256xbf16, #tpu.memory_space<vmem>>, vector<16x256xbf16>,
    %131 = vector.extract_strided_slice %32 {offsets = [0, 101], sizes = [16, 256], strides = [1, 1]} : vector<16x358xbf16> to vector<16x256xbf16>
    %c752 = arith.constant 752 : index
    %c0_65 = arith.constant 0 : index
    %132 = vector.load %arg17[%c752, %c0_65] : memref<784x256xbf16, #tpu.memory_space<vmem>>, vector<16x256xbf16>
    tpu.vector_store %arg17[%c752, %c0_65], %131 {strides = array<i32>} : memref<784x256xbf16, #tpu.memory_space<vmem>>, vector<16x256xbf16>,
    %133 = vector.extract_strided_slice %36 {offsets = [0, 102], sizes = [16, 256], strides = [1, 1]} : vector<16x358xbf16> to vector<16x256xbf16>
    %c768 = arith.constant 768 : index
    %c0_66 = arith.constant 0 : index
    %134 = vector.load %arg17[%c768, %c0_66] : memref<784x256xbf16, #tpu.memory_space<vmem>>, vector<16x256xbf16>
    tpu.vector_store %arg17[%c768, %c0_66], %133 {strides = array<i32>} : memref<784x256xbf16, #tpu.memory_space<vmem>>, vector<16x256xbf16>,
    %c0_67 = arith.constant 0 : index
    %c0_68 = arith.constant 0 : index
    %135 = vector.load %arg5[%c0_67, %c0_68] : memref<64x784xbf16, #tpu.memory_space<vmem>>, vector<64x784xbf16>
    %c0_69 = arith.constant 0 : index
    %c0_70 = arith.constant 0 : index
    %136 = vector.load %arg17[%c0_69, %c0_70] : memref<784x256xbf16, #tpu.memory_space<vmem>>, vector<784x256xbf16>
    %cst_71 = arith.constant dense<0.000000e+00> : vector<64x256xf32>
    %137 = tpu.matmul %135, %136, %cst_71 {dimension_numbers = #tpu.dot_dimension_numbers<[1], [0], [0], [1], [0, 0, 1, 1], [], []>} : vector<64x784xbf16>, vector<784x256xbf16>, vector<64x256xf32> -> vector<64x256xf32>
    %c0_72 = arith.constant 0 : index
    %c0_73 = arith.constant 0 : index
    %138 = vector.load %arg6[%c0_72, %c0_73] : memref<64x1xf32, #tpu.memory_space<vmem>>, vector<64x1xf32>
    %139 = vector.broadcast %138 : vector<64x1xf32> to vector<64x256xf32>
    %140 = arith.addf %137, %139 : vector<64x256xf32>
    %cst_74 = arith.constant 0.000000e+00 : f32
    %141 = vector.broadcast %cst_74 : f32 to vector<64x256xf32>
    %142 = arith.maximumf %140, %141 : vector<64x256xf32>
    %c0_75 = arith.constant 0 : index
    %c0_76 = arith.constant 0 : index
    %143 = vector.load %arg7[%c0_75, %c0_76] : memref<16x64xbf16, #tpu.memory_space<vmem>>, vector<16x64xbf16>
    %144 = arith.truncf %142 : vector<64x256xf32> to vector<64x256xbf16>
    %cst_77 = arith.constant dense<0.000000e+00> : vector<16x256xf32>
    %145 = tpu.matmul %143, %144, %cst_77 {dimension_numbers = #tpu.dot_dimension_numbers<[1], [0], [0], [1], [0, 0, 1, 1], [], []>} : vector<16x64xbf16>, vector<64x256xbf16>, vector<16x256xf32> -> vector<16x256xf32>
    %146 = arith.addf %1, %145 : vector<16x256xf32>
    %c0_78 = arith.constant 0 : index
    %c0_79 = arith.constant 0 : index
    %147 = vector.load %arg8[%c0_78, %c0_79] : memref<16x1xf32, #tpu.memory_space<vmem>>, vector<16x1xf32>
    %148 = vector.broadcast %147 : vector<16x1xf32> to vector<16x256xf32>
    %149 = arith.addf %146, %148 : vector<16x256xf32>
    %cst_80 = arith.constant 0.000000e+00 : bf16
    %150 = vector.broadcast %cst_80 : bf16 to vector<16x51xbf16>
    %c0_81 = arith.constant 0 : index
    %c0_82 = arith.constant 0 : index
    %151 = vector.load %arg18[%c0_81, %c0_82] : memref<16x358xbf16, #tpu.memory_space<vmem>>, vector<16x51xbf16>
    tpu.vector_store %arg18[%c0_81, %c0_82], %150 {strides = array<i32>} : memref<16x358xbf16, #tpu.memory_space<vmem>>, vector<16x51xbf16>,
    %cst_83 = arith.constant 0.000000e+00 : bf16
    %152 = vector.broadcast %cst_83 : bf16 to vector<16x51xbf16>
    %c0_84 = arith.constant 0 : index
    %c307_85 = arith.constant 307 : index
    %153 = vector.load %arg18[%c0_84, %c307_85] : memref<16x358xbf16, #tpu.memory_space<vmem>>, vector<16x51xbf16>
    tpu.vector_store %arg18[%c0_84, %c307_85], %152 {strides = array<i32>} : memref<16x358xbf16, #tpu.memory_space<vmem>>, vector<16x51xbf16>,
    %154 = arith.truncf %149 : vector<16x256xf32> to vector<16x256xbf16>
    %c0_86 = arith.constant 0 : index
    %c51_87 = arith.constant 51 : index
    %155 = vector.load %arg18[%c0_86, %c51_87] : memref<16x358xbf16, #tpu.memory_space<vmem>>, vector<16x256xbf16>
    tpu.vector_store %arg18[%c0_86, %c51_87], %154 {strides = array<i32>} : memref<16x358xbf16, #tpu.memory_space<vmem>>, vector<16x256xbf16>,
    %c0_88 = arith.constant 0 : index
    %c0_89 = arith.constant 0 : index
    %156 = vector.load %arg18[%c0_88, %c0_89] : memref<16x358xbf16, #tpu.memory_space<vmem>>, vector<16x358xbf16>
    %c0_90 = arith.constant 0 : index
    %c0_91 = arith.constant 0 : index
    %157 = vector.load %arg3[%c0_90, %c0_91] : memref<7x358xf32, #tpu.memory_space<vmem>>, vector<1x358xf32>
    %158 = arith.truncf %157 : vector<1x358xf32> to vector<1x358xbf16>
    %159 = vector.broadcast %158 : vector<1x358xbf16> to vector<16x358xbf16>
    %160 = arith.mulf %156, %159 : vector<16x358xbf16>
    %c1_92 = arith.constant 1 : index
    %c0_93 = arith.constant 0 : index
    %161 = vector.load %arg3[%c1_92, %c0_93] : memref<7x358xf32, #tpu.memory_space<vmem>>, vector<1x358xf32>
    %162 = arith.truncf %161 : vector<1x358xf32> to vector<1x358xbf16>
    %163 = vector.broadcast %162 : vector<1x358xbf16> to vector<16x358xbf16>
    %164 = arith.mulf %156, %163 : vector<16x358xbf16>
    %c2_94 = arith.constant 2 : index
    %c0_95 = arith.constant 0 : index
    %165 = vector.load %arg3[%c2_94, %c0_95] : memref<7x358xf32, #tpu.memory_space<vmem>>, vector<1x358xf32>
    %166 = arith.truncf %165 : vector<1x358xf32> to vector<1x358xbf16>
    %167 = vector.broadcast %166 : vector<1x358xbf16> to vector<16x358xbf16>
    %168 = arith.mulf %156, %167 : vector<16x358xbf16>
    %c3_96 = arith.constant 3 : index
    %c0_97 = arith.constant 0 : index
    %169 = vector.load %arg3[%c3_96, %c0_97] : memref<7x358xf32, #tpu.memory_space<vmem>>, vector<1x358xf32>
    %170 = arith.truncf %169 : vector<1x358xf32> to vector<1x358xbf16>
    %171 = vector.broadcast %170 : vector<1x358xbf16> to vector<16x358xbf16>
    %172 = arith.mulf %156, %171 : vector<16x358xbf16>
    %c4_98 = arith.constant 4 : index
    %c0_99 = arith.constant 0 : index
    %173 = vector.load %arg3[%c4_98, %c0_99] : memref<7x358xf32, #tpu.memory_space<vmem>>, vector<1x358xf32>
    %174 = arith.truncf %173 : vector<1x358xf32> to vector<1x358xbf16>
    %175 = vector.broadcast %174 : vector<1x358xbf16> to vector<16x358xbf16>
    %176 = arith.mulf %156, %175 : vector<16x358xbf16>
    %c5_100 = arith.constant 5 : index
    %c0_101 = arith.constant 0 : index
    %177 = vector.load %arg3[%c5_100, %c0_101] : memref<7x358xf32, #tpu.memory_space<vmem>>, vector<1x358xf32>
    %178 = arith.truncf %177 : vector<1x358xf32> to vector<1x358xbf16>
    %179 = vector.broadcast %178 : vector<1x358xbf16> to vector<16x358xbf16>
    %180 = arith.mulf %156, %179 : vector<16x358xbf16>
    %c6_102 = arith.constant 6 : index
    %c0_103 = arith.constant 0 : index
    %181 = vector.load %arg3[%c6_102, %c0_103] : memref<7x358xf32, #tpu.memory_space<vmem>>, vector<1x358xf32>
    %182 = arith.truncf %181 : vector<1x358xf32> to vector<1x358xbf16>
    %183 = vector.broadcast %182 : vector<1x358xbf16> to vector<16x358xbf16>
    %184 = arith.mulf %156, %183 : vector<16x358xbf16>
    %185 = vector.extract_strided_slice %160 {offsets = [0, 0], sizes = [16, 256], strides = [1, 1]} : vector<16x358xbf16> to vector<16x256xbf16>
    %c0_104 = arith.constant 0 : index
    %c0_105 = arith.constant 0 : index
    %186 = vector.load %arg17[%c0_104, %c0_105] : memref<784x256xbf16, #tpu.memory_space<vmem>>, vector<16x256xbf16>
    tpu.vector_store %arg17[%c0_104, %c0_105], %185 {strides = array<i32>} : memref<784x256xbf16, #tpu.memory_space<vmem>>, vector<16x256xbf16>,
    %187 = vector.extract_strided_slice %164 {offsets = [0, 1], sizes = [16, 256], strides = [1, 1]} : vector<16x358xbf16> to vector<16x256xbf16>
    %c16_106 = arith.constant 16 : index
    %c0_107 = arith.constant 0 : index
    %188 = vector.load %arg17[%c16_106, %c0_107] : memref<784x256xbf16, #tpu.memory_space<vmem>>, vector<16x256xbf16>
    tpu.vector_store %arg17[%c16_106, %c0_107], %187 {strides = array<i32>} : memref<784x256xbf16, #tpu.memory_space<vmem>>, vector<16x256xbf16>,
    %189 = vector.extract_strided_slice %168 {offsets = [0, 2], sizes = [16, 256], strides = [1, 1]} : vector<16x358xbf16> to vector<16x256xbf16>
    %c32_108 = arith.constant 32 : index
    %c0_109 = arith.constant 0 : index
    %190 = vector.load %arg17[%c32_108, %c0_109] : memref<784x256xbf16, #tpu.memory_space<vmem>>, vector<16x256xbf16>
    tpu.vector_store %arg17[%c32_108, %c0_109], %189 {strides = array<i32>} : memref<784x256xbf16, #tpu.memory_space<vmem>>, vector<16x256xbf16>,
    %191 = vector.extract_strided_slice %172 {offsets = [0, 3], sizes = [16, 256], strides = [1, 1]} : vector<16x358xbf16> to vector<16x256xbf16>
    %c48_110 = arith.constant 48 : index
    %c0_111 = arith.constant 0 : index
    %192 = vector.load %arg17[%c48_110, %c0_111] : memref<784x256xbf16, #tpu.memory_space<vmem>>, vector<16x256xbf16>
    tpu.vector_store %arg17[%c48_110, %c0_111], %191 {strides = array<i32>} : memref<784x256xbf16, #tpu.memory_space<vmem>>, vector<16x256xbf16>,
    %193 = vector.extract_strided_slice %176 {offsets = [0, 4], sizes = [16, 256], strides = [1, 1]} : vector<16x358xbf16> to vector<16x256xbf16>
    %c64_112 = arith.constant 64 : index
    %c0_113 = arith.constant 0 : index
    %194 = vector.load %arg17[%c64_112, %c0_113] : memref<784x256xbf16, #tpu.memory_space<vmem>>, vector<16x256xbf16>
    tpu.vector_store %arg17[%c64_112, %c0_113], %193 {strides = array<i32>} : memref<784x256xbf16, #tpu.memory_space<vmem>>, vector<16x256xbf16>,
    %195 = vector.extract_strided_slice %180 {offsets = [0, 5], sizes = [16, 256], strides = [1, 1]} : vector<16x358xbf16> to vector<16x256xbf16>
    %c80_114 = arith.constant 80 : index
    %c0_115 = arith.constant 0 : index
    %196 = vector.load %arg17[%c80_114, %c0_115] : memref<784x256xbf16, #tpu.memory_space<vmem>>, vector<16x256xbf16>
    tpu.vector_store %arg17[%c80_114, %c0_115], %195 {strides = array<i32>} : memref<784x256xbf16, #tpu.memory_space<vmem>>, vector<16x256xbf16>,
    %197 = vector.extract_strided_slice %184 {offsets = [0, 6], sizes = [16, 256], strides = [1, 1]} : vector<16x358xbf16> to vector<16x256xbf16>
    %c96_116 = arith.constant 96 : index
    %c0_117 = arith.constant 0 : index
    %198 = vector.load %arg17[%c96_116, %c0_117] : memref<784x256xbf16, #tpu.memory_space<vmem>>, vector<16x256xbf16>
    tpu.vector_store %arg17[%c96_116, %c0_117], %197 {strides = array<i32>} : memref<784x256xbf16, #tpu.memory_space<vmem>>, vector<16x256xbf16>,
    %199 = vector.extract_strided_slice %160 {offsets = [0, 16], sizes = [16, 256], strides = [1, 1]} : vector<16x358xbf16> to vector<16x256xbf16>
    %c112_118 = arith.constant 112 : index
    %c0_119 = arith.constant 0 : index
    %200 = vector.load %arg17[%c112_118, %c0_119] : memref<784x256xbf16, #tpu.memory_space<vmem>>, vector<16x256xbf16>
    tpu.vector_store %arg17[%c112_118, %c0_119], %199 {strides = array<i32>} : memref<784x256xbf16, #tpu.memory_space<vmem>>, vector<16x256xbf16>,
    %201 = vector.extract_strided_slice %164 {offsets = [0, 17], sizes = [16, 256], strides = [1, 1]} : vector<16x358xbf16> to vector<16x256xbf16>
    %c128_120 = arith.constant 128 : index
    %c0_121 = arith.constant 0 : index
    %202 = vector.load %arg17[%c128_120, %c0_121] : memref<784x256xbf16, #tpu.memory_space<vmem>>, vector<16x256xbf16>
    tpu.vector_store %arg17[%c128_120, %c0_121], %201 {strides = array<i32>} : memref<784x256xbf16, #tpu.memory_space<vmem>>, vector<16x256xbf16>,
    %203 = vector.extract_strided_slice %168 {offsets = [0, 18], sizes = [16, 256], strides = [1, 1]} : vector<16x358xbf16> to vector<16x256xbf16>
    %c144_122 = arith.constant 144 : index
    %c0_123 = arith.constant 0 : index
    %204 = vector.load %arg17[%c144_122, %c0_123] : memref<784x256xbf16, #tpu.memory_space<vmem>>, vector<16x256xbf16>
    tpu.vector_store %arg17[%c144_122, %c0_123], %203 {strides = array<i32>} : memref<784x256xbf16, #tpu.memory_space<vmem>>, vector<16x256xbf16>,
    %205 = vector.extract_strided_slice %172 {offsets = [0, 19], sizes = [16, 256], strides = [1, 1]} : vector<16x358xbf16> to vector<16x256xbf16>
    %c160_124 = arith.constant 160 : index
    %c0_125 = arith.constant 0 : index
    %206 = vector.load %arg17[%c160_124, %c0_125] : memref<784x256xbf16, #tpu.memory_space<vmem>>, vector<16x256xbf16>
    tpu.vector_store %arg17[%c160_124, %c0_125], %205 {strides = array<i32>} : memref<784x256xbf16, #tpu.memory_space<vmem>>, vector<16x256xbf16>,
    %207 = vector.extract_strided_slice %176 {offsets = [0, 20], sizes = [16, 256], strides = [1, 1]} : vector<16x358xbf16> to vector<16x256xbf16>
    %c176_126 = arith.constant 176 : index
    %c0_127 = arith.constant 0 : index
    %208 = vector.load %arg17[%c176_126, %c0_127] : memref<784x256xbf16, #tpu.memory_space<vmem>>, vector<16x256xbf16>
    tpu.vector_store %arg17[%c176_126, %c0_127], %207 {strides = array<i32>} : memref<784x256xbf16, #tpu.memory_space<vmem>>, vector<16x256xbf16>,
    %209 = vector.extract_strided_slice %180 {offsets = [0, 21], sizes = [16, 256], strides = [1, 1]} : vector<16x358xbf16> to vector<16x256xbf16>
    %c192_128 = arith.constant 192 : index
    %c0_129 = arith.constant 0 : index
    %210 = vector.load %arg17[%c192_128, %c0_129] : memref<784x256xbf16, #tpu.memory_space<vmem>>, vector<16x256xbf16>
    tpu.vector_store %arg17[%c192_128, %c0_129], %209 {strides = array<i32>} : memref<784x256xbf16, #tpu.memory_space<vmem>>, vector<16x256xbf16>,
    %211 = vector.extract_strided_slice %184 {offsets = [0, 22], sizes = [16, 256], strides = [1, 1]} : vector<16x358xbf16> to vector<16x256xbf16>
    %c208_130 = arith.constant 208 : index
    %c0_131 = arith.constant 0 : index
    %212 = vector.load %arg17[%c208_130, %c0_131] : memref<784x256xbf16, #tpu.memory_space<vmem>>, vector<16x256xbf16>
    tpu.vector_store %arg17[%c208_130, %c0_131], %211 {strides = array<i32>} : memref<784x256xbf16, #tpu.memory_space<vmem>>, vector<16x256xbf16>,
    %213 = vector.extract_strided_slice %160 {offsets = [0, 32], sizes = [16, 256], strides = [1, 1]} : vector<16x358xbf16> to vector<16x256xbf16>
    %c224_132 = arith.constant 224 : index
    %c0_133 = arith.constant 0 : index
    %214 = vector.load %arg17[%c224_132, %c0_133] : memref<784x256xbf16, #tpu.memory_space<vmem>>, vector<16x256xbf16>
    tpu.vector_store %arg17[%c224_132, %c0_133], %213 {strides = array<i32>} : memref<784x256xbf16, #tpu.memory_space<vmem>>, vector<16x256xbf16>,
    %215 = vector.extract_strided_slice %164 {offsets = [0, 33], sizes = [16, 256], strides = [1, 1]} : vector<16x358xbf16> to vector<16x256xbf16>
    %c240_134 = arith.constant 240 : index
    %c0_135 = arith.constant 0 : index
    %216 = vector.load %arg17[%c240_134, %c0_135] : memref<784x256xbf16, #tpu.memory_space<vmem>>, vector<16x256xbf16>
    tpu.vector_store %arg17[%c240_134, %c0_135], %215 {strides = array<i32>} : memref<784x256xbf16, #tpu.memory_space<vmem>>, vector<16x256xbf16>,
    %217 = vector.extract_strided_slice %168 {offsets = [0, 34], sizes = [16, 256], strides = [1, 1]} : vector<16x358xbf16> to vector<16x256xbf16>
    %c256_136 = arith.constant 256 : index
    %c0_137 = arith.constant 0 : index
    %218 = vector.load %arg17[%c256_136, %c0_137] : memref<784x256xbf16, #tpu.memory_space<vmem>>, vector<16x256xbf16>
    tpu.vector_store %arg17[%c256_136, %c0_137], %217 {strides = array<i32>} : memref<784x256xbf16, #tpu.memory_space<vmem>>, vector<16x256xbf16>,
    %219 = vector.extract_strided_slice %172 {offsets = [0, 35], sizes = [16, 256], strides = [1, 1]} : vector<16x358xbf16> to vector<16x256xbf16>
    %c272_138 = arith.constant 272 : index
    %c0_139 = arith.constant 0 : index
    %220 = vector.load %arg17[%c272_138, %c0_139] : memref<784x256xbf16, #tpu.memory_space<vmem>>, vector<16x256xbf16>
    tpu.vector_store %arg17[%c272_138, %c0_139], %219 {strides = array<i32>} : memref<784x256xbf16, #tpu.memory_space<vmem>>, vector<16x256xbf16>,
    %221 = vector.extract_strided_slice %176 {offsets = [0, 36], sizes = [16, 256], strides = [1, 1]} : vector<16x358xbf16> to vector<16x256xbf16>
    %c288_140 = arith.constant 288 : index
    %c0_141 = arith.constant 0 : index
    %222 = vector.load %arg17[%c288_140, %c0_141] : memref<784x256xbf16, #tpu.memory_space<vmem>>, vector<16x256xbf16>
    tpu.vector_store %arg17[%c288_140, %c0_141], %221 {strides = array<i32>} : memref<784x256xbf16, #tpu.memory_space<vmem>>, vector<16x256xbf16>,
    %223 = vector.extract_strided_slice %180 {offsets = [0, 37], sizes = [16, 256], strides = [1, 1]} : vector<16x358xbf16> to vector<16x256xbf16>
    %c304_142 = arith.constant 304 : index
    %c0_143 = arith.constant 0 : index
    %224 = vector.load %arg17[%c304_142, %c0_143] : memref<784x256xbf16, #tpu.memory_space<vmem>>, vector<16x256xbf16>
    tpu.vector_store %arg17[%c304_142, %c0_143], %223 {strides = array<i32>} : memref<784x256xbf16, #tpu.memory_space<vmem>>, vector<16x256xbf16>,
    %225 = vector.extract_strided_slice %184 {offsets = [0, 38], sizes = [16, 256], strides = [1, 1]} : vector<16x358xbf16> to vector<16x256xbf16>
    %c320_144 = arith.constant 320 : index
    %c0_145 = arith.constant 0 : index
    %226 = vector.load %arg17[%c320_144, %c0_145] : memref<784x256xbf16, #tpu.memory_space<vmem>>, vector<16x256xbf16>
    tpu.vector_store %arg17[%c320_144, %c0_145], %225 {strides = array<i32>} : memref<784x256xbf16, #tpu.memory_space<vmem>>, vector<16x256xbf16>,
    %227 = vector.extract_strided_slice %160 {offsets = [0, 48], sizes = [16, 256], strides = [1, 1]} : vector<16x358xbf16> to vector<16x256xbf16>
    %c336_146 = arith.constant 336 : index
    %c0_147 = arith.constant 0 : index
    %228 = vector.load %arg17[%c336_146, %c0_147] : memref<784x256xbf16, #tpu.memory_space<vmem>>, vector<16x256xbf16>
    tpu.vector_store %arg17[%c336_146, %c0_147], %227 {strides = array<i32>} : memref<784x256xbf16, #tpu.memory_space<vmem>>, vector<16x256xbf16>,
    %229 = vector.extract_strided_slice %164 {offsets = [0, 49], sizes = [16, 256], strides = [1, 1]} : vector<16x358xbf16> to vector<16x256xbf16>
    %c352_148 = arith.constant 352 : index
    %c0_149 = arith.constant 0 : index
    %230 = vector.load %arg17[%c352_148, %c0_149] : memref<784x256xbf16, #tpu.memory_space<vmem>>, vector<16x256xbf16>
    tpu.vector_store %arg17[%c352_148, %c0_149], %229 {strides = array<i32>} : memref<784x256xbf16, #tpu.memory_space<vmem>>, vector<16x256xbf16>,
    %231 = vector.extract_strided_slice %168 {offsets = [0, 50], sizes = [16, 256], strides = [1, 1]} : vector<16x358xbf16> to vector<16x256xbf16>
    %c368_150 = arith.constant 368 : index
    %c0_151 = arith.constant 0 : index
    %232 = vector.load %arg17[%c368_150, %c0_151] : memref<784x256xbf16, #tpu.memory_space<vmem>>, vector<16x256xbf16>
    tpu.vector_store %arg17[%c368_150, %c0_151], %231 {strides = array<i32>} : memref<784x256xbf16, #tpu.memory_space<vmem>>, vector<16x256xbf16>,
    %233 = vector.extract_strided_slice %172 {offsets = [0, 51], sizes = [16, 256], strides = [1, 1]} : vector<16x358xbf16> to vector<16x256xbf16>
    %c384_152 = arith.constant 384 : index
    %c0_153 = arith.constant 0 : index
    %234 = vector.load %arg17[%c384_152, %c0_153] : memref<784x256xbf16, #tpu.memory_space<vmem>>, vector<16x256xbf16>
    tpu.vector_store %arg17[%c384_152, %c0_153], %233 {strides = array<i32>} : memref<784x256xbf16, #tpu.memory_space<vmem>>, vector<16x256xbf16>,
    %235 = vector.extract_strided_slice %176 {offsets = [0, 52], sizes = [16, 256], strides = [1, 1]} : vector<16x358xbf16> to vector<16x256xbf16>
    %c400_154 = arith.constant 400 : index
    %c0_155 = arith.constant 0 : index
    %236 = vector.load %arg17[%c400_154, %c0_155] : memref<784x256xbf16, #tpu.memory_space<vmem>>, vector<16x256xbf16>
    tpu.vector_store %arg17[%c400_154, %c0_155], %235 {strides = array<i32>} : memref<784x256xbf16, #tpu.memory_space<vmem>>, vector<16x256xbf16>,
    %237 = vector.extract_strided_slice %180 {offsets = [0, 53], sizes = [16, 256], strides = [1, 1]} : vector<16x358xbf16> to vector<16x256xbf16>
    %c416_156 = arith.constant 416 : index
    %c0_157 = arith.constant 0 : index
    %238 = vector.load %arg17[%c416_156, %c0_157] : memref<784x256xbf16, #tpu.memory_space<vmem>>, vector<16x256xbf16>
    tpu.vector_store %arg17[%c416_156, %c0_157], %237 {strides = array<i32>} : memref<784x256xbf16, #tpu.memory_space<vmem>>, vector<16x256xbf16>,
    %239 = vector.extract_strided_slice %184 {offsets = [0, 54], sizes = [16, 256], strides = [1, 1]} : vector<16x358xbf16> to vector<16x256xbf16>
    %c432_158 = arith.constant 432 : index
    %c0_159 = arith.constant 0 : index
    %240 = vector.load %arg17[%c432_158, %c0_159] : memref<784x256xbf16, #tpu.memory_space<vmem>>, vector<16x256xbf16>
    tpu.vector_store %arg17[%c432_158, %c0_159], %239 {strides = array<i32>} : memref<784x256xbf16, #tpu.memory_space<vmem>>, vector<16x256xbf16>,
    %241 = vector.extract_strided_slice %160 {offsets = [0, 64], sizes = [16, 256], strides = [1, 1]} : vector<16x358xbf16> to vector<16x256xbf16>
    %c448_160 = arith.constant 448 : index
    %c0_161 = arith.constant 0 : index
    %242 = vector.load %arg17[%c448_160, %c0_161] : memref<784x256xbf16, #tpu.memory_space<vmem>>, vector<16x256xbf16>
    tpu.vector_store %arg17[%c448_160, %c0_161], %241 {strides = array<i32>} : memref<784x256xbf16, #tpu.memory_space<vmem>>, vector<16x256xbf16>,
    %243 = vector.extract_strided_slice %164 {offsets = [0, 65], sizes = [16, 256], strides = [1, 1]} : vector<16x358xbf16> to vector<16x256xbf16>
    %c464_162 = arith.constant 464 : index
    %c0_163 = arith.constant 0 : index
    %244 = vector.load %arg17[%c464_162, %c0_163] : memref<784x256xbf16, #tpu.memory_space<vmem>>, vector<16x256xbf16>
    tpu.vector_store %arg17[%c464_162, %c0_163], %243 {strides = array<i32>} : memref<784x256xbf16, #tpu.memory_space<vmem>>, vector<16x256xbf16>,
    %245 = vector.extract_strided_slice %168 {offsets = [0, 66], sizes = [16, 256], strides = [1, 1]} : vector<16x358xbf16> to vector<16x256xbf16>
    %c480_164 = arith.constant 480 : index
    %c0_165 = arith.constant 0 : index
    %246 = vector.load %arg17[%c480_164, %c0_165] : memref<784x256xbf16, #tpu.memory_space<vmem>>, vector<16x256xbf16>
    tpu.vector_store %arg17[%c480_164, %c0_165], %245 {strides = array<i32>} : memref<784x256xbf16, #tpu.memory_space<vmem>>, vector<16x256xbf16>,
    %247 = vector.extract_strided_slice %172 {offsets = [0, 67], sizes = [16, 256], strides = [1, 1]} : vector<16x358xbf16> to vector<16x256xbf16>
    %c496_166 = arith.constant 496 : index
    %c0_167 = arith.constant 0 : index
    %248 = vector.load %arg17[%c496_166, %c0_167] : memref<784x256xbf16, #tpu.memory_space<vmem>>, vector<16x256xbf16>
    tpu.vector_store %arg17[%c496_166, %c0_167], %247 {strides = array<i32>} : memref<784x256xbf16, #tpu.memory_space<vmem>>, vector<16x256xbf16>,
    %249 = vector.extract_strided_slice %176 {offsets = [0, 68], sizes = [16, 256], strides = [1, 1]} : vector<16x358xbf16> to vector<16x256xbf16>
    %c512_168 = arith.constant 512 : index
    %c0_169 = arith.constant 0 : index
    %250 = vector.load %arg17[%c512_168, %c0_169] : memref<784x256xbf16, #tpu.memory_space<vmem>>, vector<16x256xbf16>
    tpu.vector_store %arg17[%c512_168, %c0_169], %249 {strides = array<i32>} : memref<784x256xbf16, #tpu.memory_space<vmem>>, vector<16x256xbf16>,
    %251 = vector.extract_strided_slice %180 {offsets = [0, 69], sizes = [16, 256], strides = [1, 1]} : vector<16x358xbf16> to vector<16x256xbf16>
    %c528_170 = arith.constant 528 : index
    %c0_171 = arith.constant 0 : index
    %252 = vector.load %arg17[%c528_170, %c0_171] : memref<784x256xbf16, #tpu.memory_space<vmem>>, vector<16x256xbf16>
    tpu.vector_store %arg17[%c528_170, %c0_171], %251 {strides = array<i32>} : memref<784x256xbf16, #tpu.memory_space<vmem>>, vector<16x256xbf16>,
    %253 = vector.extract_strided_slice %184 {offsets = [0, 70], sizes = [16, 256], strides = [1, 1]} : vector<16x358xbf16> to vector<16x256xbf16>
    %c544_172 = arith.constant 544 : index
    %c0_173 = arith.constant 0 : index
    %254 = vector.load %arg17[%c544_172, %c0_173] : memref<784x256xbf16, #tpu.memory_space<vmem>>, vector<16x256xbf16>
    tpu.vector_store %arg17[%c544_172, %c0_173], %253 {strides = array<i32>} : memref<784x256xbf16, #tpu.memory_space<vmem>>, vector<16x256xbf16>,
    %255 = vector.extract_strided_slice %160 {offsets = [0, 80], sizes = [16, 256], strides = [1, 1]} : vector<16x358xbf16> to vector<16x256xbf16>
    %c560_174 = arith.constant 560 : index
    %c0_175 = arith.constant 0 : index
    %256 = vector.load %arg17[%c560_174, %c0_175] : memref<784x256xbf16, #tpu.memory_space<vmem>>, vector<16x256xbf16>
    tpu.vector_store %arg17[%c560_174, %c0_175], %255 {strides = array<i32>} : memref<784x256xbf16, #tpu.memory_space<vmem>>, vector<16x256xbf16>,
    %257 = vector.extract_strided_slice %164 {offsets = [0, 81], sizes = [16, 256], strides = [1, 1]} : vector<16x358xbf16> to vector<16x256xbf16>
    %c576_176 = arith.constant 576 : index
    %c0_177 = arith.constant 0 : index
    %258 = vector.load %arg17[%c576_176, %c0_177] : memref<784x256xbf16, #tpu.memory_space<vmem>>, vector<16x256xbf16>
    tpu.vector_store %arg17[%c576_176, %c0_177], %257 {strides = array<i32>} : memref<784x256xbf16, #tpu.memory_space<vmem>>, vector<16x256xbf16>,
    %259 = vector.extract_strided_slice %168 {offsets = [0, 82], sizes = [16, 256], strides = [1, 1]} : vector<16x358xbf16> to vector<16x256xbf16>
    %c592_178 = arith.constant 592 : index
    %c0_179 = arith.constant 0 : index
    %260 = vector.load %arg17[%c592_178, %c0_179] : memref<784x256xbf16, #tpu.memory_space<vmem>>, vector<16x256xbf16>
    tpu.vector_store %arg17[%c592_178, %c0_179], %259 {strides = array<i32>} : memref<784x256xbf16, #tpu.memory_space<vmem>>, vector<16x256xbf16>,
    %261 = vector.extract_strided_slice %172 {offsets = [0, 83], sizes = [16, 256], strides = [1, 1]} : vector<16x358xbf16> to vector<16x256xbf16>
    %c608_180 = arith.constant 608 : index
    %c0_181 = arith.constant 0 : index
    %262 = vector.load %arg17[%c608_180, %c0_181] : memref<784x256xbf16, #tpu.memory_space<vmem>>, vector<16x256xbf16>
    tpu.vector_store %arg17[%c608_180, %c0_181], %261 {strides = array<i32>} : memref<784x256xbf16, #tpu.memory_space<vmem>>, vector<16x256xbf16>,
    %263 = vector.extract_strided_slice %176 {offsets = [0, 84], sizes = [16, 256], strides = [1, 1]} : vector<16x358xbf16> to vector<16x256xbf16>
    %c624_182 = arith.constant 624 : index
    %c0_183 = arith.constant 0 : index
    %264 = vector.load %arg17[%c624_182, %c0_183] : memref<784x256xbf16, #tpu.memory_space<vmem>>, vector<16x256xbf16>
    tpu.vector_store %arg17[%c624_182, %c0_183], %263 {strides = array<i32>} : memref<784x256xbf16, #tpu.memory_space<vmem>>, vector<16x256xbf16>,
    %265 = vector.extract_strided_slice %180 {offsets = [0, 85], sizes = [16, 256], strides = [1, 1]} : vector<16x358xbf16> to vector<16x256xbf16>
    %c640_184 = arith.constant 640 : index
    %c0_185 = arith.constant 0 : index
    %266 = vector.load %arg17[%c640_184, %c0_185] : memref<784x256xbf16, #tpu.memory_space<vmem>>, vector<16x256xbf16>
    tpu.vector_store %arg17[%c640_184, %c0_185], %265 {strides = array<i32>} : memref<784x256xbf16, #tpu.memory_space<vmem>>, vector<16x256xbf16>,
    %267 = vector.extract_strided_slice %184 {offsets = [0, 86], sizes = [16, 256], strides = [1, 1]} : vector<16x358xbf16> to vector<16x256xbf16>
    %c656_186 = arith.constant 656 : index
    %c0_187 = arith.constant 0 : index
    %268 = vector.load %arg17[%c656_186, %c0_187] : memref<784x256xbf16, #tpu.memory_space<vmem>>, vector<16x256xbf16>
    tpu.vector_store %arg17[%c656_186, %c0_187], %267 {strides = array<i32>} : memref<784x256xbf16, #tpu.memory_space<vmem>>, vector<16x256xbf16>,
    %269 = vector.extract_strided_slice %160 {offsets = [0, 96], sizes = [16, 256], strides = [1, 1]} : vector<16x358xbf16> to vector<16x256xbf16>
    %c672_188 = arith.constant 672 : index
    %c0_189 = arith.constant 0 : index
    %270 = vector.load %arg17[%c672_188, %c0_189] : memref<784x256xbf16, #tpu.memory_space<vmem>>, vector<16x256xbf16>
    tpu.vector_store %arg17[%c672_188, %c0_189], %269 {strides = array<i32>} : memref<784x256xbf16, #tpu.memory_space<vmem>>, vector<16x256xbf16>,
    %271 = vector.extract_strided_slice %164 {offsets = [0, 97], sizes = [16, 256], strides = [1, 1]} : vector<16x358xbf16> to vector<16x256xbf16>
    %c688_190 = arith.constant 688 : index
    %c0_191 = arith.constant 0 : index
    %272 = vector.load %arg17[%c688_190, %c0_191] : memref<784x256xbf16, #tpu.memory_space<vmem>>, vector<16x256xbf16>
    tpu.vector_store %arg17[%c688_190, %c0_191], %271 {strides = array<i32>} : memref<784x256xbf16, #tpu.memory_space<vmem>>, vector<16x256xbf16>,
    %273 = vector.extract_strided_slice %168 {offsets = [0, 98], sizes = [16, 256], strides = [1, 1]} : vector<16x358xbf16> to vector<16x256xbf16>
    %c704_192 = arith.constant 704 : index
    %c0_193 = arith.constant 0 : index
    %274 = vector.load %arg17[%c704_192, %c0_193] : memref<784x256xbf16, #tpu.memory_space<vmem>>, vector<16x256xbf16>
    tpu.vector_store %arg17[%c704_192, %c0_193], %273 {strides = array<i32>} : memref<784x256xbf16, #tpu.memory_space<vmem>>, vector<16x256xbf16>,
    %275 = vector.extract_strided_slice %172 {offsets = [0, 99], sizes = [16, 256], strides = [1, 1]} : vector<16x358xbf16> to vector<16x256xbf16>
    %c720_194 = arith.constant 720 : index
    %c0_195 = arith.constant 0 : index
    %276 = vector.load %arg17[%c720_194, %c0_195] : memref<784x256xbf16, #tpu.memory_space<vmem>>, vector<16x256xbf16>
    tpu.vector_store %arg17[%c720_194, %c0_195], %275 {strides = array<i32>} : memref<784x256xbf16, #tpu.memory_space<vmem>>, vector<16x256xbf16>,
    %277 = vector.extract_strided_slice %176 {offsets = [0, 100], sizes = [16, 256], strides = [1, 1]} : vector<16x358xbf16> to vector<16x256xbf16>
    %c736_196 = arith.constant 736 : index
    %c0_197 = arith.constant 0 : index
    %278 = vector.load %arg17[%c736_196, %c0_197] : memref<784x256xbf16, #tpu.memory_space<vmem>>, vector<16x256xbf16>
    tpu.vector_store %arg17[%c736_196, %c0_197], %277 {strides = array<i32>} : memref<784x256xbf16, #tpu.memory_space<vmem>>, vector<16x256xbf16>,
    %279 = vector.extract_strided_slice %180 {offsets = [0, 101], sizes = [16, 256], strides = [1, 1]} : vector<16x358xbf16> to vector<16x256xbf16>
    %c752_198 = arith.constant 752 : index
    %c0_199 = arith.constant 0 : index
    %280 = vector.load %arg17[%c752_198, %c0_199] : memref<784x256xbf16, #tpu.memory_space<vmem>>, vector<16x256xbf16>
    tpu.vector_store %arg17[%c752_198, %c0_199], %279 {strides = array<i32>} : memref<784x256xbf16, #tpu.memory_space<vmem>>, vector<16x256xbf16>,
    %281 = vector.extract_strided_slice %184 {offsets = [0, 102], sizes = [16, 256], strides = [1, 1]} : vector<16x358xbf16> to vector<16x256xbf16>
    %c768_200 = arith.constant 768 : index
    %c0_201 = arith.constant 0 : index
    %282 = vector.load %arg17[%c768_200, %c0_201] : memref<784x256xbf16, #tpu.memory_space<vmem>>, vector<16x256xbf16>
    tpu.vector_store %arg17[%c768_200, %c0_201], %281 {strides = array<i32>} : memref<784x256xbf16, #tpu.memory_space<vmem>>, vector<16x256xbf16>,
    %c0_202 = arith.constant 0 : index
    %c0_203 = arith.constant 0 : index
    %283 = vector.load %arg9[%c0_202, %c0_203] : memref<64x784xbf16, #tpu.memory_space<vmem>>, vector<64x784xbf16>
    %c0_204 = arith.constant 0 : index
    %c0_205 = arith.constant 0 : index
    %284 = vector.load %arg17[%c0_204, %c0_205] : memref<784x256xbf16, #tpu.memory_space<vmem>>, vector<784x256xbf16>
    %cst_206 = arith.constant dense<0.000000e+00> : vector<64x256xf32>
    %285 = tpu.matmul %283, %284, %cst_206 {dimension_numbers = #tpu.dot_dimension_numbers<[1], [0], [0], [1], [0, 0, 1, 1], [], []>} : vector<64x784xbf16>, vector<784x256xbf16>, vector<64x256xf32> -> vector<64x256xf32>
    %c0_207 = arith.constant 0 : index
    %c0_208 = arith.constant 0 : index
    %286 = vector.load %arg10[%c0_207, %c0_208] : memref<64x1xf32, #tpu.memory_space<vmem>>, vector<64x1xf32>
    %287 = vector.broadcast %286 : vector<64x1xf32> to vector<64x256xf32>
    %288 = arith.addf %285, %287 : vector<64x256xf32>
    %cst_209 = arith.constant 0.000000e+00 : f32
    %289 = vector.broadcast %cst_209 : f32 to vector<64x256xf32>
    %290 = arith.maximumf %288, %289 : vector<64x256xf32>
    %c0_210 = arith.constant 0 : index
    %c0_211 = arith.constant 0 : index
    %291 = vector.load %arg11[%c0_210, %c0_211] : memref<16x64xbf16, #tpu.memory_space<vmem>>, vector<16x64xbf16>
    %292 = arith.truncf %290 : vector<64x256xf32> to vector<64x256xbf16>
    %cst_212 = arith.constant dense<0.000000e+00> : vector<16x256xf32>
    %293 = tpu.matmul %291, %292, %cst_212 {dimension_numbers = #tpu.dot_dimension_numbers<[1], [0], [0], [1], [0, 0, 1, 1], [], []>} : vector<16x64xbf16>, vector<64x256xbf16>, vector<16x256xf32> -> vector<16x256xf32>
    %294 = arith.addf %149, %293 : vector<16x256xf32>
    %c0_213 = arith.constant 0 : index
    %c0_214 = arith.constant 0 : index
    %295 = vector.load %arg12[%c0_213, %c0_214] : memref<16x1xf32, #tpu.memory_space<vmem>>, vector<16x1xf32>
    %296 = vector.broadcast %295 : vector<16x1xf32> to vector<16x256xf32>
    %297 = arith.addf %294, %296 : vector<16x256xf32>
    %cst_215 = arith.constant 0.000000e+00 : bf16
    %298 = vector.broadcast %cst_215 : bf16 to vector<16x17xbf16>
    %c0_216 = arith.constant 0 : index
    %c0_217 = arith.constant 0 : index
    %299 = vector.load %arg19[%c0_216, %c0_217] : memref<16x290xbf16, #tpu.memory_space<vmem>>, vector<16x17xbf16>
    tpu.vector_store %arg19[%c0_216, %c0_217], %298 {strides = array<i32>} : memref<16x290xbf16, #tpu.memory_space<vmem>>, vector<16x17xbf16>,
    %cst_218 = arith.constant 0.000000e+00 : bf16
    %300 = vector.broadcast %cst_218 : bf16 to vector<16x17xbf16>
    %c0_219 = arith.constant 0 : index
    %c273 = arith.constant 273 : index
    %301 = vector.load %arg19[%c0_219, %c273] : memref<16x290xbf16, #tpu.memory_space<vmem>>, vector<16x17xbf16>
    tpu.vector_store %arg19[%c0_219, %c273], %300 {strides = array<i32>} : memref<16x290xbf16, #tpu.memory_space<vmem>>, vector<16x17xbf16>,
    %302 = arith.truncf %297 : vector<16x256xf32> to vector<16x256xbf16>
    %c0_220 = arith.constant 0 : index
    %c17 = arith.constant 17 : index
    %303 = vector.load %arg19[%c0_220, %c17] : memref<16x290xbf16, #tpu.memory_space<vmem>>, vector<16x256xbf16>
    tpu.vector_store %arg19[%c0_220, %c17], %302 {strides = array<i32>} : memref<16x290xbf16, #tpu.memory_space<vmem>>, vector<16x256xbf16>,
    %c0_221 = arith.constant 0 : index
    %c0_222 = arith.constant 0 : index
    %304 = vector.load %arg19[%c0_221, %c0_222] : memref<16x290xbf16, #tpu.memory_space<vmem>>, vector<16x290xbf16>
    %c0_223 = arith.constant 0 : index
    %c0_224 = arith.constant 0 : index
    %305 = vector.load %arg4[%c0_223, %c0_224] : memref<3x290xf32, #tpu.memory_space<vmem>>, vector<1x290xf32>
    %306 = arith.truncf %305 : vector<1x290xf32> to vector<1x290xbf16>
    %307 = vector.broadcast %306 : vector<1x290xbf16> to vector<16x290xbf16>
    %308 = arith.mulf %304, %307 : vector<16x290xbf16>
    %c1_225 = arith.constant 1 : index
    %c0_226 = arith.constant 0 : index
    %309 = vector.load %arg4[%c1_225, %c0_226] : memref<3x290xf32, #tpu.memory_space<vmem>>, vector<1x290xf32>
    %310 = arith.truncf %309 : vector<1x290xf32> to vector<1x290xbf16>
    %311 = vector.broadcast %310 : vector<1x290xbf16> to vector<16x290xbf16>
    %312 = arith.mulf %304, %311 : vector<16x290xbf16>
    %c2_227 = arith.constant 2 : index
    %c0_228 = arith.constant 0 : index
    %313 = vector.load %arg4[%c2_227, %c0_228] : memref<3x290xf32, #tpu.memory_space<vmem>>, vector<1x290xf32>
    %314 = arith.truncf %313 : vector<1x290xf32> to vector<1x290xbf16>
    %315 = vector.broadcast %314 : vector<1x290xbf16> to vector<16x290xbf16>
    %316 = arith.mulf %304, %315 : vector<16x290xbf16>
    %317 = vector.extract_strided_slice %308 {offsets = [0, 0], sizes = [16, 256], strides = [1, 1]} : vector<16x290xbf16> to vector<16x256xbf16>
    %c0_229 = arith.constant 0 : index
    %c0_230 = arith.constant 0 : index
    %318 = vector.load %arg17[%c0_229, %c0_230] : memref<784x256xbf16, #tpu.memory_space<vmem>>, vector<16x256xbf16>
    tpu.vector_store %arg17[%c0_229, %c0_230], %317 {strides = array<i32>} : memref<784x256xbf16, #tpu.memory_space<vmem>>, vector<16x256xbf16>,
    %319 = vector.extract_strided_slice %312 {offsets = [0, 1], sizes = [16, 256], strides = [1, 1]} : vector<16x290xbf16> to vector<16x256xbf16>
    %c16_231 = arith.constant 16 : index
    %c0_232 = arith.constant 0 : index
    %320 = vector.load %arg17[%c16_231, %c0_232] : memref<784x256xbf16, #tpu.memory_space<vmem>>, vector<16x256xbf16>
    tpu.vector_store %arg17[%c16_231, %c0_232], %319 {strides = array<i32>} : memref<784x256xbf16, #tpu.memory_space<vmem>>, vector<16x256xbf16>,
    %321 = vector.extract_strided_slice %316 {offsets = [0, 2], sizes = [16, 256], strides = [1, 1]} : vector<16x290xbf16> to vector<16x256xbf16>
    %c32_233 = arith.constant 32 : index
    %c0_234 = arith.constant 0 : index
    %322 = vector.load %arg17[%c32_233, %c0_234] : memref<784x256xbf16, #tpu.memory_space<vmem>>, vector<16x256xbf16>
    tpu.vector_store %arg17[%c32_233, %c0_234], %321 {strides = array<i32>} : memref<784x256xbf16, #tpu.memory_space<vmem>>, vector<16x256xbf16>,
    %323 = vector.extract_strided_slice %308 {offsets = [0, 16], sizes = [16, 256], strides = [1, 1]} : vector<16x290xbf16> to vector<16x256xbf16>
    %c48_235 = arith.constant 48 : index
    %c0_236 = arith.constant 0 : index
    %324 = vector.load %arg17[%c48_235, %c0_236] : memref<784x256xbf16, #tpu.memory_space<vmem>>, vector<16x256xbf16>
    tpu.vector_store %arg17[%c48_235, %c0_236], %323 {strides = array<i32>} : memref<784x256xbf16, #tpu.memory_space<vmem>>, vector<16x256xbf16>,
    %325 = vector.extract_strided_slice %312 {offsets = [0, 17], sizes = [16, 256], strides = [1, 1]} : vector<16x290xbf16> to vector<16x256xbf16>
    %c64_237 = arith.constant 64 : index
    %c0_238 = arith.constant 0 : index
    %326 = vector.load %arg17[%c64_237, %c0_238] : memref<784x256xbf16, #tpu.memory_space<vmem>>, vector<16x256xbf16>
    tpu.vector_store %arg17[%c64_237, %c0_238], %325 {strides = array<i32>} : memref<784x256xbf16, #tpu.memory_space<vmem>>, vector<16x256xbf16>,
    %327 = vector.extract_strided_slice %316 {offsets = [0, 18], sizes = [16, 256], strides = [1, 1]} : vector<16x290xbf16> to vector<16x256xbf16>
    %c80_239 = arith.constant 80 : index
    %c0_240 = arith.constant 0 : index
    %328 = vector.load %arg17[%c80_239, %c0_240] : memref<784x256xbf16, #tpu.memory_space<vmem>>, vector<16x256xbf16>
    tpu.vector_store %arg17[%c80_239, %c0_240], %327 {strides = array<i32>} : memref<784x256xbf16, #tpu.memory_space<vmem>>, vector<16x256xbf16>,
    %329 = vector.extract_strided_slice %308 {offsets = [0, 32], sizes = [16, 256], strides = [1, 1]} : vector<16x290xbf16> to vector<16x256xbf16>
    %c96_241 = arith.constant 96 : index
    %c0_242 = arith.constant 0 : index
    %330 = vector.load %arg17[%c96_241, %c0_242] : memref<784x256xbf16, #tpu.memory_space<vmem>>, vector<16x256xbf16>
    tpu.vector_store %arg17[%c96_241, %c0_242], %329 {strides = array<i32>} : memref<784x256xbf16, #tpu.memory_space<vmem>>, vector<16x256xbf16>,
    %331 = vector.extract_strided_slice %312 {offsets = [0, 33], sizes = [16, 256], strides = [1, 1]} : vector<16x290xbf16> to vector<16x256xbf16>
    %c112_243 = arith.constant 112 : index
    %c0_244 = arith.constant 0 : index
    %332 = vector.load %arg17[%c112_243, %c0_244] : memref<784x256xbf16, #tpu.memory_space<vmem>>, vector<16x256xbf16>
    tpu.vector_store %arg17[%c112_243, %c0_244], %331 {strides = array<i32>} : memref<784x256xbf16, #tpu.memory_space<vmem>>, vector<16x256xbf16>,
    %333 = vector.extract_strided_slice %316 {offsets = [0, 34], sizes = [16, 256], strides = [1, 1]} : vector<16x290xbf16> to vector<16x256xbf16>
    %c128_245 = arith.constant 128 : index
    %c0_246 = arith.constant 0 : index
    %334 = vector.load %arg17[%c128_245, %c0_246] : memref<784x256xbf16, #tpu.memory_space<vmem>>, vector<16x256xbf16>
    tpu.vector_store %arg17[%c128_245, %c0_246], %333 {strides = array<i32>} : memref<784x256xbf16, #tpu.memory_space<vmem>>, vector<16x256xbf16>,
    %c0_247 = arith.constant 0 : index
    %c0_248 = arith.constant 0 : index
    %335 = vector.load %arg13[%c0_247, %c0_248] : memref<16x144xbf16, #tpu.memory_space<vmem>>, vector<16x144xbf16>
    %c0_249 = arith.constant 0 : index
    %c0_250 = arith.constant 0 : index
    %336 = vector.load %arg17[%c0_249, %c0_250] : memref<784x256xbf16, #tpu.memory_space<vmem>>, vector<144x256xbf16>
    %cst_251 = arith.constant dense<0.000000e+00> : vector<16x256xf32>
    %337 = tpu.matmul %335, %336, %cst_251 {dimension_numbers = #tpu.dot_dimension_numbers<[1], [0], [0], [1], [0, 0, 1, 1], [], []>} : vector<16x144xbf16>, vector<144x256xbf16>, vector<16x256xf32> -> vector<16x256xf32>
    %c0_252 = arith.constant 0 : index
    %c0_253 = arith.constant 0 : index
    %338 = vector.load %arg14[%c0_252, %c0_253] : memref<16x1xf32, #tpu.memory_space<vmem>>, vector<16x1xf32>
    %339 = vector.broadcast %338 : vector<16x1xf32> to vector<16x256xf32>
    %340 = arith.addf %337, %339 : vector<16x256xf32>
    %341 = vector.extract_strided_slice %340 {offsets = [0, 0], sizes = [3, 256], strides = [1, 1]} : vector<16x256xf32> to vector<3x256xf32>
    %c0_254 = arith.constant 0 : index
    %c0_255 = arith.constant 0 : index
    %c0_256 = arith.constant 0 : index
    %342 = vector.load %arg15[%c0_254, %c0_255, %c0_256] : memref<1x3x256xf32, #tpu.memory_space<vmem>>, vector<1x3x256xf32>
    %343 = vector.shape_cast %342 : vector<1x3x256xf32> to vector<3x256xf32>
    %344 = vector.shape_cast %341 : vector<3x256xf32> to vector<1x3x256xf32>
    tpu.vector_store %arg15[%c0_254, %c0_255, %c0_256], %344 {strides = array<i32>} : memref<1x3x256xf32, #tpu.memory_space<vmem>>, vector<1x3x256xf32>,
    %c0_257 = arith.constant 0 : index
    %c0_258 = arith.constant 0 : index
    %c0_259 = arith.constant 0 : index
    %345 = vector.load %arg2[%c0_257, %c0_258, %c0_259] : memref<1x3x290xf32, #tpu.memory_space<vmem>>, vector<1x3x290xf32>
    %346 = vector.shape_cast %345 : vector<1x3x290xf32> to vector<3x290xf32>
    %c0_260 = arith.constant 0 : index
    %c0_261 = arith.constant 0 : index
    %347 = vector.load %arg4[%c0_260, %c0_261] : memref<3x290xf32, #tpu.memory_space<vmem>>, vector<1x290xf32>
    %348 = vector.broadcast %347 : vector<1x290xf32> to vector<3x290xf32>
    %349 = arith.mulf %346, %348 : vector<3x290xf32>
    %c1_262 = arith.constant 1 : index
    %c0_263 = arith.constant 0 : index
    %350 = vector.load %arg4[%c1_262, %c0_263] : memref<3x290xf32, #tpu.memory_space<vmem>>, vector<1x290xf32>
    %351 = vector.broadcast %350 : vector<1x290xf32> to vector<3x290xf32>
    %352 = arith.mulf %346, %351 : vector<3x290xf32>
    %c2_264 = arith.constant 2 : index
    %c0_265 = arith.constant 0 : index
    %353 = vector.load %arg4[%c2_264, %c0_265] : memref<3x290xf32, #tpu.memory_space<vmem>>, vector<1x290xf32>
    %354 = vector.broadcast %353 : vector<1x290xf32> to vector<3x290xf32>
    %355 = arith.mulf %346, %354 : vector<3x290xf32>
    %cst_266 = arith.constant 0.000000e+00 : f32
    %356 = vector.broadcast %cst_266 : f32 to vector<3x256xf32>
    %357 = vector.extract_strided_slice %340 {offsets = [3, 0], sizes = [1, 256], strides = [1, 1]} : vector<16x256xf32> to vector<1x256xf32>
    %358 = vector.extract_strided_slice %349 {offsets = [0, 0], sizes = [3, 256], strides = [1, 1]} : vector<3x290xf32> to vector<3x256xf32>
    %359 = vector.broadcast %357 : vector<1x256xf32> to vector<3x256xf32>
    %360 = arith.mulf %359, %358 : vector<3x256xf32>
    %361 = arith.addf %356, %360 : vector<3x256xf32>
    %362 = vector.extract_strided_slice %340 {offsets = [4, 0], sizes = [1, 256], strides = [1, 1]} : vector<16x256xf32> to vector<1x256xf32>
    %363 = vector.extract_strided_slice %352 {offsets = [0, 1], sizes = [3, 256], strides = [1, 1]} : vector<3x290xf32> to vector<3x256xf32>
    %364 = vector.broadcast %362 : vector<1x256xf32> to vector<3x256xf32>
    %365 = arith.mulf %364, %363 : vector<3x256xf32>
    %366 = arith.addf %361, %365 : vector<3x256xf32>
    %367 = vector.extract_strided_slice %340 {offsets = [5, 0], sizes = [1, 256], strides = [1, 1]} : vector<16x256xf32> to vector<1x256xf32>
    %368 = vector.extract_strided_slice %355 {offsets = [0, 2], sizes = [3, 256], strides = [1, 1]} : vector<3x290xf32> to vector<3x256xf32>
    %369 = vector.broadcast %367 : vector<1x256xf32> to vector<3x256xf32>
    %370 = arith.mulf %369, %368 : vector<3x256xf32>
    %371 = arith.addf %366, %370 : vector<3x256xf32>
    %372 = vector.extract_strided_slice %340 {offsets = [6, 0], sizes = [1, 256], strides = [1, 1]} : vector<16x256xf32> to vector<1x256xf32>
    %373 = vector.extract_strided_slice %349 {offsets = [0, 16], sizes = [3, 256], strides = [1, 1]} : vector<3x290xf32> to vector<3x256xf32>
    %374 = vector.broadcast %372 : vector<1x256xf32> to vector<3x256xf32>
    %375 = arith.mulf %374, %373 : vector<3x256xf32>
    %376 = arith.addf %371, %375 : vector<3x256xf32>
    %377 = vector.extract_strided_slice %340 {offsets = [7, 0], sizes = [1, 256], strides = [1, 1]} : vector<16x256xf32> to vector<1x256xf32>
    %378 = vector.extract_strided_slice %352 {offsets = [0, 17], sizes = [3, 256], strides = [1, 1]} : vector<3x290xf32> to vector<3x256xf32>
    %379 = vector.broadcast %377 : vector<1x256xf32> to vector<3x256xf32>
    %380 = arith.mulf %379, %378 : vector<3x256xf32>
    %381 = arith.addf %376, %380 : vector<3x256xf32>
    %382 = vector.extract_strided_slice %340 {offsets = [8, 0], sizes = [1, 256], strides = [1, 1]} : vector<16x256xf32> to vector<1x256xf32>
    %383 = vector.extract_strided_slice %355 {offsets = [0, 18], sizes = [3, 256], strides = [1, 1]} : vector<3x290xf32> to vector<3x256xf32>
    %384 = vector.broadcast %382 : vector<1x256xf32> to vector<3x256xf32>
    %385 = arith.mulf %384, %383 : vector<3x256xf32>
    %386 = arith.addf %381, %385 : vector<3x256xf32>
    %387 = vector.extract_strided_slice %340 {offsets = [9, 0], sizes = [1, 256], strides = [1, 1]} : vector<16x256xf32> to vector<1x256xf32>
    %388 = vector.extract_strided_slice %349 {offsets = [0, 32], sizes = [3, 256], strides = [1, 1]} : vector<3x290xf32> to vector<3x256xf32>
    %389 = vector.broadcast %387 : vector<1x256xf32> to vector<3x256xf32>
    %390 = arith.mulf %389, %388 : vector<3x256xf32>
    %391 = arith.addf %386, %390 : vector<3x256xf32>
    %392 = vector.extract_strided_slice %340 {offsets = [10, 0], sizes = [1, 256], strides = [1, 1]} : vector<16x256xf32> to vector<1x256xf32>
    %393 = vector.extract_strided_slice %352 {offsets = [0, 33], sizes = [3, 256], strides = [1, 1]} : vector<3x290xf32> to vector<3x256xf32>
    %394 = vector.broadcast %392 : vector<1x256xf32> to vector<3x256xf32>
    %395 = arith.mulf %394, %393 : vector<3x256xf32>
    %396 = arith.addf %391, %395 : vector<3x256xf32>
    %397 = vector.extract_strided_slice %340 {offsets = [11, 0], sizes = [1, 256], strides = [1, 1]} : vector<16x256xf32> to vector<1x256xf32>
    %398 = vector.extract_strided_slice %355 {offsets = [0, 34], sizes = [3, 256], strides = [1, 1]} : vector<3x290xf32> to vector<3x256xf32>
    %399 = vector.broadcast %397 : vector<1x256xf32> to vector<3x256xf32>
    %400 = arith.mulf %399, %398 : vector<3x256xf32>
    %401 = arith.addf %396, %400 : vector<3x256xf32>
    %c0_267 = arith.constant 0 : index
    %c0_268 = arith.constant 0 : index
    %c0_269 = arith.constant 0 : index
    %402 = vector.load %arg16[%c0_267, %c0_268, %c0_269] : memref<1x3x256xf32, #tpu.memory_space<vmem>>, vector<1x3x256xf32>
    %403 = vector.shape_cast %402 : vector<1x3x256xf32> to vector<3x256xf32>
    %404 = vector.shape_cast %401 : vector<3x256xf32> to vector<1x3x256xf32>
    tpu.vector_store %arg16[%c0_267, %c0_268, %c0_269], %404 {strides = array<i32>} : memref<1x3x256xf32, #tpu.memory_space<vmem>>, vector<1x3x256xf32>,
    return
  }
  func.func @transform_0(%arg0: i32) -> (i32, i32, i32) {
    %c0_i32 = arith.constant 0 : i32
    %c0_i32_0 = arith.constant 0 : i32
    %c0_i32_1 = arith.constant 0 : i32
    return %arg0, %c0_i32, %c0_i32_0 : i32, i32, i32
  }
  func.func @transform_1(%arg0: i32) -> (i32, i32, i32) {
    %c0_i32 = arith.constant 0 : i32
    %c0_i32_0 = arith.constant 0 : i32
    %c0_i32_1 = arith.constant 0 : i32
    return %arg0, %c0_i32, %c0_i32_0 : i32, i32, i32
  }
  func.func @transform_2(%arg0: i32) -> (i32, i32) {
    %c0_i32 = arith.constant 0 : i32
    %c0_i32_0 = arith.constant 0 : i32
    %c0_i32_1 = arith.constant 0 : i32
    return %c0_i32, %c0_i32_0 : i32, i32
  }
  func.func @transform_3(%arg0: i32) -> (i32, i32) {
    %c0_i32 = arith.constant 0 : i32
    %c0_i32_0 = arith.constant 0 : i32
    %c0_i32_1 = arith.constant 0 : i32
    return %c0_i32, %c0_i32_0 : i32, i32
  }
  func.func @transform_4(%arg0: i32) -> (i32, i32) {
    %c0_i32 = arith.constant 0 : i32
    %c0_i32_0 = arith.constant 0 : i32
    %c0_i32_1 = arith.constant 0 : i32
    return %c0_i32, %c0_i32_0 : i32, i32
  }
  func.func @transform_5(%arg0: i32) -> (i32, i32) {
    %c0_i32 = arith.constant 0 : i32
    %c0_i32_0 = arith.constant 0 : i32
    %c0_i32_1 = arith.constant 0 : i32
    return %c0_i32, %c0_i32_0 : i32, i32
  }
  func.func @transform_6(%arg0: i32) -> (i32, i32) {
    %c0_i32 = arith.constant 0 : i32
    %c0_i32_0 = arith.constant 0 : i32
    %c0_i32_1 = arith.constant 0 : i32
    return %c0_i32, %c0_i32_0 : i32, i32
  }
  func.func @transform_7(%arg0: i32) -> (i32, i32) {
    %c0_i32 = arith.constant 0 : i32
    %c0_i32_0 = arith.constant 0 : i32
    %c0_i32_1 = arith.constant 0 : i32
    return %c0_i32, %c0_i32_0 : i32, i32
  }
  func.func @transform_8(%arg0: i32) -> (i32, i32) {
    %c0_i32 = arith.constant 0 : i32
    %c0_i32_0 = arith.constant 0 : i32
    %c0_i32_1 = arith.constant 0 : i32
    return %c0_i32, %c0_i32_0 : i32, i32
  }
  func.func @transform_9(%arg0: i32) -> (i32, i32) {
    %c0_i32 = arith.constant 0 : i32
    %c0_i32_0 = arith.constant 0 : i32
    %c0_i32_1 = arith.constant 0 : i32
    return %c0_i32, %c0_i32_0 : i32, i32
  }
  func.func @transform_10(%arg0: i32) -> (i32, i32) {
    %c0_i32 = arith.constant 0 : i32
    %c0_i32_0 = arith.constant 0 : i32
    %c0_i32_1 = arith.constant 0 : i32
    return %c0_i32, %c0_i32_0 : i32, i32
  }
  func.func @transform_11(%arg0: i32) -> (i32, i32) {
    %c0_i32 = arith.constant 0 : i32
    %c0_i32_0 = arith.constant 0 : i32
    %c0_i32_1 = arith.constant 0 : i32
    return %c0_i32, %c0_i32_0 : i32, i32
  }
  func.func @transform_12(%arg0: i32) -> (i32, i32) {
    %c0_i32 = arith.constant 0 : i32
    %c0_i32_0 = arith.constant 0 : i32
    %c0_i32_1 = arith.constant 0 : i32
    return %c0_i32, %c0_i32_0 : i32, i32
  }
  func.func @transform_13(%arg0: i32) -> (i32, i32) {
    %c0_i32 = arith.constant 0 : i32
    %c0_i32_0 = arith.constant 0 : i32
    %c0_i32_1 = arith.constant 0 : i32
    return %c0_i32, %c0_i32_0 : i32, i32
  }
  func.func @transform_14(%arg0: i32) -> (i32, i32, i32) {
    %c0_i32 = arith.constant 0 : i32
    %c0_i32_0 = arith.constant 0 : i32
    %c0_i32_1 = arith.constant 0 : i32
    return %arg0, %c0_i32, %c0_i32_0 : i32, i32, i32
  }
  func.func @transform_15(%arg0: i32) -> (i32, i32, i32) {
    %c0_i32 = arith.constant 0 : i32
    %c0_i32_0 = arith.constant 0 : i32
    %c0_i32_1 = arith.constant 0 : i32
    return %arg0, %c0_i32, %c0_i32_0 : i32, i32, i32
  }
}

</mosaic_0001>

<bundles_post_ra>
// kernel: kernel_matching_decoder_kp.1
= control target key start
LH: loop header
LB: loop body
LE: loop exit
PB: predicated region body
PF: predicated region fallthrough
CT: control target
= control target key end

     0   :  { %s5134_s18 = smov 0   ;;  %s7211_s0 = inlined_call_operand.vmem [shape: f32[2,16,256], index: 0, kind: input, shape index: {}]   ;;  %s7212_s1 = inlined_call_operand.vmem [shape: f32[2,3,290], index: 1, kind: input, shape index: {}]   ;;  %s7213_s2 = inlined_call_operand.vmem [shape: f32[7,358], index: 2, kind: input, shape index: {}]   ;;  %s7214_s3 = inlined_call_operand.vmem [shape: f32[3,290], index: 3, kind: input, shape index: {}]   ;;  %s7215_s4 = inlined_call_operand.vmem [shape: bf16[64,784], index: 4, kind: input, shape index: {}]   ;;  %s7216_s5 = inlined_call_operand.vmem [shape: f32[64,1], index: 5, kind: input, shape index: {}]   ;;  %s7217_s6 = inlined_call_operand.vmem [shape: bf16[16,64], index: 6, kind: input, shape index: {}]   ;;  %s7218_s7 = inlined_call_operand.vmem [shape: f32[16,1], index: 7, kind: input, shape index: {}]   ;;  %s7219_s8 = inlined_call_operand.vmem [shape: bf16[64,784], index: 8, kind: input, shape index: {}]   ;;  %s7220_s9 = inlined_call_operand.vmem [shape: f32[64,1], index: 9, kind: input, shape index: {}]   ;;  %s7221_s10 = inlined_call_operand.vmem [shape: bf16[16,64], index: 10, kind: input, shape index: {}]   ;;  %s7222_s11 = inlined_call_operand.vmem [shape: f32[16,1], index: 11, kind: input, shape index: {}]   ;;  %s7223_s12 = inlined_call_operand.vmem [shape: bf16[16,144], index: 12, kind: input, shape index: {}]   ;;  %s7224_s13 = inlined_call_operand.vmem [shape: f32[16,1], index: 13, kind: input, shape index: {}]   ;;  %s7225_s14 = inlined_call_operand.vmem [shape: f32[2,3,256], index: 14, kind: output, shape index: {0}]   ;;  %s7226_s15 = inlined_call_operand.vmem [shape: f32[2,3,256], index: 15, kind: output, shape index: {1}]  }
   0x1   :  { %7386 = sst [smem:[#allocation26_spill]] %s7211_s0 }
   0x2   :  { %7387 = sst [smem:[#allocation27_spill]] %s7212_s1 }
   0x3   :  { %7388 = sst [smem:[#allocation28_spill]] %s7213_s2 }
   0x4   :  { %7389 = sst [smem:[#allocation29_spill]] %s7214_s3 }
   0x5   :  { %7390 = sst [smem:[#allocation30_spill]] %s7215_s4 }
   0x6   :  { %7391 = sst [smem:[#allocation31_spill]] %s7216_s5 }
   0x7   :  { %7392 = sst [smem:[#allocation32_spill]] %s7217_s6 }
   0x8   :  { %7393 = sst [smem:[#allocation33_spill]] %s7218_s7 }
   0x9   :  { %7394 = sst [smem:[#allocation34_spill]] %s7221_s10 }
   0xa   :  { %7395 = sst [smem:[#allocation35_spill]] %s7222_s11 }
   0xb   :  { %7396 = sst [smem:[#allocation36_spill]] %s7223_s12 }
   0xc   :  { %7397 = sst [smem:[#allocation37_spill]] %s7224_s13 }
   0xd   :  { %7398 = sst [smem:[#allocation38_spill]] %s7225_s14 }
   0xe   :  { %7399 = sst [smem:[#allocation39_spill]] %s7226_s15 }
   0xf LB: > { %7400 = sst [smem:[#allocation5_spill]] %s5001_s18  ;;  %s4612_s19 = sadd.s32 4294967295, %s5001_s18   ;;  %s5001_s18 = sphi %s5134_s18, %s26_s18  }
  0x10   : > { %p4616_p0 = scmp.ge.s32.totalorder %s5001_s18, 1  ;;  %p450_p1 = scmp.lt.s32.totalorder %s5001_s18, 3 }
  0x12   : > { %p451_p2 = pnand %p4616_p0, %p450_p1 }
  0x14   : > { %454 = sbr.rel (%p451_p2) target bundleno = 2594 (0xa22), region = 76 }
  0x1b   : > { %p508_p3 = scmp.lt.s32.totalorder %s4612_s19, 1  ;;  %vm533_vm0 = vcmask 416768   ;;  %vm535_vm1 = vcmask 834968   ;;  %v7287_v0 = vmov 0   ;;  %s7402_s0 = sld [smem:[#allocation26_spill]]  ;;  %v559_v7 = vlaneseq }
  0x1c   : > { %534 = vst.msk [vmem:[#allocation3] sm:$0xff] %vm533_vm0, %v7287_v0  ;;  %2100 = vmatprep.mubr.bf16.mxu1 %v7287_v0  ;;  %4905 = vset.pattern.permute.xlu1 %v7287_v0  ;;  %s7227_s24 = smov 51   ;;  %s7404_s2 = sld [smem:[#allocation28_spill]]  ;;  %vm550_vm2 = vcmask 1047960   ;;  %vm882_vm3 = vcmask 1039360   ;;  %vm898_vm4 = vcmask 1031168  }
  0x1d   : > { %536 = vst.msk [vmem:[#allocation3 + $0x10] sm:$0xff] %vm535_vm1, %v7287_v0  ;;  %s7613_s19 = smov (!%p508_p3, %s4612_s19), 1  ;;  %4904 = vset.pattern.permute.xlu0 %v7287_v0  ;;  %v5163_v8 = vshrl.u32 %v559_v7, 7  ;;  %s7255_s28 = smov 127   ;;  %vm914_vm5 = vcmask 1022976   ;;  %vm930_vm6 = vcmask 1014784  }
  0x1e   : > { %7401 = sst [smem:[#allocation6_spill]] %s7613_s19  ;;  %s4713_s20 = sshll.u32 %s7613_s19, 5  ;;  %vm946_vm7 = vcmask 1006592   ;;  %vm962_vm8 = vcmask 998400   ;;  %vm978_vm9 = vcmask 916480   ;;  %vm991_vm10 = vcmask 908288  }
  0x1f   : > { %7403 = vst [vmem:[#allocation7_spill] sm:$0xff] %v5163_v8  ;;  %v5177_v12 = vsub.s32 1, %v5163_v8  ;;  %v5198_v17 = vsub.s32 0, %v5163_v8  ;;  %v5212_v25 = vsub.s32 2, %v5163_v8  ;;  %s7257_s29 = smov 126   ;;  %s7251_s30 = smov 125  }
  0x20   : > { %s7263_s16 = smov 124   ;;  %s7253_s17 = smov 123   ;;  %vm1004_vm11 = vcmask 900096   ;;  %vm7367_vm12 = vcmask 891904   ;;  %vm7357_vm13 = vcmask 883712   ;;  %vm7319_vm14 = vcmask 875520  }
  0x21   : > { %s5155_s23 = scalar_lea.vmem %s7402_s0, %s4713_s20  ;;  %7405 = vst [vmem:[#allocation8_spill] sm:$0xff] %v5177_v12  ;;  %7406 = vst [vmem:[#allocation9_spill] sm:$0xff] %v5198_v17  ;;  %s7231_s20 = smov 122   ;;  %vm7322_vm15 = vcmask 867328  }
  0x22   : > { %v529_v1 = vld [vmem:[%s5155_s23] sm:$0xff]  ;;  %v531_v2 = vld [vmem:[%s5155_s23 + $0x10] sm:$0xff]  ;;  %v530_v3 = vld [vmem:[%s5155_s23 + $0x8] sm:$0xff]  ;;  %7407 = vst [vmem:[#allocation10_spill] sm:$0xff] %v5212_v25  ;;  %s7259_s21 = smov 112   ;;  %s7229_s22 = smov 111  }
  0x23   : > { %v537_v4 = vpack.c.bf16 %v531_v2, %v529_v1  ;;  %v532_v5 = vld [vmem:[%s5155_s23 + $0x18] sm:$0xff]  ;;  %v4624_v9 = vld [vmem:[%s7404_s2 + $0x1] ss:$8 sm:$0x7]  ;;  %s7261_s25 = smov 110   ;;  %s7233_s26 = smov 109  }
  0x24   : > { %v538_v6 = vpack.c.bf16 %v532_v5, %v530_v3  ;;  %v4625_v10 = vld [vmem:[%s7404_s2 + $0x2] ss:$8 sm:$0x7]  ;;  %v5174_v11 = vld [vmem:[%s7404_s2] ss:$8 sm:$0x7]  ;;  %v611_v21 = vrot.slane %v4624_v9, %v5177_v12  ;;  %v607_v26 = vrot.slane %v4624_v9, %v5198_v17  ;;  %v615_v36 = vrot.slane %v4624_v9, %v5212_v25 }
  0x25   : > { %541 = vrot.lane.b32.xlu0 %v537_v4, %s7227_s24  ;;  %v4626_v13 = vld [vmem:[%s7404_s2 + $0x3] ss:$8 sm:$0x7]  ;;  %v5185_v14 = vld [vmem:[%s7404_s2 + $0x5] ss:$8 sm:$0x7]  ;;  %v566_v18 = vrot.slane %v5174_v11, %v5177_v12  ;;  %v656_v22 = vrot.slane %v4625_v10, %v5177_v12  ;;  %v562_v27 = vrot.slane %v5174_v11, %v5198_v17  ;;  %v660_v35 = vrot.slane %v4625_v10, %v5212_v25 }
  0x26   : > { %v5190_v15 = vld [vmem:[%s7404_s2 + $0x4] ss:$8 sm:$0x7]  ;;  %v5195_v16 = vld [vmem:[%s7404_s2 + $0x6] ss:$8 sm:$0x7]  ;;  %v701_v19 = vrot.slane %v4626_v13, %v5177_v12  ;;  %v791_v20 = vrot.slane %v5185_v14, %v5177_v12  ;;  %v620_v31 = vpack.c.bf16 %v611_v21, %v611_v21  ;;  %v697_v37 = vrot.slane %v4626_v13, %v5198_v17 }
  0x27   : > { %v746_v23 = vrot.slane %v5190_v15, %v5177_v12  ;;  %v836_v24 = vrot.slane %v5195_v16, %v5177_v12  ;;  %v575_v28 = vpack.c.bf16 %v566_v18, %v566_v18  ;;  %v665_v32 = vpack.c.bf16 %v656_v22, %v656_v22  ;;  %s7235_s27 = smov 108   ;;  %s7418_s0 = smov 92  }
  0x28   : > { %v710_v29 = vpack.c.bf16 %v701_v19, %v701_v19  ;;  %v800_v30 = vpack.c.bf16 %v791_v20, %v791_v20  ;;  %v619_v38 = vpack.c.bf16 %v607_v26, %v607_v26  ;;  %v574_v39 = vpack.c.bf16 %v562_v27, %v562_v27  ;;  %s7328_s18 = smov 78   ;;  %s7277_s15 = smov 77  }
  0x29   : > { %543 = vrot.lane.b32.xlu0 %v538_v6, %s7227_s24  ;;  %v755_v33 = vpack.c.bf16 %v746_v23, %v746_v23  ;;  %v845_v34 = vpack.c.bf16 %v836_v24, %v836_v24  ;;  %v585_v40 = vpack.i.b16 %v575_v28, %v575_v28  ;;  %v630_v43 = vpack.i.b16 %v620_v31, %v620_v31  ;;  %s7237_s24 = smov 107   ;;  %s7421_s4 = sld [smem:[#allocation30_spill]] }
  0x2a   : > { %v720_v41 = vpack.i.b16 %v710_v29, %v710_v29  ;;  %v810_v42 = vpack.i.b16 %v800_v30, %v800_v30  ;;  %v675_v44 = vpack.i.b16 %v665_v32, %v665_v32  ;;  %v666_v48 = vpack.c.bf16 %v660_v35, %v660_v35  ;;  %s7275_s13 = smov 76   ;;  %s7281_s1 = smov 75  }
  0x2b   : > { %v765_v45 = vpack.i.b16 %v755_v33, %v755_v33  ;;  %v855_v46 = vpack.i.b16 %v845_v34, %v845_v34  ;;  %v621_v49 = vpack.c.bf16 %v615_v36, %v615_v36  ;;  %v709_v50 = vpack.c.bf16 %v697_v37, %v697_v37  ;;  %s7279_s14 = smov 74   ;;  %s7437_s12 = smov 27  }
  0x2c   : > { %v652_v51 = vrot.slane %v4625_v10, %v5198_v17  ;;  %v623_v52 = vpack.i.b16 %v619_v38, %v619_v38  ;;  %v578_v53 = vpack.i.b16 %v574_v39, %v574_v39  ;;  %v590_v54 = vrot.slane %v585_v40, %v5198_v17  ;;  %s7443_s5 = sld [smem:[#allocation31_spill]]  ;;  %s7444_s7 = sld [smem:[#allocation33_spill]] }
  0x2d   : > { %v725_v55 = vrot.slane %v720_v41, %v5198_v17  ;;  %v815_v56 = vrot.slane %v810_v42, %v5198_v17  ;;  %v635_v57 = vrot.slane %v630_v43, %v5198_v17  ;;  %v750_v58 = vrot.slane %v5190_v15, %v5212_v25  ;;  %s7446_s6 = sld [smem:[#allocation32_spill]]  ;;  %s7451_s10 = smov 51  }
  0x2e   : > { %v680_v59 = vrot.slane %v675_v44, %v5198_v17  ;;  %v770_v60 = vrot.slane %v765_v45, %v5198_v17  ;;  %v860_v61 = vrot.slane %v855_v46, %v5198_v17  ;;  %v682_v63 = vpack.i.b16 %v666_v48, %v666_v48  ;;  %s7457_s3 = smov 125   ;;  %s7458_s19 = smov 123  }
  0x2f   : > { %v637_v1 = vpack.i.b16 %v621_v49, %v621_v49  ;;  %v713_v2 = vpack.i.b16 %v709_v50, %v709_v50  ;;  %v664_v3 = vpack.c.bf16 %v652_v51, %v652_v51  ;;  %v628_v5 = vrot.slane %v623_v52, %v5198_v17  ;;  %s7467_s11 = smov 75  }
  0x30   : > { %v583_v6 = vrot.slane %v578_v53, %v5198_v17  ;;  %v705_v7 = vrot.slane %v4626_v13, %v5212_v25  ;;  %v756_v20 = vpack.c.bf16 %v750_v58, %v750_v58  ;;  %v687_v26 = vrot.slane %v682_v63, %v5198_v17 }
  0x31   : > { %v642_v13 = vrot.slane %v637_v1, %v5198_v17  ;;  %v668_v27 = vpack.i.b16 %v664_v3, %v664_v3  ;;  %v787_v28 = vrot.slane %v5185_v14, %v5198_v17  ;;  %v742_v32 = vrot.slane %v5190_v15, %v5198_v17 }
  0x32   : > { %v711_v31 = vpack.c.bf16 %v705_v7, %v705_v7  ;;  %v718_v33 = vrot.slane %v713_v2, %v5198_v17  ;;  %v772_v34 = vpack.i.b16 %v756_v20, %v756_v20  ;;  %v840_v38 = vrot.slane %v5195_v16, %v5212_v25 }
  0x33   : > { %v673_v36 = vrot.slane %v668_v27, %v5198_v17  ;;  %v799_v37 = vpack.c.bf16 %v787_v28, %v787_v28  ;;  %v795_v39 = vrot.slane %v5185_v14, %v5212_v25  ;;  %v754_v42 = vpack.c.bf16 %v742_v32, %v742_v32 }
  0x34   : > { %v727_v41 = vpack.i.b16 %v711_v31, %v711_v31  ;;  %v777_v43 = vrot.slane %v772_v34, %v5198_v17  ;;  %v846_v14 = vpack.c.bf16 %v840_v38, %v840_v38  ;;  %v832_v46 = vrot.slane %v5195_v16, %v5198_v17 }
  0x35   : > { %v803_v44 = vpack.i.b16 %v799_v37, %v799_v37  ;;  %v801_v45 = vpack.c.bf16 %v795_v39, %v795_v39  ;;  %v758_v50 = vpack.i.b16 %v754_v42, %v754_v42  ;;  %v570_v16 = vrot.slane %v5174_v11, %v5212_v25  ;;  %v4908_v37 = vld [vmem:[%s7421_s4 + $0x4] ss:$28 sps:$4 sm:$0xff]  }
  0x36   : > { %v732_v49 = vrot.slane %v727_v41, %v5198_v17  ;;  %v862_v51 = vpack.i.b16 %v846_v14, %v846_v14  ;;  %v844_v53 = vpack.c.bf16 %v832_v46, %v832_v46  ;;  %1881 = vmatprep.mubr.bf16.mxu0 %v4908_v37 }
  0x37   : > { %v817_v52 = vpack.i.b16 %v801_v45, %v801_v45 }
  0x38   : > { %v848_v58 = vpack.i.b16 %v844_v53, %v844_v53 }
  0x3a   : > { %v853_v2 = vrot.slane %v848_v58, %v5198_v17 }
  0x97   : > { %v542_v47 = vpop.permute.xlu0 %541 }
  0x98   : > { %551 = vst.msk [vmem:[#allocation3] sm:$0xff] %vm550_vm2, %v542_v47 }
  0x9b   : > { %v544_v62 = vpop.permute.xlu0 %543 }
  0x9c   : > { %v546_v4 = vsel %vm533_vm0, %v542_v47, %v544_v62  ;;  %553 = vst.msk [vmem:[#allocation3 + $0x10] sm:$0xff] %vm533_vm0, %v544_v62  ;;  %v822_v62 = vrot.slane %v817_v52, %v5198_v17 }
  0x9d   : > { %v5236_v9 = vmul.bf16 %v590_v54, %v546_v4  ;;  %v5238_v10 = vmul.bf16 %v725_v55, %v546_v4  ;;  %v5240_v18 = vmul.bf16 %v815_v56, %v546_v4  ;;  %v5242_v19 = vmul.bf16 %v635_v57, %v546_v4 }
  0x9e   : > { %v5244_v21 = vmul.bf16 %v680_v59, %v546_v4  ;;  %v5246_v22 = vmul.bf16 %v770_v60, %v546_v4  ;;  %v5248_v23 = vmul.bf16 %v860_v61, %v546_v4  ;;  %v808_v56 = vrot.slane %v803_v44, %v5198_v17 }
  0x9f   : > { %v5250_v24 = vld [vmem:[#allocation3] sm:$0xff]  ;;  %1849 = vmatprep.subr.bf16.mxu0 %v5236_v9  ;;  %v763_v57 = vrot.slane %v758_v50, %v5198_v17  ;;  %v576_v59 = vpack.c.bf16 %v570_v16, %v570_v16  ;;  %v867_v61 = vrot.slane %v862_v51, %v5198_v17 }
  0xa0   : > { %2239 = vst.msk [vmem:[#allocation3] sm:$0xff] %vm533_vm0, %v7287_v0  ;;  %v5260_v29 = vmul.bf16 %v628_v5, %v5250_v24  ;;  %v5263_v30 = vmul.bf16 %v583_v6, %v5250_v24  ;;  %v5290_v47 = vmul.bf16 %v718_v33, %v5250_v24  ;;  %v5293_v48 = vmul.bf16 %v673_v36, %v5250_v24 }
  0xa1   : > { %v5313_v60 = vmul.bf16 %v808_v56, %v5250_v24  ;;  %v5316_v11 = vmul.bf16 %v763_v57, %v5250_v24  ;;  %v592_v3 = vpack.i.b16 %v576_v59, %v576_v59  ;;  %v5334_v4 = vmul.bf16 %v853_v2, %v5250_v24 }
  0xa2   : > { %876 = vrot.lane.b32.xlu0 %v5260_v29, %s7255_s28  ;;  %1850 = vmatpush1.bf16.msra.mxu0 %v5263_v30 }
  0xa3   : > { %v556_v35 = vld [vmem:[#allocation3 + $0x10] sm:$0xff]  ;;  %v597_v5 = vrot.slane %v592_v3, %v5198_v17 }
  0xa4   : > { %2240 = vst.msk [vmem:[#allocation3 + $0x10] sm:$0xff] %vm535_vm1, %v7287_v0  ;;  %v5278_v15 = vmul.bf16 %v687_v26, %v556_v35  ;;  %v5280_v40 = vmul.bf16 %v642_v13, %v556_v35  ;;  %v5302_v54 = vmul.bf16 %v777_v43, %v556_v35  ;;  %v5304_v55 = vmul.bf16 %v732_v49, %v556_v35 }
  0xa5   : > { %v5324_v63 = vmul.bf16 %v867_v61, %v556_v35  ;;  %v5326_v1 = vmul.bf16 %v822_v62, %v556_v35  ;;  %v5341_v6 = vmul.bf16 %v597_v5, %v556_v35  ;;  %vm7327_vm1 = vcmask 785408  }
  0xa6   : > { %896 = vrot.lane.b32.xlu0 %v5278_v15, %s7257_s29  ;;  %880 = vrot.lane.b32.xlu1 %v5280_v40, %s7255_s28 }
  0xaa   : > { %908 = vrot.lane.b32.xlu0 %v5290_v47, %s7251_s30  ;;  %892 = vrot.lane.b32.xlu1 %v5293_v48, %s7257_s29 }
  0xae   : > { %928 = vrot.lane.b32.xlu0 %v5302_v54, %s7263_s16  ;;  %912 = vrot.lane.b32.xlu1 %v5304_v55, %s7251_s30 }
  0xb2   : > { %940 = vrot.lane.b32.xlu0 %v5313_v60, %s7253_s17  ;;  %924 = vrot.lane.b32.xlu1 %v5316_v11, %s7263_s16 }
  0xb6   : > { %960 = vrot.lane.b32.xlu0 %v5324_v63, %s7231_s20  ;;  %944 = vrot.lane.b32.xlu1 %v5326_v1, %s7253_s17 }
  0xba   : > { %972 = vrot.lane.b32.xlu0 %v5263_v30, %s7259_s21  ;;  %956 = vrot.lane.b32.xlu1 %v5334_v4, %s7231_s20  ;;  %s7241_s20 = smov 96  }
  0xbe   : > { %989 = vrot.lane.b32.xlu0 %v5280_v40, %s7229_s22  ;;  %976 = vrot.lane.b32.xlu1 %v5341_v6, %s7259_s21 }
  0xc2   : > { %998 = vrot.lane.b32.xlu0 %v5293_v48, %s7261_s25  ;;  %985 = vrot.lane.b32.xlu1 %v5260_v29, %s7229_s22  ;;  %s7239_s22 = smov 106  }
  0xc6   : > { %1015 = vrot.lane.b32.xlu0 %v5304_v55, %s7233_s26  ;;  %1002 = vrot.lane.b32.xlu1 %v5278_v15, %s7261_s25 }
  0xca   : > { %1024 = vrot.lane.b32.xlu0 %v5316_v11, %s7235_s27  ;;  %1011 = vrot.lane.b32.xlu1 %v5290_v47, %s7233_s26  ;;  %s7243_s26 = smov 95  }
  0xce   : > { %1041 = vrot.lane.b32.xlu0 %v5326_v1, %s7237_s24  ;;  %1028 = vrot.lane.b32.xlu1 %v5302_v54, %s7235_s27  ;;  %s7245_s27 = smov 94  }
  0xd2   : > { %1050 = vrot.lane.b32.xlu0 %v5334_v4, %s7239_s22  ;;  %1037 = vrot.lane.b32.xlu1 %v5313_v60, %s7237_s24  ;;  %s7247_s24 = smov 93  }
  0xd6   : > { %1067 = vrot.lane.b32.xlu0 %v5341_v6, %s7241_s20  ;;  %1054 = vrot.lane.b32.xlu1 %v5324_v63, %s7239_s22  ;;  %s7267_s22 = smov 92  }
  0xda   : > { %1076 = vrot.lane.b32.xlu0 %v5260_v29, %s7243_s26  ;;  %1063 = vrot.lane.b32.xlu1 %v5263_v30, %s7241_s20  ;;  %s7270_s20 = smov 91  }
  0xde   : > { %1093 = vrot.lane.b32.xlu0 %v5278_v15, %s7245_s27  ;;  %1080 = vrot.lane.b32.xlu1 %v5280_v40, %s7243_s26  ;;  %s7265_s26 = smov 90  }
  0xe2   : > { %1102 = vrot.lane.b32.xlu0 %v5290_v47, %s7247_s24  ;;  %1089 = vrot.lane.b32.xlu1 %v5293_v48, %s7245_s27  ;;  %s7272_s27 = smov 80  }
  0xe6   : > { %1119 = vrot.lane.b32.xlu0 %v5302_v54, %s7267_s22  ;;  %1106 = vrot.lane.b32.xlu1 %v5304_v55, %s7247_s24  ;;  %s7249_s24 = smov 79  }
  0xea   : > { %1128 = vrot.lane.b32.xlu0 %v5313_v60, %s7270_s20  ;;  %1115 = vrot.lane.b32.xlu1 %v5316_v11, %s7267_s22  ;;  %s7417_s22 = smov 94  }
  0xee   : > { %1145 = vrot.lane.b32.xlu0 %v5324_v63, %s7265_s26  ;;  %1132 = vrot.lane.b32.xlu1 %v5326_v1, %s7270_s20 }
  0xf2   : > { %1154 = vrot.lane.b32.xlu0 %v5263_v30, %s7272_s27  ;;  %1141 = vrot.lane.b32.xlu1 %v5334_v4, %s7265_s26  ;;  %s7416_s26 = smov 96  }
  0xf6   : > { %1171 = vrot.lane.b32.xlu0 %v5280_v40, %s7249_s24  ;;  %1158 = vrot.lane.b32.xlu1 %v5341_v6, %s7272_s27 }
  0xfa   : > { %1167 = vrot.lane.b32.xlu1 %v5260_v29, %s7249_s24  ;;  %910 = vrot.lane.b32.xlu0 %v5238_v10, %s7251_s30  ;;  %s7408_s24 = smov 122   ;;  %s7409_s30 = smov 108  }
  0xfe   : > { %942 = vrot.lane.b32.xlu0 %v5240_v18, %s7253_s17  ;;  %878 = vrot.lane.b32.xlu1 %v5242_v19, %s7255_s28  ;;  %s7410_s17 = smov 111   ;;  %s7411_s28 = smov 106  }
 0x102   : > { %894 = vrot.lane.b32.xlu1 %v5244_v21, %s7257_s29  ;;  %974 = vrot.lane.b32.xlu0 %v5236_v9, %s7259_s21  ;;  %s7412_s29 = smov 109   ;;  %s7413_s21 = smov 95  }
 0x106   : > { %926 = vrot.lane.b32.xlu1 %v5246_v22, %s7263_s16  ;;  %1000 = vrot.lane.b32.xlu0 %v5244_v21, %s7261_s25  ;;  %s7414_s25 = smov 107   ;;  %s7415_s16 = smov 93  }
 0x10a   : > { %958 = vrot.lane.b32.xlu1 %v5248_v23, %s7408_s24  ;;  %1026 = vrot.lane.b32.xlu0 %v5246_v22, %s7409_s30 }
 0x10e   : > { %987 = vrot.lane.b32.xlu1 %v5242_v19, %s7410_s17  ;;  %1052 = vrot.lane.b32.xlu0 %v5248_v23, %s7411_s28 }
 0x112   : > { %1013 = vrot.lane.b32.xlu1 %v5238_v10, %s7412_s29  ;;  %1078 = vrot.lane.b32.xlu0 %v5242_v19, %s7413_s21 }
 0x114   : > { %v5431_v7 = vpop.permute.xlu0 %876 }
 0x116   : > { %1039 = vrot.lane.b32.xlu1 %v5240_v18, %s7414_s25  ;;  %1104 = vrot.lane.b32.xlu0 %v5238_v10, %s7415_s16 }
 0x118   : > { %v5437_v20 = vpop.permute.xlu1 %880  ;;  %v5439_v24 = vpop.permute.xlu0 %896 }
 0x11a   : > { %1065 = vrot.lane.b32.xlu1 %v5236_v9, %s7416_s26  ;;  %1130 = vrot.lane.b32.xlu0 %v5240_v18, %s7270_s20  ;;  %s7419_s20 = smov 90  }
 0x11c   : > { %v5445_v26 = vpop.permute.xlu1 %892  ;;  %v5447_v13 = vpop.permute.xlu0 %908 }
 0x11e   : > { %1091 = vrot.lane.b32.xlu1 %v5244_v21, %s7417_s22  ;;  %1156 = vrot.lane.b32.xlu0 %v5236_v9, %s7272_s27  ;;  %s7420_s27 = smov 79  }
 0x120   : > { %v5453_v27 = vpop.permute.xlu1 %912  ;;  %v5455_v28 = vpop.permute.xlu0 %928 }
 0x122   : > { %1117 = vrot.lane.b32.xlu1 %v5246_v22, %s7418_s0  ;;  %1182 = vrot.lane.b32.xlu0 %v5244_v21, %s7328_s18 }
 0x124   : > { %v5461_v31 = vpop.permute.xlu1 %924  ;;  %v5463_v32 = vpop.permute.xlu0 %940 }
 0x126   : > { %1143 = vrot.lane.b32.xlu1 %v5248_v23, %s7419_s20  ;;  %1180 = vrot.lane.b32.xlu0 %v5293_v48, %s7328_s18 }
 0x128   : > { %v5469_v33 = vpop.permute.xlu1 %944  ;;  %v5471_v34 = vpop.permute.xlu0 %960 }
 0x12a   : > { %1169 = vrot.lane.b32.xlu1 %v5242_v19, %s7420_s27  ;;  %1197 = vrot.lane.b32.xlu0 %v5304_v55, %s7277_s15 }
 0x12c   : > { %v5477_v35 = vpop.permute.xlu1 %956  ;;  %v5479_v36 = vpop.permute.xlu0 %972 }
 0x12e   : > { %1184 = vrot.lane.b32.xlu1 %v5278_v15, %s7328_s18  ;;  %1208 = vrot.lane.b32.xlu0 %v5246_v22, %s7275_s13  ;;  %s7432_s18 = smov 28  }
 0x130   : > { %v5488_v38 = vpop.permute.xlu1 %976  ;;  %v5490_v39 = vpop.permute.xlu0 %989 }
 0x132   : > { %1195 = vrot.lane.b32.xlu1 %v5238_v10, %s7277_s15  ;;  %1206 = vrot.lane.b32.xlu0 %v5316_v11, %s7275_s13 }
 0x134   : > { %v5496_v41 = vpop.permute.xlu1 %985  ;;  %v5498_v42 = vpop.permute.xlu0 %998 }
 0x136   : > { %1193 = vrot.lane.b32.xlu1 %v5290_v47, %s7277_s15  ;;  %1223 = vrot.lane.b32.xlu0 %v5326_v1, %s7281_s1  ;;  %s7283_s15 = smov 63  }
 0x138   : > { %v5504_v43 = vpop.permute.xlu1 %1002  ;;  %v5506_v44 = vpop.permute.xlu0 %1015 }
 0x13a   : > { %1210 = vrot.lane.b32.xlu1 %v5302_v54, %s7275_s13  ;;  %1234 = vrot.lane.b32.xlu0 %v5248_v23, %s7279_s14  ;;  %s7285_s13 = smov 64  }
 0x13c   : > { %v5512_v14 = vpop.permute.xlu1 %1011  ;;  %v5514_v45 = vpop.permute.xlu0 %1024 }
 0x13e   : > { %1221 = vrot.lane.b32.xlu1 %v5240_v18, %s7281_s1  ;;  %1232 = vrot.lane.b32.xlu0 %v5334_v4, %s7279_s14 }
 0x140   : > { %v5520_v46 = vpop.permute.xlu1 %1028  ;;  %v5522_v49 = vpop.permute.xlu0 %1041 }
 0x142   : > { %1219 = vrot.lane.b32.xlu1 %v5313_v60, %s7281_s1  ;;  %1249 = vrot.lane.b32.xlu0 %v5341_v6, %s7285_s13  ;;  %s7293_s1 = smov 61  }
 0x144   : > { %v5528_v50 = vpop.permute.xlu1 %1037  ;;  %v5530_v51 = vpop.permute.xlu0 %1050 }
 0x146   : > { %1236 = vrot.lane.b32.xlu1 %v5324_v63, %s7279_s14  ;;  %1260 = vrot.lane.b32.xlu0 %v5242_v19, %s7283_s15  ;;  %s7299_s14 = smov 62  }
 0x148   : > { %v5536_v52 = vpop.permute.xlu1 %1054  ;;  %v5538_v53 = vpop.permute.xlu0 %1067 }
 0x14a   : > { %1247 = vrot.lane.b32.xlu1 %v5236_v9, %s7285_s13  ;;  %1258 = vrot.lane.b32.xlu0 %v5260_v29, %s7283_s15 }
 0x14c   : > { %v5544_v16 = vpop.permute.xlu1 %1063  ;;  %v5546_v56 = vpop.permute.xlu0 %1076 }
 0x14e   : > { %1245 = vrot.lane.b32.xlu1 %v5263_v30, %s7285_s13  ;;  %1275 = vrot.lane.b32.xlu0 %v5278_v15, %s7299_s14  ;;  %s7301_s13 = smov 59  }
 0x150   : > { %v5552_v57 = vpop.permute.xlu1 %1080  ;;  %v5554_v58 = vpop.permute.xlu0 %1093 }
 0x152   : > { %1262 = vrot.lane.b32.xlu1 %v5280_v40, %s7283_s15  ;;  %1286 = vrot.lane.b32.xlu0 %v5238_v10, %s7293_s1  ;;  %s7325_s15 = smov 60  }
 0x154   : > { %v5560_v59 = vpop.permute.xlu1 %1089  ;;  %v5562_v61 = vpop.permute.xlu0 %1102 }
 0x156   : > { %1273 = vrot.lane.b32.xlu1 %v5244_v21, %s7299_s14  ;;  %1284 = vrot.lane.b32.xlu0 %v5290_v47, %s7293_s1 }
 0x158   : > { %v5568_v62 = vpop.permute.xlu1 %1106  ;;  %v5570_v2 = vpop.permute.xlu0 %1119 }
 0x15a   : > { %1271 = vrot.lane.b32.xlu1 %v5293_v48, %s7299_s14  ;;  %1301 = vrot.lane.b32.xlu0 %v5302_v54, %s7325_s15  ;;  %s7305_s14 = smov 48  }
 0x15c   : > { %v5576_v3 = vpop.permute.xlu1 %1115  ;;  %v5578_v5 = vpop.permute.xlu0 %1128 }
 0x15d   : > { %7422 = vst [vmem:[#allocation11_spill] sm:$0xff] %v5576_v3  ;;  %7423 = vst [vmem:[#allocation12_spill] sm:$0xff] %v5578_v5 }
 0x15e   : > { %1288 = vrot.lane.b32.xlu1 %v5304_v55, %s7293_s1  ;;  %1312 = vrot.lane.b32.xlu0 %v5240_v18, %s7301_s13  ;;  %s7303_s1 = smov 58  }
 0x160   : > { %v5584_v37 = vpop.permute.xlu1 %1132  ;;  %v5586_v0 = vpop.permute.xlu0 %1145 }
 0x161   : > { %7424 = vst [vmem:[#allocation13_spill] sm:$0xff] %v5584_v37  ;;  %7425 = vst [vmem:[#allocation14_spill] sm:$0xff] %v5586_v0 }
 0x162   : > { %1299 = vrot.lane.b32.xlu1 %v5246_v22, %s7325_s15  ;;  %1310 = vrot.lane.b32.xlu0 %v5313_v60, %s7301_s13 }
 0x164   : > { %v5592_v8 = vpop.permute.xlu1 %1141  ;;  %v5594_v25 = vpop.permute.xlu0 %1154 }
 0x165   : > { %7426 = vst [vmem:[#allocation15_spill] sm:$0xff] %v5592_v8  ;;  %7427 = vst [vmem:[#allocation16_spill] sm:$0xff] %v5594_v25 }
 0x166   : > { %1297 = vrot.lane.b32.xlu1 %v5316_v11, %s7325_s15  ;;  %1327 = vrot.lane.b32.xlu0 %v5324_v63, %s7303_s1  ;;  %s7431_s15 = smov 30  }
 0x168   : > { %v5600_v17 = vpop.permute.xlu1 %1158  ;;  %v5602_v12 = vpop.permute.xlu0 %1171 }
 0x169   : > { %7428 = vst [vmem:[#allocation17_spill] sm:$0xff] %v5600_v17  ;;  %7429 = vst [vmem:[#allocation18_spill] sm:$0xff] %v5602_v12 }
 0x16a   : > { %1314 = vrot.lane.b32.xlu1 %v5326_v1, %s7301_s13  ;;  %1338 = vrot.lane.b32.xlu0 %v5236_v9, %s7305_s14  ;;  %s7307_s13 = smov 47  }
 0x16c   : > { %v5608_v8 = vpop.permute.xlu1 %1167  ;;  %v911_v25 = vpop.permute.xlu0 %910 }
 0x16d   : > { %7430 = vst [vmem:[#allocation19_spill] sm:$0xff] %v5608_v8 }
 0x16e   : > { %1325 = vrot.lane.b32.xlu1 %v5248_v23, %s7303_s1  ;;  %1336 = vrot.lane.b32.xlu0 %v5263_v30, %s7305_s14 }
 0x170   : > { %v879_v17 = vpop.permute.xlu1 %878  ;;  %v943_v0 = vpop.permute.xlu0 %942 }
 0x171   : > { %v884_v12 = vsel %vm882_vm3, %v879_v17, %v5437_v20  ;;  %v883_v5 = vsel %vm882_vm3, %v5431_v7, %v879_v17 }
 0x172   : > { %1323 = vrot.lane.b32.xlu1 %v5334_v4, %s7303_s1  ;;  %1851 = vmatprep.subr.bf16.mxu0 %v884_v12  ;;  %s7309_s1 = smov 46   ;;  %v916_v12 = vsel %vm914_vm5, %v911_v25, %v5453_v27 }
 0x173   : > { %1353 = vrot.lane.b32.xlu0 %v5280_v40, %s7307_s13  ;;  %1852 = vmatpush1.bf16.msra.mxu0 %v883_v5  ;;  %v947_v5 = vsel %vm946_vm7, %v5463_v32, %v943_v0 }
 0x174   : > { %v895_v8 = vpop.permute.xlu1 %894  ;;  %v975_v37 = vpop.permute.xlu0 %974 }
 0x175   : > { %v900_v3 = vsel %vm898_vm4, %v895_v8, %v5439_v24  ;;  %v899_v20 = vsel %vm898_vm4, %v5445_v26, %v895_v8  ;;  %v915_v8 = vsel %vm914_vm5, %v5447_v13, %v911_v25  ;;  %v948_v25 = vsel %vm946_vm7, %v943_v0, %v5469_v33 }
 0x176   : > { %1340 = vrot.lane.b32.xlu1 %v5341_v6, %s7305_s14  ;;  %1853 = vmatprep.subr.bf16.mxu0 %v900_v3  ;;  %s7311_s14 = smov 45   ;;  %v980_v0 = vsel %vm978_vm9, %v975_v37, %v5488_v38 }
 0x177   : > { %1364 = vrot.lane.b32.xlu0 %v5244_v21, %s7309_s1  ;;  %1854 = vmatpush1.bf16.msra.mxu0 %v899_v20 }
 0x178   : > { %v927_v17 = vpop.permute.xlu1 %926  ;;  %1855 = vmatprep.subr.bf16.mxu0 %v916_v12  ;;  %v1001_v7 = vpop.permute.xlu0 %1000 }
 0x179   : > { %v932_v24 = vsel %vm930_vm6, %v927_v17, %v5455_v28  ;;  %v931_v3 = vsel %vm930_vm6, %v5461_v31, %v927_v17  ;;  %v979_v17 = vsel %vm978_vm9, %v5479_v36, %v975_v37 }
 0x17a   : > { %1351 = vrot.lane.b32.xlu1 %v5242_v19, %s7307_s13 }
 0x17b   : > { %1362 = vrot.lane.b32.xlu0 %v5293_v48, %s7309_s1  ;;  %1856 = vmatpush1.bf16.msra.mxu0 %v915_v8 }
 0x17c   : > { %v959_v26 = vpop.permute.xlu1 %958  ;;  %1857 = vmatprep.subr.bf16.mxu0 %v932_v24  ;;  %v5640_v27 = vpop.permute.xlu0 %1026 }
 0x17d   : > { %v964_v31 = vsel %vm962_vm8, %v959_v26, %v5471_v34  ;;  %v963_v12 = vsel %vm962_vm8, %v5477_v35, %v959_v26 }
 0x17e   : > { %1349 = vrot.lane.b32.xlu1 %v5260_v29, %s7307_s13  ;;  %s7313_s13 = smov 44  }
 0x17f   : > { %1379 = vrot.lane.b32.xlu0 %v5304_v55, %s7311_s14  ;;  %1858 = vmatpush1.bf16.msra.mxu0 %v931_v3 }
 0x180   : > { %v988_v13 = vpop.permute.xlu1 %987  ;;  %1859 = vmatprep.subr.bf16.mxu0 %v948_v25  ;;  %v5650_v28 = vpop.permute.xlu0 %1052 }
 0x181   : > { %v993_v35 = vsel %vm991_vm10, %v988_v13, %v5490_v39  ;;  %v992_v36 = vsel %vm991_vm10, %v5496_v41, %v988_v13  ;;  %v1006_v39 = vsel %vm1004_vm11, %v1001_v7, %v5504_v43  ;;  %v1005_v41 = vsel %vm1004_vm11, %v5498_v42, %v1001_v7 }
 0x182   : > { %1366 = vrot.lane.b32.xlu1 %v5278_v15, %s7309_s1  ;;  %s7315_s1 = smov 43   ;;  %v1032_v42 = vsel %vm7357_vm13, %v5640_v27, %v5520_v46 }
 0x183   : > { %1390 = vrot.lane.b32.xlu0 %v5246_v22, %s7313_s13  ;;  %1860 = vmatpush1.bf16.msra.mxu0 %v947_v5 }
 0x184   : > { %v1014_v33 = vpop.permute.xlu1 %1013  ;;  %1861 = vmatprep.subr.bf16.mxu0 %v964_v31  ;;  %v5660_v20 = vpop.permute.xlu0 %1078 }
 0x185   : > { %v1019_v26 = vsel %vm7367_vm12, %v1014_v33, %v5506_v44  ;;  %v1018_v25 = vsel %vm7367_vm12, %v5512_v14, %v1014_v33  ;;  %v1031_v14 = vsel %vm7357_vm13, %v5514_v45, %v5640_v27  ;;  %vm7360_vm13 = vcmask 498688  }
 0x186   : > { %1377 = vrot.lane.b32.xlu1 %v5238_v10, %s7311_s14  ;;  %vm1420_vm12 = vcmask 343040  }
 0x187   : > { %1388 = vrot.lane.b32.xlu0 %v5316_v11, %s7313_s13  ;;  %1862 = vmatpush1.bf16.msra.mxu0 %v963_v12 }
 0x188   : > { %v1040_v32 = vpop.permute.xlu1 %1039  ;;  %1863 = vmatprep.subr.bf16.mxu0 %v980_v0  ;;  %v5670_v34 = vpop.permute.xlu0 %1104 }
 0x189   : > { %v1044_v45 = vsel %vm7319_vm14, %v5528_v50, %v1040_v32 }
 0x18a   : > { %1375 = vrot.lane.b32.xlu1 %v5290_v47, %s7311_s14  ;;  %s7317_s14 = smov 42  }
 0x18b   : > { %1405 = vrot.lane.b32.xlu0 %v5326_v1, %s7315_s1  ;;  %1864 = vmatpush1.bf16.msra.mxu0 %v979_v17 }
 0x18c   : > { %v5680_v38 = vpop.permute.xlu1 %1065  ;;  %1865 = vmatprep.subr.bf16.mxu0 %v993_v35  ;;  %v5682_v8 = vpop.permute.xlu0 %1130 }
 0x18e   : > { %1392 = vrot.lane.b32.xlu1 %v5302_v54, %s7313_s13  ;;  %s7320_s13 = smov 32  }
 0x18f   : > { %1416 = vrot.lane.b32.xlu0 %v5248_v23, %s7317_s14  ;;  %1866 = vmatpush1.bf16.msra.mxu0 %v992_v36 }
 0x190   : > { %v5692_v37 = vpop.permute.xlu1 %1091  ;;  %1867 = vmatprep.subr.bf16.mxu0 %v1006_v39  ;;  %v5694_v24 = vpop.permute.xlu0 %1156 }
 0x192   : > { %1403 = vrot.lane.b32.xlu1 %v5240_v18, %s7315_s1 }
 0x193   : > { %1414 = vrot.lane.b32.xlu0 %v5334_v4, %s7317_s14  ;;  %1868 = vmatpush1.bf16.msra.mxu0 %v1005_v41 }
 0x194   : > { %v5704_v43 = vpop.permute.xlu1 %1117  ;;  %1869 = vmatprep.subr.bf16.mxu0 %v1019_v26  ;;  %v5706_v3 = vpop.permute.xlu0 %1182  ;;  %v4917_v26 = vld [vmem:[%s7421_s4 + $0xa8] ss:$28 sps:$4 sm:$0xff]  }
 0x196   : > { %1401 = vrot.lane.b32.xlu1 %v5313_v60, %s7315_s1  ;;  %s7323_s1 = smov 31  }
 0x197   : > { %1431 = vrot.lane.b32.xlu0 %v5341_v6, %s7320_s13  ;;  %1870 = vmatpush1.bf16.msra.mxu0 %v1018_v25  ;;  %v1045_v6 = vsel %vm7319_vm14, %v1040_v32, %v5522_v49  ;;  %vm7332_vm14 = vcmask 777216   ;;  %v7436_v32 = vld [vmem:[#allocation14_spill] sm:$0xff] }
 0x198   : > { %v5717_v44 = vpop.permute.xlu1 %1143  ;;  %1871 = vmatprep.subr.bf16.mxu0 %v1032_v42  ;;  %v5719_v7 = vpop.permute.xlu0 %1180  ;;  %v4920_v42 = vld [vmem:[%s7421_s4 + $0xc] ss:$28 sps:$4 sm:$0xff]  }
 0x19a   : > { %1418 = vrot.lane.b32.xlu1 %v5324_v63, %s7317_s14  ;;  %s7330_s14 = smov 30  }
 0x19b   : > { %1442 = vrot.lane.b32.xlu0 %v5242_v19, %s7323_s1  ;;  %1872 = vmatpush1.bf16.msra.mxu0 %v1031_v14  ;;  %v1058_v19 = vsel %vm7322_vm15, %v5650_v28, %v5536_v52 }
 0x19c   : > { %v5730_v46 = vpop.permute.xlu1 %1169  ;;  %1873 = vmatprep.subr.bf16.mxu0 %v1045_v6  ;;  %v5732_v13 = vpop.permute.xlu0 %1197 }
 0x19e   : > { %1429 = vrot.lane.b32.xlu1 %v5236_v9, %s7320_s13  ;;  %v1057_v9 = vsel %vm7322_vm15, %v5530_v51, %v5650_v28  ;;  %vm7335_vm15 = vcmask 769024  }
 0x19f   : > { %1440 = vrot.lane.b32.xlu0 %v5260_v29, %s7323_s1  ;;  %1874 = vmatpush1.bf16.msra.mxu0 %v1044_v45  ;;  %v1071_v29 = vsel %vm7327_vm1, %v5680_v38, %v5538_v53 }
 0x1a0   : > { %v5743_v49 = vpop.permute.xlu1 %1184  ;;  %1875 = vmatprep.subr.bf16.mxu0 %v1058_v19  ;;  %v5745_v27 = vpop.permute.xlu0 %1208 }
 0x1a2   : > { %1427 = vrot.lane.b32.xlu1 %v5263_v30, %s7320_s13  ;;  %v1070_v30 = vsel %vm7327_vm1, %v5544_v16, %v5680_v38  ;;  %s7336_s13 = smov 29   ;;  %v1097_v16 = vsel %vm7335_vm15, %v5692_v37, %v5554_v58  ;;  %vm7339_vm1 = vcmask 760832  }
 0x1a3   : > { %1457 = vrot.lane.b32.xlu0 %v5278_v15, %s7330_s14  ;;  %1876 = vmatpush1.bf16.msra.mxu0 %v1057_v9  ;;  %v1084_v15 = vsel %vm7332_vm14, %v5660_v20, %v5552_v57  ;;  %v1110_v58 = vsel %vm7339_vm1, %v5670_v34, %v5568_v62 }
 0x1a4   : > { %v5757_v50 = vpop.permute.xlu1 %1195  ;;  %1877 = vmatprep.subr.bf16.mxu0 %v1071_v29  ;;  %v5759_v52 = vpop.permute.xlu0 %1206 }
 0x1a6   : > { %1444 = vrot.lane.b32.xlu1 %v5280_v40, %s7323_s1  ;;  %v1083_v40 = vsel %vm7332_vm14, %v5546_v56, %v5660_v20  ;;  %v4909_v56 = vld [vmem:[%s7421_s4 + $0x3c] ss:$28 sps:$4 sm:$0xff]   ;;  %s7333_s1 = smov 28   ;;  %vm7345_vm14 = vcmask 752640  }
 0x1a7   : > { %1468 = vrot.lane.b32.xlu0 %v5238_v10, %s7336_s13  ;;  %1878 = vmatpush1.bf16.msra.mxu0 %v1070_v30  ;;  %v4906_v10 = vld [vmem:[%s7421_s4] ss:$28 sps:$4 sm:$0xff]  }
 0x1a8   : > { %v5771_v51 = vpop.permute.xlu1 %1193  ;;  %1879 = vmatprep.subr.bf16.mxu0 %v1084_v15  ;;  %v5773_v53 = vpop.permute.xlu0 %1223 }
 0x1aa   : > { %1455 = vrot.lane.b32.xlu1 %v5244_v21, %s7330_s14  ;;  %s7352_s14 = smov 26  }
 0x1ab   : > { %1466 = vrot.lane.b32.xlu0 %v5290_v47, %s7336_s13  ;;  %1880 = vmatpush1.bf16.msra.mxu0 %v1083_v40  ;;  %v1096_v47 = vsel %vm7335_vm15, %v5560_v59, %v5692_v37  ;;  %v1123_v59 = vsel %vm7345_vm14, %v5704_v43, %v5570_v2  ;;  %vm7344_vm15 = vcmask 744448   ;;  %v7434_v2 = vld [vmem:[#allocation13_spill] sm:$0xff]  ;;  %v1649_v40 = vld [vmem:[%s7443_s5 + $0x8] sm:$0xff] }
 0x1ac   : > { %v5788_v57 = vpop.permute.xlu1 %1210  ;;  %1922 = vmatprep.subr.bf16.mxu0 %v1097_v16  ;;  %v5790_v21 = vpop.permute.xlu0 %1234  ;;  %v1136_v33 = vsel %vm7344_vm15, %v5682_v8, %v7434_v2  ;;  %v1651_v16 = vld [vmem:[%s7443_s5 + $0x18] sm:$0xff] }
 0x1ae   : > { %1453 = vrot.lane.b32.xlu1 %v5293_v48, %s7431_s15  ;;  %1882 = vmatmul.mubr.bf16.vlgmr.msra.gmra.mrb[0].mxu0 %v4906_v10  ;;  %v1109_v48 = vsel %vm7339_vm1, %v5562_v61, %v5670_v34  ;;  %v4912_v61 = vld [vmem:[%s7421_s4 + $0x74] ss:$28 sps:$4 sm:$0xff]   ;;  %vm7347_vm1 = vcmask 736256   ;;  %v1648_v10 = vld [vmem:[%s7443_s5] sm:$0xff] }
 0x1af   : > { %1483 = vrot.lane.b32.xlu0 %v5302_v54, %s7333_s1  ;;  %1923 = vmatpush1.bf16.msra.mxu0 %v1096_v47  ;;  %v4911_v54 = vld [vmem:[%s7421_s4 + $0x38] ss:$28 sps:$4 sm:$0xff]   ;;  %s7340_s1 = smov 27   ;;  %v1149_v34 = vsel %vm7347_vm1, %v5717_v44, %v7436_v32 }
 0x1b0   : > { %v5805_v28 = vpop.permute.xlu1 %1221  ;;  %1924 = vmatprep.subr.bf16.mxu0 %v1110_v58  ;;  %v5807_v5 = vpop.permute.xlu0 %1232  ;;  %1891 = vmatprep.mubr.bf16.mxu0 %v4909_v56 }
 0x1b2   : > { %1470 = vrot.lane.b32.xlu1 %v5304_v55, %s7336_s13  ;;  %s7456_s13 = smov 124  }
 0x1b3   : > { %1494 = vrot.lane.b32.xlu0 %v5240_v18, %s7340_s1  ;;  %1925 = vmatpush1.bf16.msra.mxu0 %v1109_v48  ;;  %v7433_v18 = vld [vmem:[#allocation11_spill] sm:$0xff]  ;;  %v1653_v48 = vld [vmem:[%s7443_s5 + $0x28] sm:$0xff] }
 0x1b4   : > { %v5822_v62 = vpop.permute.xlu1 %1219  ;;  %1926 = vmatprep.subr.bf16.mxu0 %v1123_v59  ;;  %v5824_v55 = vpop.permute.xlu0 %1249  ;;  %v1122_v31 = vsel %vm7345_vm14, %v7433_v18, %v5704_v43  ;;  %vm7349_vm14 = vcmask 646144   ;;  %v7441_v43 = vld [vmem:[#allocation18_spill] sm:$0xff] }
 0x1b5   : > { %v1175_v25 = vsel %vm7349_vm14, %v5730_v46, %v7441_v43 }
 0x1b6   : > { %1481 = vrot.lane.b32.xlu1 %v5246_v22, %s7432_s18  ;;  %1892 = vmatmul.mubr.bf16.gmra.mrb[4].mxu0 %v4911_v54  ;;  %v7435_v22 = vld [vmem:[#allocation12_spill] sm:$0xff] }
 0x1b7   : > { %1492 = vrot.lane.b32.xlu0 %v5313_v60, %s7340_s1  ;;  %1927 = vmatpush1.bf16.msra.mxu0 %v1122_v31  ;;  %v1135_v0 = vsel %vm7344_vm15, %v7435_v22, %v5682_v8  ;;  %v4914_v60 = vld [vmem:[%s7421_s4 + $0x70] ss:$28 sps:$4 sm:$0xff]   ;;  %vm7348_vm15 = vcmask 654336   ;;  %v7439_v8 = vld [vmem:[#allocation17_spill] sm:$0xff]  ;;  %s7455_s1 = smov 127  }
 0x1b8   : > { %v5839_v20 = vpop.permute.xlu1 %1236  ;;  %1928 = vmatprep.subr.bf16.mxu0 %v1136_v33  ;;  %v5841_v12 = vpop.permute.xlu0 %1260  ;;  %1901 = vmatprep.mubr.bf16.mxu0 %v4912_v61  ;;  %v1162_v36 = vsel %vm7348_vm15, %v5694_v24, %v7439_v8  ;;  %v2223_v33 = vld [vmem:[%s7444_s7] sm:$0xff] }
 0x1ba   : > { %1479 = vrot.lane.b32.xlu1 %v5316_v11, %s7432_s18  ;;  %v4915_v11 = vld [vmem:[%s7421_s4 + $0xac] ss:$28 sps:$4 sm:$0xff]  }
 0x1bb   : > { %1509 = vrot.lane.b32.xlu0 %v5324_v63, %s7352_s14  ;;  %1929 = vmatpush1.bf16.msra.mxu0 %v1135_v0  ;;  %v7438_v63 = vld [vmem:[#allocation15_spill] sm:$0xff] }
 0x1bc   : > { %v5859_v17 = vpop.permute.xlu1 %1247  ;;  %1930 = vmatprep.subr.bf16.mxu0 %v1149_v34  ;;  %v5861_v35 = vpop.permute.xlu0 %1258  ;;  %v1148_v38 = vsel %vm7347_vm1, %v7438_v63, %v5717_v44  ;;  %vm7350_vm1 = vcmask 637952   ;;  %v4921_v63 = vld [vmem:[%s7421_s4 + $0x44] ss:$28 sps:$4 sm:$0xff]  }
 0x1bd   : > { %v1188_v6 = vsel %vm7350_vm1, %v5706_v3, %v5743_v49 }
 0x1be   : > { %1496 = vrot.lane.b32.xlu1 %v5326_v1, %s7437_s12  ;;  %1902 = vmatmul.mubr.bf16.gmra.mrb[8].mxu0 %v4914_v60  ;;  %v7440_v1 = vld [vmem:[#allocation16_spill] sm:$0xff] }
 0x1bf   : > { %1931 = vmatpush1.bf16.msra.mxu0 %v1148_v38  ;;  %1911 = vmatprep.mubr.bf16.mxu0 %v4915_v11  ;;  %v1161_v41 = vsel %vm7348_vm15, %v7440_v1, %v5694_v24  ;;  %v7442_v24 = vld [vmem:[#allocation19_spill] sm:$0xff]  ;;  %vm7351_vm15 = vcmask 629760  }
 0x1c0   : > { %v5871_v39 = vpop.permute.xlu1 %1245  ;;  %1932 = vmatprep.subr.bf16.mxu0 %v1162_v36  ;;  %v5873_v37 = vpop.permute.xlu0 %1275  ;;  %v1174_v14 = vsel %vm7349_vm14, %v7442_v24, %v5730_v46  ;;  %v1201_v46 = vsel %vm7351_vm15, %v5757_v50, %v5732_v13  ;;  %vm7354_vm14 = vcmask 621568   ;;  %v1200_v29 = vsel %vm7351_vm15, %v5771_v51, %v5757_v50  ;;  %1658 = vperm.xlu0 %4904, %v1648_v10  }
 0x1c1   : > { %v1213_v13 = vsel %vm7354_vm14, %v5759_v52, %v5745_v27  ;;  %vm7355_vm15 = vcmask 605184  }
 0x1c2   : > { %1507 = vrot.lane.b32.xlu1 %v5248_v23, %s7352_s14  ;;  %v1240_v52 = vsel %vm7355_vm15, %v5790_v21, %v5839_v20  ;;  %v1239_v47 = vsel %vm7355_vm15, %v5807_v5, %v5790_v21  ;;  %vm7358_vm15 = vcmask 515072   ;;  %v2224_v20 = vld [vmem:[%s7444_s7 + $0x8] sm:$0xff]  ;;  %s7464_s7 = smov 78  }
 0x1c3   : > { %1933 = vmatpush1.bf16.msra.mxu0 %v1161_v41  ;;  %v1265_v31 = vsel %vm7358_vm15, %v5861_v35, %v5841_v12 }
 0x1c4   : > { %v5889_v44 = vpop.permute.xlu1 %1262  ;;  %1934 = vmatprep.subr.bf16.mxu0 %v1175_v25  ;;  %v5891_v23 = vpop.permute.xlu0 %1286  ;;  %1673 = vperm.xlu0 %4904, %v1651_v16   ;;  %v4924_v25 = vld [vmem:[%s7421_s4 + $0x7c] ss:$28 sps:$4 sm:$0xff]  }
 0x1c5   : > { %v1266_v5 = vsel %vm7358_vm15, %v5841_v12, %v5889_v44  ;;  %vm7361_vm15 = vcmask 490496  }
 0x1c6   : > { %1505 = vrot.lane.b32.xlu1 %v5334_v4, %s7352_s14  ;;  %1912 = vmatmul.mubr.bf16.gmra.mrb[12].mxu0 %v4917_v26  ;;  %v1187_v4 = vsel %vm7350_vm1, %v5719_v7, %v5706_v3  ;;  %v1214_v3 = vsel %vm7354_vm14, %v5745_v27, %v5788_v57  ;;  %vm7356_vm1 = vcmask 613376   ;;  %vm1251_vm14 = vcmask 523264   ;;  %v4923_v26 = vld [vmem:[%s7421_s4 + $0x40] ss:$28 sps:$4 sm:$0xff]   ;;  %s7462_s14 = smov 91  }
 0x1c7   : > { %1935 = vmatpush1.bf16.msra.mxu0 %v1174_v14  ;;  %1954 = vmatprep.mubr.bf16.mxu0 %v4920_v42  ;;  %v1227_v15 = vsel %vm7356_vm1, %v5805_v28, %v5773_v53  ;;  %v1226_v27 = vsel %vm7356_vm1, %v5822_v62, %v5805_v28  ;;  %v1650_v53 = vld [vmem:[%s7443_s5 + $0x10] sm:$0xff]  ;;  %v1253_v58 = vsel %vm1251_vm14, %v5859_v17, %v5824_v55  ;;  %v1652_v28 = vld [vmem:[%s7443_s5 + $0x20] sm:$0xff]  ;;  %v1655_v55 = vld [vmem:[%s7443_s5 + $0x38] sm:$0xff]  ;;  %vm7359_vm1 = vcmask 506880  }
 0x1c8   : > { %v5901_v45 = vpop.permute.xlu1 %1273  ;;  %1936 = vmatprep.subr.bf16.mxu0 %v1188_v6  ;;  %v5903_v19 = vpop.permute.xlu0 %1284  ;;  %v1252_v21 = vsel %vm1251_vm14, %v5871_v39, %v5859_v17  ;;  %1683 = vperm.xlu0 %4904, %v1653_v48   ;;  %v1654_v62 = vld [vmem:[%s7443_s5 + $0x30] sm:$0xff]  ;;  %v4918_v17 = vld [vmem:[%s7421_s4 + $0x8] ss:$28 sps:$4 sm:$0xff]   ;;  %s7463_s5 = smov 80  }
 0x1c9   : > { %v1279_v2 = vsel %vm7359_vm1, %v5901_v45, %v5873_v37  ;;  %v1291_v11 = vsel %vm7360_vm13, %v5903_v19, %v5891_v23  ;;  %v4926_v19 = vld [vmem:[%s7421_s4 + $0x78] ss:$28 sps:$4 sm:$0xff]  }
 0x1ca   : > { %1663 = vperm.xlu1 %4905, %v1649_v40  }
 0x1cb   : > { %1937 = vmatpush1.bf16.msra.mxu0 %v1187_v4 }
 0x1cc   : > { %v5911_v9 = vpop.permute.xlu1 %1271  ;;  %1938 = vmatprep.subr.bf16.mxu0 %v1201_v46  ;;  %v5913_v49 = vpop.permute.xlu0 %1301  ;;  %1693 = vperm.xlu0 %4904, %v1655_v55   ;;  %v4927_v46 = vld [vmem:[%s7421_s4 + $0xb4] ss:$28 sps:$4 sm:$0xff]  }
 0x1cd   : > { %v1278_v12 = vsel %vm7359_vm1, %v5911_v9, %v5901_v45  ;;  %vm7362_vm1 = vcmask 482304  }
 0x1ce   : > { %1668 = vperm.xlu1 %4905, %v1650_v53  }
 0x1cf   : > { %1939 = vmatpush1.bf16.msra.mxu0 %v1200_v29 }
 0x1d0   : > { %v1289_v7 = vpop.permute.xlu1 %1288  ;;  %1940 = vmatprep.subr.bf16.mxu0 %v1214_v3  ;;  %v5921_v30 = vpop.permute.xlu0 %1312  ;;  %2232 = vperm.xlu0 %4904, %v2224_v20  }
 0x1d1   : > { %v1292_v60 = vsel %vm7360_vm13, %v5891_v23, %v1289_v7  ;;  %vm7363_vm13 = vcmask 474112  }
 0x1d2   : > { %1678 = vperm.xlu1 %4905, %v1652_v28  }
 0x1d3   : > { %1941 = vmatpush1.bf16.msra.mxu0 %v1213_v13 }
 0x1d4   : > { %v5929_v50 = vpop.permute.xlu1 %1299  ;;  %1942 = vmatprep.subr.bf16.mxu0 %v1227_v15  ;;  %v5931_v51 = vpop.permute.xlu0 %1310  ;;  %v4929_v15 = vld [vmem:[%s7421_s4 + $0xb0] ss:$28 sps:$4 sm:$0xff]  }
 0x1d5   : > { %v1305_v35 = vsel %vm7361_vm15, %v5929_v50, %v5913_v49  ;;  %v1317_v41 = vsel %vm7362_vm1, %v5931_v51, %v5921_v30  ;;  %v4932_v51 = vld [vmem:[%s7421_s4 + $0x14] ss:$28 sps:$4 sm:$0xff]  }
 0x1d6   : > { %1688 = vperm.xlu1 %4905, %v1654_v62  }
 0x1d7   : > { %1943 = vmatpush1.bf16.msra.mxu0 %v1226_v27 }
 0x1d8   : > { %v1298_v57 = vpop.permute.xlu1 %1297  ;;  %1944 = vmatprep.subr.bf16.mxu0 %v1240_v52  ;;  %v5951_v56 = vpop.permute.xlu0 %1327 }
 0x1d9   : > { %v1304_v36 = vsel %vm7361_vm15, %v1298_v57, %v5929_v50  ;;  %vm7364_vm15 = vcmask 392192  }
 0x1da   : > { %2227 = vperm.xlu1 %4905, %v2223_v33  }
 0x1db   : > { %1945 = vmatpush1.bf16.msra.mxu0 %v1239_v47 }
 0x1dc   : > { %v1315_v54 = vpop.permute.xlu1 %1314  ;;  %1946 = vmatprep.subr.bf16.mxu0 %v1253_v58  ;;  %v5965_v59 = vpop.permute.xlu0 %1338 }
 0x1dd   : > { %v1318_v39 = vsel %vm7362_vm1, %v5921_v30, %v1315_v54  ;;  %vm7365_vm1 = vcmask 384000  }
 0x1df   : > { %1947 = vmatpush1.bf16.msra.mxu0 %v1252_v21 }
 0x1e0   : > { %v1326_v61 = vpop.permute.xlu1 %1325  ;;  %1948 = vmatprep.subr.bf16.mxu0 %v1266_v5  ;;  %v1337_v18 = vpop.permute.xlu0 %1336 }
 0x1e1   : > { %v1331_v43 = vsel %vm7363_vm13, %v1326_v61, %v5951_v56  ;;  %v1343_v45 = vsel %vm7364_vm15, %v1337_v18, %v5965_v59 }
 0x1e3   : > { %1949 = vmatpush1.bf16.msra.mxu0 %v1265_v31 }
 0x1e4   : > { %v1324_v22 = vpop.permute.xlu1 %1323  ;;  %1950 = vmatprep.subr.bf16.mxu0 %v1279_v2 }
 0x1e5   : > { %v1354_v0 = vpop.permute.xlu0 %1353  ;;  %v1330_v23 = vsel %vm7363_vm13, %v1324_v22, %v1326_v61  ;;  %vm7366_vm13 = vcmask 375808  }
 0x1e7   : > { %1951 = vmatpush1.bf16.msra.mxu0 %v1278_v12 }
 0x1e8   : > { %v1341_v32 = vpop.permute.xlu1 %1340  ;;  %1952 = vmatprep.subr.bf16.mxu0 %v1292_v60 }
 0x1e9   : > { %v1365_v34 = vpop.permute.xlu0 %1364  ;;  %v1344_v24 = vsel %vm7364_vm15, %v5965_v59, %v1341_v32  ;;  %vm7368_vm15 = vcmask 367616  }
 0x1eb   : > { %1953 = vmatpush1.bf16.msra.mxu0 %v1291_v11 }
 0x1ec   : > { %v1352_v38 = vpop.permute.xlu1 %1351  ;;  %1995 = vmatprep.subr.bf16.mxu0 %v1305_v35 }
 0x1ed   : > { %v1363_v8 = vpop.permute.xlu0 %1362  ;;  %v1357_v4 = vsel %vm7365_vm1, %v1352_v38, %v1354_v0 }
 0x1ee   : > { %1955 = vmatmul.mubr.bf16.vlgmr.msra.gmra.mrb[0].mxu0 %v4918_v17  ;;  %v1369_v13 = vsel %vm7366_vm13, %v1363_v8, %v1365_v34 }
 0x1ef   : > { %1996 = vmatpush1.bf16.msra.mxu0 %v1304_v36  ;;  %1964 = vmatprep.mubr.bf16.mxu0 %v4921_v63 }
 0x1f0   : > { %v1350_v37 = vpop.permute.xlu1 %1349  ;;  %1997 = vmatprep.subr.bf16.mxu0 %v1318_v39 }
 0x1f1   : > { %v1380_v1 = vpop.permute.xlu0 %1379  ;;  %v1356_v29 = vsel %vm7365_vm1, %v1350_v37, %v1352_v38  ;;  %vm7369_vm1 = vcmask 359424  }
 0x1f3   : > { %1998 = vmatpush1.bf16.msra.mxu0 %v1317_v41 }
 0x1f4   : > { %v1367_v42 = vpop.permute.xlu1 %1366  ;;  %1999 = vmatprep.subr.bf16.mxu0 %v1331_v43  ;;  %v4933_v43 = vld [vmem:[%s7421_s4 + $0x4c] ss:$28 sps:$4 sm:$0xff]  }
 0x1f5   : > { %v1391_v44 = vpop.permute.xlu0 %1390  ;;  %v1370_v3 = vsel %vm7366_vm13, %v1365_v34, %v1367_v42  ;;  %vm7370_vm13 = vcmask 351232  }
 0x1f6   : > { %1965 = vmatmul.mubr.bf16.gmra.mrb[4].mxu0 %v4923_v26  ;;  %v4930_v26 = vld [vmem:[%s7421_s4 + $0x10] ss:$28 sps:$4 sm:$0xff]  }
 0x1f7   : > { %2000 = vmatpush1.bf16.msra.mxu0 %v1330_v23  ;;  %1974 = vmatprep.mubr.bf16.mxu0 %v4924_v25 }
 0x1f8   : > { %v1378_v14 = vpop.permute.xlu1 %1377  ;;  %2001 = vmatprep.subr.bf16.mxu0 %v1344_v24 }
 0x1f9   : > { %v1389_v6 = vpop.permute.xlu0 %1388  ;;  %v1383_v50 = vsel %vm7368_vm15, %v1378_v14, %v1380_v1 }
 0x1fa   : > { %v1395_v57 = vsel %vm7369_vm1, %v1389_v6, %v1391_v44  ;;  %v4936_v6 = vld [vmem:[%s7421_s4 + $0x48] ss:$28 sps:$4 sm:$0xff]  }
 0x1fb   : > { %2002 = vmatpush1.bf16.msra.mxu0 %v1343_v45  ;;  %v4937_v45 = vld [vmem:[%s7421_s4 + $0x84] ss:$28 sps:$4 sm:$0xff]  }
 0x1fc   : > { %v1376_v9 = vpop.permute.xlu1 %1375  ;;  %2003 = vmatprep.subr.bf16.mxu0 %v1357_v4  ;;  %v4939_v4 = vld [vmem:[%s7421_s4 + $0x50] ss:$28 sps:$4 sm:$0xff]  }
 0x1fd   : > { %v1406_v49 = vpop.permute.xlu0 %1405  ;;  %v1382_v27 = vsel %vm7368_vm15, %v1376_v9, %v1378_v14  ;;  %vm7371_vm15 = vcmask 261120   ;;  %v4935_v14 = vld [vmem:[%s7421_s4 + $0x18] ss:$28 sps:$4 sm:$0xff]  }
 0x1fe   : > { %1975 = vmatmul.mubr.bf16.gmra.mrb[8].mxu0 %v4926_v19  ;;  %v7445_v19 = vmov 0   ;;  %v4941_v9 = vld [vmem:[%s7421_s4 + $0xbc] ss:$28 sps:$4 sm:$0xff]  }
 0x1ff   : > { %2004 = vmatpush1.bf16.msra.mxu0 %v1356_v29  ;;  %1984 = vmatprep.mubr.bf16.mxu0 %v4927_v46  ;;  %v4940_v46 = vld [vmem:[%s7421_s4 + $0x80] ss:$28 sps:$4 sm:$0xff]   ;;  %v4944_v29 = vld [vmem:[%s7421_s4 + $0xb8] ss:$28 sps:$4 sm:$0xff]  }
 0x200   : > { %v1393_v7 = vpop.permute.xlu1 %1392  ;;  %2005 = vmatprep.subr.bf16.mxu0 %v1370_v3  ;;  %v4945_v3 = vld [vmem:[%s7421_s4 + $0xc0] ss:$28 sps:$4 sm:$0xff]  }
 0x201   : > { %v1417_v30 = vpop.permute.xlu0 %1416  ;;  %v1396_v52 = vsel %vm7369_vm1, %v1391_v44, %v1393_v7  ;;  %vm7372_vm1 = vcmask 252928  }
 0x203   : > { %2006 = vmatpush1.bf16.msra.mxu0 %v1369_v13 }
 0x204   : > { %v1404_v40 = vpop.permute.xlu1 %1403  ;;  %2007 = vmatprep.subr.bf16.mxu0 %v1383_v50 }
 0x205   : > { %v1415_v10 = vpop.permute.xlu0 %1414  ;;  %v1409_v56 = vsel %vm7370_vm13, %v1404_v40, %v1406_v49  ;;  %v4943_v49 = vld [vmem:[%s7421_s4 + $0x88] ss:$28 sps:$4 sm:$0xff]   ;;  %s7454_s4 = smov 126  }
 0x206   : > { %1985 = vmatmul.mubr.bf16.gmra.mrb[12].mxu0 %v4929_v15  ;;  %v1421_v21 = vsel %vm1420_vm12, %v1415_v10, %v1417_v30 }
 0x207   : > { %2008 = vmatpush1.bf16.msra.mxu0 %v1382_v27  ;;  %2027 = vmatprep.mubr.bf16.mxu0 %v4932_v51 }
 0x208   : > { %v1402_v53 = vpop.permute.xlu1 %1401  ;;  %2009 = vmatprep.subr.bf16.mxu0 %v1396_v52 }
 0x209   : > { %v1432_v16 = vpop.permute.xlu0 %1431  ;;  %v1408_v28 = vsel %vm7370_vm13, %v1402_v53, %v1404_v40  ;;  %vm7373_vm13 = vcmask 244736  }
 0x20b   : > { %2010 = vmatpush1.bf16.msra.mxu0 %v1395_v57 }
 0x20c   : > { %v1419_v47 = vpop.permute.xlu1 %1418  ;;  %2011 = vmatprep.subr.bf16.mxu0 %v1409_v56 }
 0x20d   : > { %v1443_v58 = vpop.permute.xlu0 %1442  ;;  %v1422_v48 = vsel %vm1420_vm12, %v1417_v30, %v1419_v47 }
 0x20f   : > { %2012 = vmatpush1.bf16.msra.mxu0 %v1408_v28 }
 0x210   : > { %v1430_v54 = vpop.permute.xlu1 %1429  ;;  %2013 = vmatprep.subr.bf16.mxu0 %v1422_v48 }
 0x211   : > { %v1441_v59 = vpop.permute.xlu0 %1440  ;;  %v1435_v5 = vsel %vm7371_vm15, %v1430_v54, %v1432_v16 }
 0x212   : > { %v1447_v33 = vsel %vm7372_vm1, %v1441_v59, %v1443_v58 }
 0x213   : > { %2014 = vmatpush1.bf16.msra.mxu0 %v1421_v21 }
 0x214   : > { %v1428_v62 = vpop.permute.xlu1 %1427  ;;  %2015 = vmatprep.subr.bf16.mxu0 %v1435_v5 }
 0x215   : > { %v1434_v55 = vsel %vm7371_vm15, %v1428_v62, %v1430_v54  ;;  %v1458_v61 = vpop.permute.xlu0 %1457  ;;  %vm7374_vm15 = vcmask 236544  }
 0x217   : > { %2016 = vmatpush1.bf16.msra.mxu0 %v1434_v55 }
 0x218   : > { %v1445_v18 = vpop.permute.xlu1 %1444 }
 0x219   : > { %v1469_v31 = vpop.permute.xlu0 %1468  ;;  %v1448_v2 = vsel %vm7372_vm1, %v1443_v58, %v1445_v18  ;;  %vm1485_vm1 = vcmask 228352  }
 0x21a   : > { %2017 = vmatprep.subr.bf16.mxu0 %v1448_v2 }
 0x21b   : > { %2018 = vmatpush1.bf16.msra.mxu0 %v1447_v33 }
 0x21c   : > { %v1456_v20 = vpop.permute.xlu1 %1455 }
 0x21d   : > { %v1467_v22 = vpop.permute.xlu0 %1466  ;;  %v1461_v0 = vsel %vm7373_vm13, %v1456_v20, %v1458_v61 }
 0x21e   : > { %2019 = vmatprep.subr.bf16.mxu0 %v1461_v0  ;;  %v1473_v17 = vsel %vm7374_vm15, %v1467_v22, %v1469_v31 }
 0x220   : > { %v1454_v12 = vpop.permute.xlu1 %1453 }
 0x221   : > { %v1460_v60 = vsel %vm7373_vm13, %v1454_v12, %v1456_v20  ;;  %v1484_v32 = vpop.permute.xlu0 %1483  ;;  %vm7375_vm13 = vcmask 220160  }
 0x222   : > { %2020 = vmatpush1.bf16.msra.mxu0 %v1460_v60 }
 0x224   : > { %v1471_v34 = vpop.permute.xlu1 %1470 }
 0x225   : > { %v1474_v11 = vsel %vm7374_vm15, %v1469_v31, %v1471_v34  ;;  %v1495_v35 = vpop.permute.xlu0 %1494  ;;  %vm1511_vm15 = vcmask 211968  }
 0x226   : > { %2021 = vmatprep.subr.bf16.mxu0 %v1474_v11 }
 0x227   : > { %2022 = vmatpush1.bf16.msra.mxu0 %v1473_v17 }
 0x228   : > { %v1482_v63 = vpop.permute.xlu1 %1481 }
 0x229   : > { %v1487_v38 = vsel %vm1485_vm1, %v1482_v63, %v1484_v32  ;;  %v1493_v39 = vpop.permute.xlu0 %1492 }
 0x22a   : > { %2023 = vmatprep.subr.bf16.mxu0 %v1487_v38  ;;  %v1499_v41 = vsel %vm7375_vm13, %v1493_v39, %v1495_v35 }
 0x22c   : > { %v1480_v8 = vpop.permute.xlu1 %1479 }
 0x22d   : > { %v1486_v36 = vsel %vm1485_vm1, %v1480_v8, %v1482_v63  ;;  %v1510_v25 = vpop.permute.xlu0 %1509 }
 0x22e   : > { %2024 = vmatpush1.bf16.msra.mxu0 %v1486_v36 }
 0x230   : > { %v1497_v37 = vpop.permute.xlu1 %1496 }
 0x231   : > { %v1500_v1 = vsel %vm7375_vm13, %v1495_v35, %v1497_v37  ;;  %vm1836_vm13 = vcmask 130048  }
 0x232   : > { %2025 = vmatprep.subr.bf16.mxu0 %v1500_v1 }
 0x233   : > { %2026 = vmatpush1.bf16.msra.mxu0 %v1499_v41 }
 0x234   : > { %v1508_v42 = vpop.permute.xlu1 %1507 }
 0x235   : > { %v1513_v44 = vsel %vm1511_vm15, %v1508_v42, %v1510_v25 }
 0x236   : > { %2028 = vmatmul.mubr.bf16.vlgmr.msra.gmra.mrb[0].mxu0 %v4930_v26  ;;  %2068 = vmatprep.subr.bf16.mxu1 %v1513_v44 }
 0x237   : > { %2037 = vmatprep.mubr.bf16.mxu0 %v4933_v43 }
 0x238   : > { %v1506_v23 = vpop.permute.xlu1 %1505 }
 0x239   : > { %v1512_v24 = vsel %vm1511_vm15, %v1506_v23, %v1508_v42 }
 0x23a   : > { %2069 = vmatpush1.bf16.msra.mxu1 %v1512_v24 }
 0x23d   : > { %4658 = vmatmul.mubr.msk.bf16.vlgmr.msra.gmra.mrb[0].mxu1 %vm1836_vm13, %v4935_v14 }
 0x23e   : > { %2038 = vmatmul.mubr.bf16.gmra.mrb[4].mxu0 %v4936_v6  ;;  %2110 = vmatprep.mubr.bf16.mxu1 %v7445_v19 }
 0x23f   : > { %2047 = vmatprep.mubr.bf16.mxu0 %v4937_v45  ;;  %v1659_v15 = vpop.permute.xlu0 %1658 }
 0x243   : > { %v1674_v20 = vpop.permute.xlu0 %1673 }
 0x245   : > { %4659 = vmatmul.mubr.msk.bf16.gmra.mrb[4].mxu1 %vm1836_vm13, %v4939_v4 }
 0x246   : > { %2048 = vmatmul.mubr.bf16.gmra.mrb[8].mxu0 %v4940_v46  ;;  %2120 = vmatprep.mubr.bf16.mxu1 %v7445_v19 }
 0x247   : > { %2057 = vmatprep.mubr.bf16.mxu0 %v4941_v9  ;;  %v1684_v24 = vpop.permute.xlu0 %1683 }
 0x249   : > { %v1664_v51 = vpop.permute.xlu1 %1663 }
 0x24d   : > { %4660 = vmatmul.mubr.msk.bf16.gmra.mrb[8].mxu1 %vm1836_vm13, %v4943_v49  ;;  %v1669_v21 = vpop.permute.xlu1 %1668 }
 0x24e   : > { %2058 = vmatmul.mubr.bf16.gmra.mrb[12].mxu0 %v4944_v29  ;;  %2130 = vmatprep.mubr.bf16.mxu1 %v7445_v19 }
 0x24f   : > { %2208 = vmatprep.mubr.bf16.mxu0 %v7445_v19 }
 0x251   : > { %v1679_v43 = vpop.permute.xlu1 %1678 }
 0x255   : > { %4661 = vmatmul.mubr.msk.bf16.gmra.mrb[12].mxu1 %vm1836_vm13, %v4945_v3 }
 0x309   : > { %v2029_v7 = vpop.f32.mrb[0].mxu0 }
 0x30a   : > { %v2031_v30 = vpop.f32.mrb[1].mxu0  ;;  %v4716_v40 = vadd.f32 %v2029_v7, %v1659_v15 }
 0x30b   : > { %v2033_v13 = vpop.f32.mrb[2].mxu0  ;;  %v4718_v10 = vadd.f32 %v2031_v30, %v1659_v15 }
 0x30c   : > { %v2035_v50 = vpop.f32.mrb[3].mxu0  ;;  %v4720_v52 = vadd.f32 %v2033_v13, %v1664_v51 }
 0x30d   : > { %v4722_v56 = vadd.f32 %v2035_v50, %v1664_v51 }
 0x310   : > { %v2102_v27 = vpop.f32.mrb[0].mxu1 }
 0x311   : > { %v4717_v53 = vadd.f32 %v4716_v40, %v2102_v27  ;;  %v2039_v16 = vpop.f32.mrb[4].mxu0  ;;  %v2104_v57 = vpop.f32.mrb[1].mxu1 }
 0x312   : > { %v4719_v47 = vadd.f32 %v4718_v10, %v2104_v57  ;;  %v2041_v58 = vpop.f32.mrb[5].mxu0  ;;  %v2106_v28 = vpop.f32.mrb[2].mxu1  ;;  %v4724_v2 = vadd.f32 %v2039_v16, %v1669_v21 }
 0x313   : > { %v4721_v48 = vadd.f32 %v4720_v52, %v2106_v28  ;;  %v2043_v54 = vpop.f32.mrb[6].mxu0  ;;  %v2108_v59 = vpop.f32.mrb[3].mxu1  ;;  %v2141_v55 = vmax.f32 %v4717_v53, 0.0  ;;  %v4726_v22 = vadd.f32 %v2041_v58, %v1669_v21 }
 0x314   : > { %v4723_v5 = vadd.f32 %v4722_v56, %v2108_v59  ;;  %v2045_v62 = vpop.f32.mrb[7].mxu0  ;;  %v2142_v18 = vmax.f32 %v4719_v47, 0.0  ;;  %v4728_v60 = vadd.f32 %v2043_v54, %v1674_v20  ;;  %v1689_v52 = vpop.permute.xlu1 %1688 }
 0x315   : > { %v2143_v61 = vmax.f32 %v4721_v48, 0.0  ;;  %v4730_v17 = vadd.f32 %v2045_v62, %v1674_v20  ;;  %v1694_v47 = vpop.permute.xlu0 %1693 }
 0x316   : > { %v2144_v31 = vmax.f32 %v4723_v5, 0.0 }
 0x317   : > { %v2159_v33 = vpack.c.bf16 %v2143_v61, %v2141_v55 }
 0x318   : > { %v2160_v0 = vpack.c.bf16 %v2144_v31, %v2142_v18  ;;  %v2112_v12 = vpop.f32.mrb[4].mxu1 }
 0x319   : > { %v4725_v32 = vadd.f32 %v4724_v2, %v2112_v12  ;;  %v2049_v34 = vpop.f32.mrb[8].mxu0  ;;  %v2114_v11 = vpop.f32.mrb[5].mxu1 }
 0x31a   : > { %v4727_v35 = vadd.f32 %v4726_v22, %v2114_v11  ;;  %v2051_v63 = vpop.f32.mrb[9].mxu0  ;;  %v2116_v38 = vpop.f32.mrb[6].mxu1  ;;  %2176 = vmatprep.subr.bf16.mxu0 %v2160_v0  ;;  %v4732_v44 = vadd.f32 %v2049_v34, %v1679_v43  ;;  %v4991_v34 = vld [vmem:[%s5155_s23] sm:$0xff] }
 0x31b   : > { %v4729_v8 = vadd.f32 %v4728_v60, %v2116_v38  ;;  %v2053_v36 = vpop.f32.mrb[10].mxu0  ;;  %v2118_v39 = vpop.f32.mrb[7].mxu1  ;;  %2177 = vmatpush1.bf16.msra.mxu0 %v2159_v33  ;;  %v2145_v41 = vmax.f32 %v4725_v32, 0.0  ;;  %v4734_v14 = vadd.f32 %v2051_v63, %v1679_v43  ;;  %v4946_v60 = vld [vmem:[%s7446_s6] sm:$0xff]   ;;  %s7466_s6 = smov 76  }
 0x31c   : > { %v4731_v37 = vadd.f32 %v4730_v17, %v2118_v39  ;;  %v2055_v1 = vpop.f32.mrb[11].mxu0  ;;  %v2146_v25 = vmax.f32 %v4727_v35, 0.0  ;;  %v4736_v4 = vadd.f32 %v2053_v36, %v1684_v24  ;;  %v4992_v35 = vld [vmem:[%s5155_s23 + $0x8] sm:$0xff] }
 0x31d   : > { %v2147_v26 = vmax.f32 %v4729_v8, 0.0  ;;  %v4738_v29 = vadd.f32 %v2055_v1, %v1684_v24  ;;  %v4993_v8 = vld [vmem:[%s5155_s23 + $0x10] sm:$0xff]  ;;  %v2233_v1 = vpop.permute.xlu0 %2232 }
 0x31e   : > { %v2148_v42 = vmax.f32 %v4731_v37, 0.0  ;;  %v2228_v37 = vpop.permute.xlu1 %2227 }
 0x31f   : > { %v2161_v23 = vpack.c.bf16 %v2147_v26, %v2145_v41  ;;  %v4994_v41 = vld [vmem:[%s5155_s23 + $0x18] sm:$0xff]  ;;  %s7460_s23 = smov 110  }
 0x320   : > { %v2162_v6 = vpack.c.bf16 %v2148_v42, %v2146_v25  ;;  %v2122_v45 = vpop.f32.mrb[8].mxu1 }
 0x321   : > { %v4733_v46 = vadd.f32 %v4732_v44, %v2122_v45  ;;  %v2059_v9 = vpop.f32.mrb[12].mxu0  ;;  %v2124_v49 = vpop.f32.mrb[9].mxu1  ;;  %v6143_v45 = vld [vmem:[%s7404_s2] ss:$8 sm:$0x7] }
 0x322   : > { %v4735_v3 = vadd.f32 %v4734_v14, %v2124_v49  ;;  %v2061_v7 = vpop.f32.mrb[13].mxu0  ;;  %v2126_v30 = vpop.f32.mrb[10].mxu1  ;;  %2178 = vmatprep.subr.bf16.mxu0 %v2162_v6  ;;  %v4740_v57 = vadd.f32 %v2059_v9, %v1689_v52  ;;  %v6133_v14 = vld [vmem:[%s7404_s2 + $0x2] ss:$8 sm:$0x7] }
 0x323   : > { %v4737_v13 = vadd.f32 %v4736_v4, %v2126_v30  ;;  %v2063_v15 = vpop.f32.mrb[14].mxu0  ;;  %v2128_v50 = vpop.f32.mrb[11].mxu1  ;;  %2179 = vmatpush1.bf16.msra.mxu0 %v2161_v23  ;;  %v2149_v10 = vmax.f32 %v4733_v46, 0.0  ;;  %v4742_v58 = vadd.f32 %v2061_v7, %v1689_v52  ;;  %v6138_v6 = vld [vmem:[%s7404_s2 + $0x1] ss:$8 sm:$0x7] }
 0x324   : > { %v4739_v51 = vadd.f32 %v4738_v29, %v2128_v50  ;;  %v2065_v40 = vpop.f32.mrb[15].mxu0  ;;  %v2150_v53 = vmax.f32 %v4735_v3, 0.0  ;;  %v4744_v54 = vadd.f32 %v2063_v15, %v1694_v47  ;;  %v6148_v4 = vld [vmem:[%s7404_s2 + $0x4] ss:$8 sm:$0x7]  ;;  %v7452_v29 = vld [vmem:[#allocation8_spill] sm:$0xff] }
 0x325   : > { %v2151_v27 = vmax.f32 %v4737_v13, 0.0  ;;  %v4746_v5 = vadd.f32 %v2065_v40, %v1694_v47  ;;  %v6153_v46 = vld [vmem:[%s7404_s2 + $0x3] ss:$8 sm:$0x7]  ;;  %v2268_v3 = vrot.slane %v6143_v45, %v7452_v29  ;;  %v2312_v7 = vrot.slane %v6138_v6, %v7452_v29 }
 0x326   : > { %v2152_v16 = vmax.f32 %v4739_v51, 0.0  ;;  %v6158_v9 = vld [vmem:[%s7404_s2 + $0x6] ss:$8 sm:$0x7]  ;;  %v2356_v30 = vrot.slane %v6133_v14, %v7452_v29  ;;  %v2400_v13 = vrot.slane %v6153_v46, %v7452_v29  ;;  %v2444_v15 = vrot.slane %v6148_v4, %v7452_v29 }
 0x327   : > { %v2163_v56 = vpack.c.bf16 %v2151_v27, %v2149_v10  ;;  %v6163_v49 = vld [vmem:[%s7404_s2 + $0x5] ss:$8 sm:$0x7]  ;;  %v2532_v51 = vrot.slane %v6158_v9, %v7452_v29  ;;  %v2277_v40 = vpack.c.bf16 %v2268_v3, %v2268_v3  ;;  %v2321_v10 = vpack.c.bf16 %v2312_v7, %v2312_v7  ;;  %s7465_s2 = smov 77  }
 0x328   : > { %v2164_v28 = vpack.c.bf16 %v2152_v16, %v2150_v53  ;;  %v2132_v48 = vpop.f32.mrb[12].mxu1  ;;  %v2488_v50 = vrot.slane %v6163_v49, %v7452_v29  ;;  %v2365_v27 = vpack.c.bf16 %v2356_v30, %v2356_v30  ;;  %v2409_v52 = vpack.c.bf16 %v2400_v13, %v2400_v13 }
 0x329   : > { %v4741_v59 = vadd.f32 %v4740_v57, %v2132_v48  ;;  %v2134_v21 = vpop.f32.mrb[13].mxu1  ;;  %v2453_v53 = vpack.c.bf16 %v2444_v15, %v2444_v15  ;;  %v2541_v57 = vpack.c.bf16 %v2532_v51, %v2532_v51 }
 0x32a   : > { %v4743_v62 = vadd.f32 %v4742_v58, %v2134_v21  ;;  %v2136_v55 = vpop.f32.mrb[14].mxu1  ;;  %2180 = vmatprep.subr.bf16.mxu0 %v2164_v28  ;;  %v2497_v16 = vpack.c.bf16 %v2488_v50, %v2488_v50  ;;  %v2375_v21 = vpack.i.b16 %v2365_v27, %v2365_v27 }
 0x32b   : > { %v4745_v61 = vadd.f32 %v4744_v54, %v2136_v55  ;;  %v2138_v18 = vpop.f32.mrb[15].mxu1  ;;  %2181 = vmatpush1.bf16.msra.mxu0 %v2163_v56  ;;  %v2153_v2 = vmax.f32 %v4741_v59, 0.0  ;;  %v7453_v56 = vld [vmem:[#allocation9_spill] sm:$0xff]  ;;  %v2287_v54 = vpack.i.b16 %v2277_v40, %v2277_v40  ;;  %v2331_v59 = vpack.i.b16 %v2321_v10, %v2321_v10 }
 0x32c   : > { %v4747_v31 = vadd.f32 %v4746_v5, %v2138_v18  ;;  %v2154_v20 = vmax.f32 %v4743_v62, 0.0  ;;  %v2352_v47 = vrot.slane %v6133_v14, %v7453_v56  ;;  %v2308_v58 = vrot.slane %v6138_v6, %v7453_v56 }
 0x32d   : > { %v2155_v33 = vmax.f32 %v4745_v61, 0.0  ;;  %v2264_v28 = vrot.slane %v6143_v45, %v7453_v56  ;;  %v2440_v48 = vrot.slane %v6148_v4, %v7453_v56  ;;  %v2419_v5 = vpack.i.b16 %v2409_v52, %v2409_v52 }
 0x32e   : > { %v2156_v22 = vmax.f32 %v4747_v31, 0.0  ;;  %v2396_v62 = vrot.slane %v6153_v46, %v7453_v56  ;;  %v2463_v55 = vpack.i.b16 %v2453_v53, %v2453_v53  ;;  %v2507_v61 = vpack.i.b16 %v2497_v16, %v2497_v16 }
 0x32f   : > { %v2165_v0 = vpack.c.bf16 %v2155_v33, %v2153_v2  ;;  %v2551_v18 = vpack.i.b16 %v2541_v57, %v2541_v57  ;;  %v2364_v31 = vpack.c.bf16 %v2352_v47, %v2352_v47  ;;  %v2320_v2 = vpack.c.bf16 %v2308_v58, %v2308_v58 }
 0x330   : > { %v2166_v12 = vpack.c.bf16 %v2156_v22, %v2154_v20  ;;  %v2276_v33 = vpack.c.bf16 %v2264_v28, %v2264_v28  ;;  %v2452_v20 = vpack.c.bf16 %v2440_v48, %v2440_v48  ;;  %v2528_v22 = vrot.slane %v6158_v9, %v7453_v56 }
 0x332   : > { %2182 = vmatprep.subr.bf16.mxu0 %v2166_v12  ;;  %v2336_v12 = vrot.slane %v2331_v59, %v7453_v56 }
 0x333   : > { %2183 = vmatpush1.bf16.msra.mxu0 %v2165_v0  ;;  %v2292_v0 = vrot.slane %v2287_v54, %v7453_v56 }
 0x336   : > { %4663 = vmatmul.mubr.msk.bf16.vlgmr.msra.gmra.mrb[16].mxu0 %vm1251_vm14, %v4946_v60  ;;  %v2380_v60 = vrot.slane %v2375_v21, %v7453_v56 }
 0x337   : > { %3854 = vmatprep.mubr.bf16.mxu0 %v7445_v19 }
 0x409   : > { %v2210_v32 = vpop.f32.mrb[16].mxu0 }
 0x40a   : > { %v2219_v11 = vadd.f32 %v4991_v34, %v2210_v32  ;;  %v2212_v17 = vpop.f32.mrb[17].mxu0  ;;  %v2424_v32 = vrot.slane %v2419_v5, %v7453_v56 }
 0x40b   : > { %v2220_v63 = vadd.f32 %v4992_v35, %v2212_v17  ;;  %v2214_v38 = vpop.f32.mrb[18].mxu0  ;;  %v2468_v17 = vrot.slane %v2463_v55, %v7453_v56  ;;  %v2512_v35 = vrot.slane %v2507_v61, %v7453_v56  ;;  %v7461_v61 = vld [vmem:[#allocation10_spill] sm:$0xff] }
 0x40c   : > { %v2221_v36 = vadd.f32 %v4993_v8, %v2214_v38  ;;  %v2216_v39 = vpop.f32.mrb[19].mxu0  ;;  %v6116_v43 = vadd.f32 %v2228_v37, %v2219_v11  ;;  %v2408_v11 = vpack.c.bf16 %v2396_v62, %v2396_v62  ;;  %v2368_v8 = vpack.i.b16 %v2364_v31, %v2364_v31 }
 0x40d   : > { %v2222_v26 = vadd.f32 %v4994_v41, %v2216_v39  ;;  %v6120_v42 = vadd.f32 %v2228_v37, %v2220_v63  ;;  %v2556_v63 = vrot.slane %v2551_v18, %v7453_v56  ;;  %v2280_v39 = vpack.i.b16 %v2276_v33, %v2276_v33 }
 0x40e   : > { %7447 = vst [vmem:[#allocation11_spill] sm:$0xff] %v6116_v43  ;;  %v6118_v25 = vadd.f32 %v2233_v1, %v2221_v36  ;;  %v2324_v36 = vpack.i.b16 %v2320_v2, %v2320_v2  ;;  %v2484_v37 = vrot.slane %v6163_v49, %v7453_v56  ;;  %v2456_v41 = vpack.i.b16 %v2452_v20, %v2452_v20 }
 0x40f   : > { %7449 = vst [vmem:[#allocation12_spill] sm:$0xff] %v6120_v42  ;;  %v6122_v44 = vadd.f32 %v2233_v1, %v2222_v26  ;;  %v2540_v26 = vpack.c.bf16 %v2528_v22, %v2528_v22  ;;  %v2412_v30 = vpack.i.b16 %v2408_v11, %v2408_v11  ;;  %v2373_v51 = vrot.slane %v2368_v8, %v7453_v56 }
 0x410   : > { %7448 = vst [vmem:[#allocation13_spill] sm:$0xff] %v6118_v25  ;;  %v2241_v23 = vpack.c.bf16 %v6118_v25, %v6116_v43  ;;  %v2329_v40 = vrot.slane %v2324_v36, %v7453_v56  ;;  %v2285_v10 = vrot.slane %v2280_v39, %v7453_v56  ;;  %v2496_v27 = vpack.c.bf16 %v2484_v37, %v2484_v37 }
 0x411   : > { %7450 = vst [vmem:[#allocation14_spill] sm:$0xff] %v6122_v44  ;;  %v2242_v24 = vpack.c.bf16 %v6122_v44, %v6120_v42  ;;  %v2461_v53 = vrot.slane %v2456_v41, %v7453_v56  ;;  %v2417_v16 = vrot.slane %v2412_v30, %v7453_v56  ;;  %v2544_v57 = vpack.i.b16 %v2540_v26, %v2540_v26 }
 0x412   : > { %2245 = vrot.lane.b32.xlu1 %v2241_v23, %s7451_s10  ;;  %v2500_v48 = vpack.i.b16 %v2496_v27, %v2496_v27  ;;  %v2316_v18 = vrot.slane %v6138_v6, %v7461_v61  ;;  %v2404_v2 = vrot.slane %v6153_v46, %v7461_v61  ;;  %v2360_v33 = vrot.slane %v6133_v14, %v7461_v61 }
 0x413   : > { %2247 = vrot.lane.b32.xlu0 %v2242_v24, %s7451_s10  ;;  %v2549_v21 = vrot.slane %v2544_v57, %v7453_v56  ;;  %s7459_s10 = smov 112   ;;  %v2492_v6 = vrot.slane %v6163_v49, %v7461_v61  ;;  %v2448_v20 = vrot.slane %v6148_v4, %v7461_v61  ;;  %v2536_v4 = vrot.slane %v6158_v9, %v7461_v61 }
 0x414   : > { %v2505_v5 = vrot.slane %v2500_v48, %v7453_v56  ;;  %v2322_v31 = vpack.c.bf16 %v2316_v18, %v2316_v18 }
 0x415   : > { %v2498_v14 = vpack.c.bf16 %v2492_v6, %v2492_v6  ;;  %v2454_v46 = vpack.c.bf16 %v2448_v20, %v2448_v20  ;;  %v2542_v36 = vpack.c.bf16 %v2536_v4, %v2536_v4 }
 0x416   : > { %v2338_v22 = vpack.i.b16 %v2322_v31, %v2322_v31 }
 0x417   : > { %v2558_v26 = vpack.i.b16 %v2542_v36, %v2542_v36 }
 0x484   : > { %v2246_v34 = vpop.permute.xlu1 %2245 }
 0x485   : > { %2253 = vst.msk [vmem:[#allocation3] sm:$0xff] %vm550_vm2, %v2246_v34  ;;  %v2248_v38 = vpop.permute.xlu0 %2247 }
 0x486   : > { %v2249_v1 = vsel %vm533_vm0, %v2246_v34, %v2248_v38  ;;  %2255 = vst.msk [vmem:[#allocation3 + $0x10] sm:$0xff] %vm533_vm0, %v2248_v38  ;;  %vm7495_vm0 = vcmask 891904  }
 0x487   : > { %v6203_v23 = vmul.bf16 %v2292_v0, %v2249_v1  ;;  %v6205_v24 = vmul.bf16 %v2336_v12, %v2249_v1  ;;  %v6207_v3 = vmul.bf16 %v2380_v60, %v2249_v1  ;;  %v6209_v7 = vmul.bf16 %v2424_v32, %v2249_v1  ;;  %vm7496_vm2 = vmmov %vm7495_vm0 }
 0x488   : > { %v6211_v13 = vmul.bf16 %v2468_v17, %v2249_v1  ;;  %v6213_v15 = vmul.bf16 %v2512_v35, %v2249_v1  ;;  %v6215_v50 = vmul.bf16 %v2556_v63, %v2249_v1  ;;  %v2410_v0 = vpack.c.bf16 %v2404_v2, %v2404_v2 }
 0x489   : > { %3496 = vmatprep.subr.bf16.mxu1 %v6203_v23  ;;  %v2366_v12 = vpack.c.bf16 %v2360_v33, %v2360_v33  ;;  %v2272_v60 = vrot.slane %v6143_v45, %v7461_v61  ;;  %v2343_v32 = vrot.slane %v2338_v22, %v7453_v56  ;;  %v2514_v17 = vpack.i.b16 %v2498_v14, %v2498_v14 }
 0x48a   : > { %v2426_v49 = vpack.i.b16 %v2410_v0, %v2410_v0  ;;  %v2470_v35 = vpack.i.b16 %v2454_v46, %v2454_v46 }
 0x48b   : > { %v2382_v34 = vpack.i.b16 %v2366_v12, %v2366_v12  ;;  %v2278_v63 = vpack.c.bf16 %v2272_v60, %v2272_v60  ;;  %v2519_v9 = vrot.slane %v2514_v17, %v7453_v56  ;;  %v4949_v12 = vld [vmem:[%s7219_s8 + $0x4] ss:$28 sps:$4 sm:$0xff]  }
 0x48c   : > { %v2256_v52 = vld [vmem:[#allocation3] sm:$0xff]  ;;  %v2431_v45 = vrot.slane %v2426_v49, %v7453_v56  ;;  %v2475_v39 = vrot.slane %v2470_v35, %v7453_v56  ;;  %3528 = vmatprep.mubr.bf16.mxu1 %v4949_v12 }
 0x48d   : > { %v6223_v47 = vmul.bf16 %v2373_v51, %v2256_v52  ;;  %v6225_v58 = vmul.bf16 %v2329_v40, %v2256_v52  ;;  %v6227_v28 = vmul.bf16 %v2285_v10, %v2256_v52  ;;  %v6234_v54 = vmul.bf16 %v2461_v53, %v2256_v52  ;;  %v2258_v11 = vld [vmem:[#allocation3 + $0x10] sm:$0xff] }
 0x48e   : > { %v6236_v59 = vmul.bf16 %v2417_v16, %v2256_v52  ;;  %v6244_v62 = vmul.bf16 %v2549_v21, %v2256_v52  ;;  %v6246_v55 = vmul.bf16 %v2505_v5, %v2256_v52  ;;  %v6299_v38 = vmul.bf16 %v2343_v32, %v2258_v11 }
 0x48f   : > { %2587 = vrot.lane.b32.xlu0 %v6223_v47, %s7454_s4  ;;  %2572 = vrot.lane.b32.xlu1 %v6225_v58, %s7455_s1  ;;  %v2387_v8 = vrot.slane %v2382_v34, %v7453_v56  ;;  %v6309_v37 = vmul.bf16 %v2431_v45, %v2258_v11  ;;  %v2294_v41 = vpack.i.b16 %v2278_v63, %v2278_v63 }
 0x490   : > { %3497 = vmatpush1.bf16.msra.mxu1 %v6227_v28  ;;  %v6317_v30 = vmul.bf16 %v2519_v9, %v2258_v11  ;;  %v6319_v51 = vmul.bf16 %v2475_v39, %v2258_v11  ;;  %v2563_v10 = vrot.slane %v2558_v26, %v7453_v56 }
 0x491   : > { %v6311_v1 = vmul.bf16 %v2387_v8, %v2258_v11  ;;  %v2299_v40 = vrot.slane %v2294_v41, %v7453_v56 }
 0x492   : > { %v6329_v52 = vmul.bf16 %v2563_v10, %v2258_v11 }
 0x493   : > { %2617 = vrot.lane.b32.xlu0 %v6234_v54, %s7456_s13  ;;  %2602 = vrot.lane.b32.xlu1 %v6236_v59, %s7457_s3  ;;  %v6327_v27 = vmul.bf16 %v2299_v40, %v2258_v11 }
 0x497   : > { %2647 = vrot.lane.b32.xlu0 %v6244_v62, %s7408_s24  ;;  %2632 = vrot.lane.b32.xlu1 %v6246_v55, %s7458_s19 }
 0x49b   : > { %2674 = vrot.lane.b32.xlu0 %v6225_v58, %s7410_s17  ;;  %2662 = vrot.lane.b32.xlu1 %v6227_v28, %s7459_s10 }
 0x49f   : > { %2698 = vrot.lane.b32.xlu0 %v6236_v59, %s7412_s29  ;;  %2686 = vrot.lane.b32.xlu1 %v6223_v47, %s7460_s23 }
 0x4a3   : > { %2722 = vrot.lane.b32.xlu0 %v6246_v55, %s7414_s25  ;;  %2710 = vrot.lane.b32.xlu1 %v6234_v54, %s7409_s30 }
 0x4a7   : > { %2746 = vrot.lane.b32.xlu0 %v6227_v28, %s7416_s26  ;;  %2734 = vrot.lane.b32.xlu1 %v6244_v62, %s7411_s28 }
 0x4ab   : > { %2770 = vrot.lane.b32.xlu0 %v6223_v47, %s7417_s22  ;;  %2758 = vrot.lane.b32.xlu1 %v6225_v58, %s7413_s21 }
 0x4af   : > { %2794 = vrot.lane.b32.xlu0 %v6234_v54, %s7418_s0  ;;  %2782 = vrot.lane.b32.xlu1 %v6236_v59, %s7415_s16 }
 0x4b3   : > { %2818 = vrot.lane.b32.xlu0 %v6244_v62, %s7419_s20  ;;  %2806 = vrot.lane.b32.xlu1 %v6246_v55, %s7462_s14 }
 0x4b7   : > { %2842 = vrot.lane.b32.xlu0 %v6225_v58, %s7420_s27  ;;  %2830 = vrot.lane.b32.xlu1 %v6227_v28, %s7463_s5 }
 0x4bb   : > { %2576 = vrot.lane.b32.xlu0 %v6299_v38, %s7455_s1  ;;  %2854 = vrot.lane.b32.xlu1 %v6223_v47, %s7464_s7 }
 0x4bf   : > { %2606 = vrot.lane.b32.xlu0 %v6309_v37, %s7457_s3  ;;  %2591 = vrot.lane.b32.xlu1 %v6311_v1, %s7454_s4 }
 0x4c3   : > { %2636 = vrot.lane.b32.xlu0 %v6317_v30, %s7458_s19  ;;  %2621 = vrot.lane.b32.xlu1 %v6319_v51, %s7456_s13 }
 0x4c7   : > { %2666 = vrot.lane.b32.xlu0 %v6327_v27, %s7459_s10  ;;  %2651 = vrot.lane.b32.xlu1 %v6329_v52, %s7408_s24 }
 0x4cb   : > { %2690 = vrot.lane.b32.xlu0 %v6311_v1, %s7460_s23  ;;  %2678 = vrot.lane.b32.xlu1 %v6299_v38, %s7410_s17 }
 0x4cf   : > { %2714 = vrot.lane.b32.xlu0 %v6319_v51, %s7409_s30  ;;  %2702 = vrot.lane.b32.xlu1 %v6309_v37, %s7412_s29 }
 0x4d3   : > { %2738 = vrot.lane.b32.xlu0 %v6329_v52, %s7411_s28  ;;  %2726 = vrot.lane.b32.xlu1 %v6317_v30, %s7414_s25 }
 0x4d7   : > { %2762 = vrot.lane.b32.xlu0 %v6299_v38, %s7413_s21  ;;  %2750 = vrot.lane.b32.xlu1 %v6327_v27, %s7416_s26 }
 0x4db   : > { %2786 = vrot.lane.b32.xlu0 %v6309_v37, %s7415_s16  ;;  %2774 = vrot.lane.b32.xlu1 %v6311_v1, %s7417_s22 }
 0x4df   : > { %2810 = vrot.lane.b32.xlu0 %v6317_v30, %s7462_s14  ;;  %2798 = vrot.lane.b32.xlu1 %v6319_v51, %s7418_s0 }
 0x4e3   : > { %2834 = vrot.lane.b32.xlu0 %v6327_v27, %s7463_s5  ;;  %2822 = vrot.lane.b32.xlu1 %v6329_v52, %s7419_s20 }
 0x4e7   : > { %2858 = vrot.lane.b32.xlu0 %v6311_v1, %s7464_s7  ;;  %2846 = vrot.lane.b32.xlu1 %v6299_v38, %s7420_s27 }
 0x4eb   : > { %2866 = vrot.lane.b32.xlu0 %v6236_v59, %s7465_s2  ;;  %2574 = vrot.lane.b32.xlu1 %v6205_v24, %s7455_s1 }
 0x4ef   : > { %2589 = vrot.lane.b32.xlu0 %v6207_v3, %s7454_s4  ;;  %2870 = vrot.lane.b32.xlu1 %v6309_v37, %s7465_s2 }
 0x4f3   : > { %2882 = vrot.lane.b32.xlu0 %v6319_v51, %s7466_s6  ;;  %2604 = vrot.lane.b32.xlu1 %v6209_v7, %s7457_s3  ;;  %s7470_s3 = smov 63  }
 0x4f7   : > { %2619 = vrot.lane.b32.xlu0 %v6211_v13, %s7456_s13  ;;  %2878 = vrot.lane.b32.xlu1 %v6234_v54, %s7466_s6  ;;  %s7468_s13 = smov 74  }
 0x4fb   : > { %2890 = vrot.lane.b32.xlu0 %v6246_v55, %s7467_s11  ;;  %2634 = vrot.lane.b32.xlu1 %v6213_v15, %s7458_s19  ;;  %s7592_s19 = sld [smem:[#allocation36_spill]] }
 0x4ff   : > { %2649 = vrot.lane.b32.xlu0 %v6215_v50, %s7408_s24  ;;  %2894 = vrot.lane.b32.xlu1 %v6317_v30, %s7467_s11  ;;  %s7469_s24 = smov 64  }
 0x501   : > { %v6391_v53 = vpop.permute.xlu0 %2587  ;;  %v6393_v16 = vpop.permute.xlu1 %2572 }
 0x503   : > { %2906 = vrot.lane.b32.xlu0 %v6329_v52, %s7468_s13  ;;  %2664 = vrot.lane.b32.xlu1 %v6203_v23, %s7459_s10 }
 0x505   : > { %v6399_v57 = vpop.permute.xlu0 %2617  ;;  %v6401_v48 = vpop.permute.xlu1 %2602 }
 0x507   : > { %2676 = vrot.lane.b32.xlu0 %v6205_v24, %s7410_s17  ;;  %2902 = vrot.lane.b32.xlu1 %v6244_v62, %s7468_s13 }
 0x509   : > { %v6407_v21 = vpop.permute.xlu0 %2647  ;;  %v6409_v5 = vpop.permute.xlu1 %2632 }
 0x50b   : > { %2914 = vrot.lane.b32.xlu0 %v6227_v28, %s7469_s24  ;;  %2688 = vrot.lane.b32.xlu1 %v6207_v3, %s7460_s23  ;;  %s7471_s23 = smov 62  }
 0x50d   : > { %v6415_v18 = vpop.permute.xlu0 %2674  ;;  %v6417_v31 = vpop.permute.xlu1 %2662 }
 0x50f   : > { %2700 = vrot.lane.b32.xlu0 %v6209_v7, %s7412_s29  ;;  %2918 = vrot.lane.b32.xlu1 %v6327_v27, %s7469_s24 }
 0x511   : > { %v6423_v2 = vpop.permute.xlu0 %2698  ;;  %v6425_v33 = vpop.permute.xlu1 %2686 }
 0x513   : > { %2930 = vrot.lane.b32.xlu0 %v6299_v38, %s7470_s3  ;;  %2712 = vrot.lane.b32.xlu1 %v6211_v13, %s7409_s30  ;;  %s7472_s30 = smov 61  }
 0x515   : > { %v6431_v6 = vpop.permute.xlu0 %2722  ;;  %v6433_v20 = vpop.permute.xlu1 %2710 }
 0x517   : > { %2724 = vrot.lane.b32.xlu0 %v6213_v15, %s7414_s25  ;;  %2926 = vrot.lane.b32.xlu1 %v6225_v58, %s7470_s3  ;;  %s7479_s25 = smov 59  }
 0x519   : > { %v6439_v22 = vpop.permute.xlu0 %2746  ;;  %v6441_v0 = vpop.permute.xlu1 %2734 }
 0x51b   : > { %2938 = vrot.lane.b32.xlu0 %v6223_v47, %s7471_s23  ;;  %2736 = vrot.lane.b32.xlu1 %v6215_v50, %s7411_s28  ;;  %s7477_s28 = smov 60  }
 0x51d   : > { %v6450_v14 = vpop.permute.xlu0 %2770  ;;  %v6452_v46 = vpop.permute.xlu1 %2758 }
 0x51f   : > { %2748 = vrot.lane.b32.xlu0 %v6203_v23, %s7416_s26  ;;  %2942 = vrot.lane.b32.xlu1 %v6311_v1, %s7471_s23 }
 0x521   : > { %v6458_v60 = vpop.permute.xlu0 %2794  ;;  %v6460_v32 = vpop.permute.xlu1 %2782 }
 0x523   : > { %2954 = vrot.lane.b32.xlu0 %v6309_v37, %s7472_s30  ;;  %2760 = vrot.lane.b32.xlu1 %v6205_v24, %s7413_s21 }
 0x525   : > { %v6466_v49 = vpop.permute.xlu0 %2818  ;;  %v6468_v34 = vpop.permute.xlu1 %2806 }
 0x526   : > { %7473 = vst [vmem:[#allocation15_spill] sm:$0xff] %v6466_v49  ;;  %7474 = vst [vmem:[#allocation17_spill] sm:$0xff] %v6468_v34 }
 0x527   : > { %2772 = vrot.lane.b32.xlu0 %v6207_v3, %s7417_s22  ;;  %2950 = vrot.lane.b32.xlu1 %v6236_v59, %s7472_s30 }
 0x529   : > { %v6474_v4 = vpop.permute.xlu0 %2842  ;;  %v6476_v11 = vpop.permute.xlu1 %2830 }
 0x52a   : > { %7475 = vst [vmem:[#allocation16_spill] sm:$0xff] %v6474_v4  ;;  %7476 = vst [vmem:[#allocation18_spill] sm:$0xff] %v6476_v11 }
 0x52b   : > { %2962 = vrot.lane.b32.xlu0 %v6234_v54, %s7477_s28  ;;  %2784 = vrot.lane.b32.xlu1 %v6209_v7, %s7415_s16  ;;  %s7481_s16 = smov 48  }
 0x52d   : > { %v2577_v17 = vpop.permute.xlu0 %2576  ;;  %v6482_v35 = vpop.permute.xlu1 %2854 }
 0x52e   : > { %7478 = vst [vmem:[#allocation19_spill] sm:$0xff] %v6482_v35 }
 0x52f   : > { %2796 = vrot.lane.b32.xlu0 %v6211_v13, %s7418_s0  ;;  %2966 = vrot.lane.b32.xlu1 %v6319_v51, %s7477_s28  ;;  %s7480_s0 = smov 58  }
 0x531   : > { %v6488_v63 = vpop.permute.xlu0 %2606  ;;  %v2592_v45 = vpop.permute.xlu1 %2591 }
 0x533   : > { %2978 = vrot.lane.b32.xlu0 %v6317_v30, %s7479_s25  ;;  %2808 = vrot.lane.b32.xlu1 %v6213_v15, %s7462_s14  ;;  %s7494_s14 = smov 32  }
 0x535   : > { %v6494_v8 = vpop.permute.xlu0 %2636  ;;  %v6496_v36 = vpop.permute.xlu1 %2621 }
 0x537   : > { %2820 = vrot.lane.b32.xlu0 %v6215_v50, %s7419_s20  ;;  %2974 = vrot.lane.b32.xlu1 %v6246_v55, %s7479_s25  ;;  %s7482_s20 = smov 47  }
 0x539   : > { %v6502_v9 = vpop.permute.xlu0 %2666  ;;  %v6504_v39 = vpop.permute.xlu1 %2651 }
 0x53b   : > { %2986 = vrot.lane.b32.xlu0 %v6244_v62, %s7480_s0  ;;  %2832 = vrot.lane.b32.xlu1 %v6203_v23, %s7463_s5  ;;  %s7497_s5 = smov 31  }
 0x53d   : > { %v6510_v41 = vpop.permute.xlu0 %2690  ;;  %v6512_v26 = vpop.permute.xlu1 %2678 }
 0x53f   : > { %2844 = vrot.lane.b32.xlu0 %v6205_v24, %s7420_s27  ;;  %2990 = vrot.lane.b32.xlu1 %v6329_v52, %s7480_s0  ;;  %s7492_s27 = smov 43  }
 0x541   : > { %v6518_v40 = vpop.permute.xlu0 %2714  ;;  %v6520_v10 = vpop.permute.xlu1 %2702 }
 0x543   : > { %3002 = vrot.lane.b32.xlu0 %v6327_v27, %s7481_s16  ;;  %2856 = vrot.lane.b32.xlu1 %v6207_v3, %s7464_s7  ;;  %s7506_s7 = smov 29  }
 0x545   : > { %v6526_v12 = vpop.permute.xlu0 %2738  ;;  %v6528_v61 = vpop.permute.xlu1 %2726 }
 0x547   : > { %2868 = vrot.lane.b32.xlu0 %v6209_v7, %s7465_s2  ;;  %2998 = vrot.lane.b32.xlu1 %v6227_v28, %s7481_s16  ;;  %s7484_s2 = smov 46  }
 0x549   : > { %v6534_v56 = vpop.permute.xlu0 %2762  ;;  %v6536_v29 = vpop.permute.xlu1 %2750 }
 0x54b   : > { %3010 = vrot.lane.b32.xlu0 %v6225_v58, %s7482_s20  ;;  %2880 = vrot.lane.b32.xlu1 %v6211_v13, %s7466_s6  ;;  %s7489_s6 = smov 45  }
 0x54d   : > { %v6542_v44 = vpop.permute.xlu0 %2786  ;;  %v6544_v25 = vpop.permute.xlu1 %2774 }
 0x54f   : > { %2892 = vrot.lane.b32.xlu0 %v6213_v15, %s7467_s11  ;;  %3014 = vrot.lane.b32.xlu1 %v6299_v38, %s7482_s20  ;;  %s7491_s11 = smov 44  }
 0x551   : > { %v6550_v42 = vpop.permute.xlu0 %2810  ;;  %v6552_v43 = vpop.permute.xlu1 %2798 }
 0x552   : > { %7483 = vst [vmem:[#allocation20_spill] sm:$0xff] %v6550_v42 }
 0x553   : > { %3026 = vrot.lane.b32.xlu0 %v6311_v1, %s7484_s2  ;;  %2904 = vrot.lane.b32.xlu1 %v6215_v50, %s7468_s13 }
 0x555   : > { %v6558_v19 = vpop.permute.xlu0 %2834  ;;  %v6560_v35 = vpop.permute.xlu1 %2822 }
 0x556   : > { %7485 = vst [vmem:[#allocation21_spill] sm:$0xff] %v6558_v19  ;;  %7486 = vst [vmem:[#allocation22_spill] sm:$0xff] %v6560_v35 }
 0x557   : > { %2916 = vrot.lane.b32.xlu0 %v6203_v23, %s7469_s24  ;;  %3022 = vrot.lane.b32.xlu1 %v6223_v47, %s7484_s2  ;;  %s7590_s24 = smov 110  }
 0x559   : > { %v6566_v4 = vpop.permute.xlu0 %2858  ;;  %v6568_v11 = vpop.permute.xlu1 %2846 }
 0x55a   : > { %7487 = vst [vmem:[#allocation23_spill] sm:$0xff] %v6566_v4  ;;  %7488 = vst [vmem:[#allocation24_spill] sm:$0xff] %v6568_v11 }
 0x55b   : > { %3034 = vrot.lane.b32.xlu0 %v6236_v59, %s7489_s6  ;;  %2928 = vrot.lane.b32.xlu1 %v6205_v24, %s7470_s3  ;;  %s7591_s3 = sld [smem:[#allocation6_spill]] }
 0x55d   : > { %v6574_v49 = vpop.permute.xlu0 %2866  ;;  %v2575_v19 = vpop.permute.xlu1 %2574 }
 0x55e   : > { %7490 = vst [vmem:[#allocation25_spill] sm:$0xff] %v6574_v49  ;;  %v2579_v35 = vsel %vm882_vm3, %v2575_v19, %v2577_v17  ;;  %v2578_v34 = vsel %vm882_vm3, %v6393_v16, %v2575_v19 }
 0x55f   : > { %2940 = vrot.lane.b32.xlu0 %v6207_v3, %s7471_s23  ;;  %3038 = vrot.lane.b32.xlu1 %v6309_v37, %s7489_s6  ;;  %s7493_s23 = smov 42  }
 0x560   : > { %3498 = vmatprep.subr.bf16.mxu1 %v2579_v35 }
 0x561   : > { %3499 = vmatpush1.bf16.msra.mxu1 %v2578_v34  ;;  %v2590_v4 = vpop.permute.xlu0 %2589  ;;  %v6583_v11 = vpop.permute.xlu1 %2870 }
 0x562   : > { %v2594_v42 = vsel %vm898_vm4, %v2590_v4, %v2592_v45  ;;  %v2593_v49 = vsel %vm898_vm4, %v6391_v53, %v2590_v4 }
 0x563   : > { %3050 = vrot.lane.b32.xlu0 %v6319_v51, %s7491_s11  ;;  %2952 = vrot.lane.b32.xlu1 %v6209_v7, %s7472_s30 }
 0x564   : > { %3500 = vmatprep.subr.bf16.mxu1 %v2594_v42 }
 0x565   : > { %3501 = vmatpush1.bf16.msra.mxu1 %v2593_v49  ;;  %v6592_v19 = vpop.permute.xlu0 %2882  ;;  %v2605_v16 = vpop.permute.xlu1 %2604 }
 0x566   : > { %v2609_v34 = vsel %vm914_vm5, %v2605_v16, %v6488_v63  ;;  %v2608_v17 = vsel %vm914_vm5, %v6401_v48, %v2605_v16  ;;  %vm7498_vm5 = vcmask 883712  }
 0x567   : > { %2964 = vrot.lane.b32.xlu0 %v6211_v13, %s7477_s28  ;;  %3046 = vrot.lane.b32.xlu1 %v6234_v54, %s7491_s11  ;;  %s7610_s28 = sld [smem:[#allocation39_spill]] }
 0x568   : > { %3502 = vmatprep.subr.bf16.mxu1 %v2609_v34 }
 0x569   : > { %3503 = vmatpush1.bf16.msra.mxu1 %v2608_v17  ;;  %v2620_v53 = vpop.permute.xlu0 %2619  ;;  %v6602_v42 = vpop.permute.xlu1 %2878 }
 0x56a   : > { %v2624_v49 = vsel %vm930_vm6, %v2620_v53, %v6496_v36  ;;  %v2623_v4 = vsel %vm930_vm6, %v6399_v57, %v2620_v53  ;;  %vm7499_vm6 = vmmov %vm7498_vm5 }
 0x56b   : > { %3058 = vrot.lane.b32.xlu0 %v6246_v55, %s7492_s27  ;;  %2976 = vrot.lane.b32.xlu1 %v6213_v15, %s7479_s25 }
 0x56c   : > { %3504 = vmatprep.subr.bf16.mxu1 %v2624_v49 }
 0x56d   : > { %3505 = vmatpush1.bf16.msra.mxu1 %v2623_v4  ;;  %v6612_v48 = vpop.permute.xlu0 %2890  ;;  %v2635_v35 = vpop.permute.xlu1 %2634 }
 0x56e   : > { %v2639_v63 = vsel %vm946_vm7, %v2635_v35, %v6494_v8  ;;  %v2638_v45 = vsel %vm946_vm7, %v6409_v5, %v2635_v35  ;;  %vm7500_vm7 = vcmask 875520  }
 0x56f   : > { %2988 = vrot.lane.b32.xlu0 %v6215_v50, %s7480_s0  ;;  %3062 = vrot.lane.b32.xlu1 %v6317_v30, %s7492_s27 }
 0x570   : > { %3506 = vmatprep.subr.bf16.mxu1 %v2639_v63 }
 0x571   : > { %3507 = vmatpush1.bf16.msra.mxu1 %v2638_v45  ;;  %v2650_v57 = vpop.permute.xlu0 %2649  ;;  %v6622_v36 = vpop.permute.xlu1 %2894 }
 0x572   : > { %v2654_v16 = vsel %vm962_vm8, %v2650_v57, %v6504_v39  ;;  %v2653_v8 = vsel %vm962_vm8, %v6407_v21, %v2650_v57  ;;  %vm7501_vm8 = vmmov %vm7500_vm7 }
 0x573   : > { %3074 = vrot.lane.b32.xlu0 %v6329_v52, %s7493_s23  ;;  %3000 = vrot.lane.b32.xlu1 %v6203_v23, %s7481_s16 }
 0x574   : > { %3508 = vmatprep.subr.bf16.mxu1 %v2654_v16 }
 0x575   : > { %3509 = vmatpush1.bf16.msra.mxu1 %v2653_v8  ;;  %v6632_v5 = vpop.permute.xlu0 %2906  ;;  %v2665_v34 = vpop.permute.xlu1 %2664 }
 0x576   : > { %v2669_v17 = vsel %vm978_vm9, %v2665_v34, %v6502_v9  ;;  %v2668_v39 = vsel %vm978_vm9, %v6417_v31, %v2665_v34 }
 0x577   : > { %3012 = vrot.lane.b32.xlu0 %v6205_v24, %s7482_s20  ;;  %3070 = vrot.lane.b32.xlu1 %v6244_v62, %s7493_s23  ;;  %s4844_s20 = smul.u32 12, %s7591_s3 }
 0x578   : > { %3510 = vmatprep.subr.bf16.mxu1 %v2669_v17 }
 0x579   : > { %3511 = vmatpush1.bf16.msra.mxu1 %v2668_v39  ;;  %v2677_v21 = vpop.permute.xlu0 %2676  ;;  %v6642_v53 = vpop.permute.xlu1 %2902 }
 0x57a   : > { %v2681_v49 = vsel %vm991_vm10, %v2677_v21, %v6512_v26  ;;  %v2680_v9 = vsel %vm991_vm10, %v6415_v18, %v2677_v21  ;;  %v7515_v21 = vld [vmem:[#allocation20_spill] sm:$0xff] }
 0x57b   : > { %3082 = vrot.lane.b32.xlu0 %v6227_v28, %s7494_s14  ;;  %3024 = vrot.lane.b32.xlu1 %v6207_v3, %s7484_s2  ;;  %s7581_s2 = sld [smem:[#allocation34_spill]] }
 0x57c   : > { %3512 = vmatprep.subr.bf16.mxu1 %v2681_v49 }
 0x57d   : > { %3513 = vmatpush1.bf16.msra.mxu1 %v2680_v9  ;;  %v6652_v31 = vpop.permute.xlu0 %2914  ;;  %v2689_v4 = vpop.permute.xlu1 %2688 }
 0x57e   : > { %v2693_v35 = vsel %vm1004_vm11, %v2689_v4, %v6510_v41  ;;  %v2692_v26 = vsel %vm1004_vm11, %v6425_v33, %v2689_v4  ;;  %v4956_v4 = vld [vmem:[%s7219_s8 + $0xac] ss:$28 sps:$4 sm:$0xff]  }
 0x57f   : > { %3036 = vrot.lane.b32.xlu0 %v6209_v7, %s7489_s6  ;;  %3086 = vrot.lane.b32.xlu1 %v6327_v27, %s7494_s14  ;;  %s5053_s6 = smov 17  }
 0x580   : > { %3514 = vmatprep.subr.bf16.mxu1 %v2693_v35  ;;  %v7520_v35 = vld [vmem:[#allocation22_spill] sm:$0xff] }
 0x581   : > { %3515 = vmatpush1.bf16.msra.mxu1 %v2692_v26  ;;  %v2701_v28 = vpop.permute.xlu0 %2700  ;;  %v6662_v18 = vpop.permute.xlu1 %2918 }
 0x582   : > { %v2705_v63 = vsel %vm7495_vm0, %v2701_v28, %v6520_v10  ;;  %v2704_v41 = vsel %vm7496_vm2, %v6423_v2, %v2701_v28  ;;  %vm7502_vm0 = vcmask 867328  }
 0x583   : > { %3098 = vrot.lane.b32.xlu0 %v6299_v38, %s7497_s5  ;;  %3048 = vrot.lane.b32.xlu1 %v6211_v13, %s7491_s11  ;;  %vm7503_vm2 = vmmov %vm7502_vm0 }
 0x584   : > { %3516 = vmatprep.subr.bf16.mxu1 %v2705_v63  ;;  %v3296_v63 = vld [vmem:[%s7220_s9] sm:$0xff] }
 0x585   : > { %3517 = vmatpush1.bf16.msra.mxu1 %v2704_v41  ;;  %v6672_v27 = vpop.permute.xlu0 %2930  ;;  %v2713_v33 = vpop.permute.xlu1 %2712 }
 0x586   : > { %v2717_v45 = vsel %vm7498_vm5, %v2713_v33, %v6518_v40  ;;  %v2716_v10 = vsel %vm7499_vm6, %v6433_v20, %v2713_v33  ;;  %vm7504_vm5 = vcmask 785408  }
 0x587   : > { %3060 = vrot.lane.b32.xlu0 %v6213_v15, %s7492_s27  ;;  %3094 = vrot.lane.b32.xlu1 %v6225_v58, %s7497_s5  ;;  %vm7505_vm6 = vmmov %vm7504_vm5 }
 0x588   : > { %3518 = vmatprep.subr.bf16.mxu1 %v2717_v45  ;;  %v7524_v45 = vld [vmem:[#allocation21_spill] sm:$0xff] }
 0x589   : > { %3519 = vmatpush1.bf16.msra.mxu1 %v2716_v10  ;;  %v2725_v38 = vpop.permute.xlu0 %2724  ;;  %v6682_v2 = vpop.permute.xlu1 %2926  ;;  %v7526_v10 = vld [vmem:[#allocation18_spill] sm:$0xff] }
 0x58a   : > { %v2729_v57 = vsel %vm7500_vm7, %v2725_v38, %v6528_v61  ;;  %v2728_v40 = vsel %vm7501_vm8, %v6431_v6, %v2725_v38  ;;  %vm7507_vm7 = vcmask 777216   ;;  %v3299_v38 = vld [vmem:[%s7220_s9 + $0x18] sm:$0xff] }
 0x58b   : > { %3106 = vrot.lane.b32.xlu0 %v6223_v47, %s7431_s15  ;;  %3072 = vrot.lane.b32.xlu1 %v6215_v50, %s7493_s23  ;;  %vm7508_vm8 = vmmov %vm7507_vm7  ;;  %s7586_s23 = sld [smem:[#allocation29_spill]] }
 0x58c   : > { %3520 = vmatprep.subr.bf16.mxu1 %v2729_v57  ;;  %v3298_v57 = vld [vmem:[%s7220_s9 + $0x10] sm:$0xff] }
 0x58d   : > { %3521 = vmatpush1.bf16.msra.mxu1 %v2728_v40  ;;  %v6692_v58 = vpop.permute.xlu0 %2938  ;;  %v2737_v20 = vpop.permute.xlu1 %2736  ;;  %v4958_v40 = vld [vmem:[%s7219_s8 + $0xa8] ss:$28 sps:$4 sm:$0xff]  }
 0x58e   : > { %v2741_v16 = vsel %vm7502_vm0, %v2737_v20, %v6526_v12  ;;  %v2740_v61 = vsel %vm7503_vm2, %v6441_v0, %v2737_v20  ;;  %vm7509_vm0 = vcmask 769024  }
 0x58f   : > { %3084 = vrot.lane.b32.xlu0 %v6203_v23, %s7494_s14  ;;  %3110 = vrot.lane.b32.xlu1 %v6311_v1, %s7431_s15  ;;  %vm7510_vm2 = vmmov %vm7509_vm0 }
 0x590   : > { %3522 = vmatprep.subr.bf16.mxu1 %v2741_v16 }
 0x591   : > { %3523 = vmatpush1.bf16.msra.mxu1 %v2740_v61  ;;  %v2749_v47 = vpop.permute.xlu0 %2748  ;;  %v6702_v6 = vpop.permute.xlu1 %2942  ;;  %v4961_v61 = vld [vmem:[%s7219_s8 + $0xc] ss:$28 sps:$4 sm:$0xff]  }
 0x592   : > { %v2753_v8 = vsel %vm7504_vm5, %v2749_v47, %v6536_v29  ;;  %v2752_v12 = vsel %vm7505_vm6, %v6439_v22, %v2749_v47  ;;  %vm7511_vm5 = vcmask 760832   ;;  %v7528_v47 = vld [vmem:[#allocation24_spill] sm:$0xff] }
 0x593   : > { %3122 = vrot.lane.b32.xlu0 %v6309_v37, %s7506_s7  ;;  %3096 = vrot.lane.b32.xlu1 %v6205_v24, %s7497_s5  ;;  %v4947_v24 = vld [vmem:[%s7219_s8] ss:$28 sps:$4 sm:$0xff]   ;;  %vm7512_vm6 = vmmov %vm7511_vm5 }
 0x594   : > { %3524 = vmatprep.subr.bf16.mxu1 %v2753_v8 }
 0x595   : > { %3525 = vmatpush1.bf16.msra.mxu1 %v2752_v12  ;;  %v6712_v23 = vpop.permute.xlu0 %2954  ;;  %v2761_v1 = vpop.permute.xlu1 %2760  ;;  %v7530_v12 = vld [vmem:[#allocation16_spill] sm:$0xff] }
 0x596   : > { %v2765_v0 = vsel %vm7507_vm7, %v2761_v1, %v6534_v56  ;;  %v2764_v29 = vsel %vm7508_vm8, %v6452_v46, %v2761_v1  ;;  %v4950_v56 = vld [vmem:[%s7219_s8 + $0x3c] ss:$28 sps:$4 sm:$0xff]   ;;  %vm7513_vm7 = vcmask 752640  }
 0x597   : > { %3108 = vrot.lane.b32.xlu0 %v6207_v3, %s7431_s15  ;;  %3118 = vrot.lane.b32.xlu1 %v6236_v59, %s7506_s7  ;;  %vm7514_vm8 = vmmov %vm7513_vm7 }
 0x598   : > { %3526 = vmatprep.subr.bf16.mxu1 %v2765_v0  ;;  %v3301_v0 = vld [vmem:[%s7220_s9 + $0x28] sm:$0xff] }
 0x599   : > { %3527 = vmatpush1.bf16.msra.mxu1 %v2764_v29  ;;  %v2773_v37 = vpop.permute.xlu0 %2772  ;;  %v6725_v22 = vpop.permute.xlu1 %2950  ;;  %v3300_v29 = vld [vmem:[%s7220_s9 + $0x20] sm:$0xff] }
 0x59a   : > { %v2777_v46 = vsel %vm7509_vm0, %v2773_v37, %v6544_v25  ;;  %v2776_v3 = vsel %vm7510_vm2, %v6450_v14, %v2773_v37  ;;  %vm7516_vm0 = vcmask 744448  }
 0x59b   : > { %3130 = vrot.lane.b32.xlu0 %v6234_v54, %s7432_s18  ;;  %3120 = vrot.lane.b32.xlu1 %v6209_v7, %s7506_s7  ;;  %v4952_v7 = vld [vmem:[%s7219_s8 + $0x38] ss:$28 sps:$4 sm:$0xff]   ;;  %vm7518_vm2 = vmmov %vm7516_vm0  ;;  %s7595_s7 = sld [smem:[#allocation27_spill]] }
 0x59c   : > { %3569 = vmatprep.subr.bf16.mxu1 %v2777_v46  ;;  %3529 = vmatmul.mubr.bf16.vlgmr.msra.gmra.mrb[16].mxu1 %v4947_v24 }
 0x59d   : > { %3570 = vmatpush1.bf16.msra.mxu1 %v2776_v3  ;;  %v6738_v59 = vpop.permute.xlu0 %2962  ;;  %v2785_v34 = vpop.permute.xlu1 %2784  ;;  %3538 = vmatprep.mubr.bf16.mxu1 %v4950_v56  ;;  %v7532_v56 = vld [vmem:[#allocation23_spill] sm:$0xff] }
 0x59e   : > { %v2789_v17 = vsel %vm7511_vm5, %v2785_v34, %v6542_v44  ;;  %v2788_v25 = vsel %vm7512_vm6, %v6460_v32, %v2785_v34  ;;  %v4953_v44 = vld [vmem:[%s7219_s8 + $0x74] ss:$28 sps:$4 sm:$0xff]   ;;  %vm7521_vm5 = vcmask 736256  }
 0x59f   : > { %3132 = vrot.lane.b32.xlu0 %v6211_v13, %s7432_s18  ;;  %3134 = vrot.lane.b32.xlu1 %v6319_v51, %s7432_s18  ;;  %s7519_s18 = smov 26   ;;  %vm7523_vm6 = vmmov %vm7521_vm5  ;;  %v7534_v3 = vld [vmem:[#allocation19_spill] sm:$0xff] }
 0x5a0   : > { %3571 = vmatprep.subr.bf16.mxu1 %v2789_v17  ;;  %v3303_v17 = vld [vmem:[%s7220_s9 + $0x38] sm:$0xff] }
 0x5a1   : > { %3572 = vmatpush1.bf16.msra.mxu1 %v2788_v25  ;;  %v2797_v54 = vpop.permute.xlu0 %2796  ;;  %v6751_v14 = vpop.permute.xlu1 %2966  ;;  %v3302_v25 = vld [vmem:[%s7220_s9 + $0x30] sm:$0xff]  ;;  %s517_s13 = scalar_lea.vmem %s7595_s7, %s4844_s20 }
 0x5a2   : > { %v2801_v32 = vsel %vm7513_vm7, %v2797_v54, %v6552_v43  ;;  %v2800_v13 = vsel %vm7514_vm8, %v6458_v60, %v2797_v54  ;;  %v7517_v43 = vld [vmem:[#allocation17_spill] sm:$0xff]  ;;  %vm7525_vm7 = vcmask 654336  }
 0x5a3   : > { %3146 = vrot.lane.b32.xlu0 %v6317_v30, %s7437_s12  ;;  %3144 = vrot.lane.b32.xlu1 %v6213_v15, %s7437_s12  ;;  %v4955_v15 = vld [vmem:[%s7219_s8 + $0x70] ss:$28 sps:$4 sm:$0xff]   ;;  %vm7527_vm8 = vmmov %vm7525_vm7 }
 0x5a4   : > { %3573 = vmatprep.subr.bf16.mxu1 %v2801_v32  ;;  %3539 = vmatmul.mubr.bf16.gmra.mrb[20].mxu1 %v4952_v7  ;;  %v7537_v32 = vld [vmem:[#allocation25_spill] sm:$0xff] }
 0x5a5   : > { %3574 = vmatpush1.bf16.msra.mxu1 %v2800_v13  ;;  %v6764_v51 = vpop.permute.xlu0 %2978  ;;  %v2809_v39 = vpop.permute.xlu1 %2808  ;;  %3548 = vmatprep.mubr.bf16.mxu1 %v4953_v44 }
 0x5a6   : > { %v2813_v49 = vsel %vm7516_vm0, %v2809_v39, %v7515_v21  ;;  %v2812_v9 = vsel %vm7518_vm2, %v7517_v43, %v2809_v39  ;;  %vm7529_vm0 = vcmask 646144  }
 0x5a7   : > { %3156 = vrot.lane.b32.xlu0 %v6215_v50, %s7519_s18  ;;  %3142 = vrot.lane.b32.xlu1 %v6246_v55, %s7437_s12  ;;  %v7522_v50 = vld [vmem:[#allocation15_spill] sm:$0xff]  ;;  %v3297_v55 = vld [vmem:[%s7220_s9 + $0x8] sm:$0xff]  ;;  %vm7531_vm2 = vmmov %vm7529_vm0  ;;  %s7539_s12 = sld [smem:[#allocation35_spill]] }
 0x5a8   : > { %3575 = vmatprep.subr.bf16.mxu1 %v2813_v49 }
 0x5a9   : > { %3576 = vmatpush1.bf16.msra.mxu1 %v2812_v9  ;;  %v2821_v30 = vpop.permute.xlu0 %2820  ;;  %v6777_v60 = vpop.permute.xlu1 %2974 }
 0x5aa   : > { %v2825_v26 = vsel %vm7521_vm5, %v2821_v30, %v7520_v35  ;;  %v2824_v28 = vsel %vm7523_vm6, %v7522_v50, %v2821_v30  ;;  %vm7533_vm5 = vcmask 637952  }
 0x5ab   : > { %3154 = vrot.lane.b32.xlu0 %v6244_v62, %s7519_s18  ;;  %3158 = vrot.lane.b32.xlu1 %v6329_v52, %s7519_s18  ;;  %vm7535_vm6 = vmmov %vm7533_vm5  ;;  %s7593_s18 = sld [smem:[#allocation37_spill]] }
 0x5ac   : > { %3577 = vmatprep.subr.bf16.mxu1 %v2825_v26  ;;  %3549 = vmatmul.mubr.bf16.gmra.mrb[24].mxu1 %v4955_v15 }
 0x5ad   : > { %3578 = vmatpush1.bf16.msra.mxu1 %v2824_v28  ;;  %v6796_v41 = vpop.permute.xlu0 %2986  ;;  %v2833_v33 = vpop.permute.xlu1 %2832  ;;  %3558 = vmatprep.mubr.bf16.mxu1 %v4956_v4  ;;  %v3870_v39 = vld [vmem:[%s7539_s12 + $0x8] sm:$0xff]  ;;  %v3869_v21 = vld [vmem:[%s7539_s12] sm:$0xff] }
 0x5ae   : > { %v2837_v62 = vsel %vm7525_vm7, %v2833_v33, %v7524_v45  ;;  %v2836_v52 = vsel %vm7527_vm8, %v7526_v10, %v2833_v33  ;;  %vm7536_vm7 = vcmask 629760  }
 0x5af   : > { %3311 = vperm.xlu0 %4904, %v3297_v55   ;;  %3306 = vperm.xlu1 %4905, %v3296_v63   ;;  %vm7538_vm8 = vmmov %vm7536_vm7 }
 0x5b0   : > { %3579 = vmatprep.subr.bf16.mxu1 %v2837_v62 }
 0x5b1   : > { %3580 = vmatpush1.bf16.msra.mxu1 %v2836_v52  ;;  %v2845_v20 = vpop.permute.xlu0 %2844  ;;  %v6811_v16 = vpop.permute.xlu1 %2990  ;;  %s7594_s25 = smov %s7593_s18 }
 0x5b2   : > { %v2849_v8 = vsel %vm7529_vm0, %v2845_v20, %v7528_v47  ;;  %v2848_v1 = vsel %vm7531_vm2, %v7530_v12, %v2845_v20  ;;  %vm7540_vm0 = vcmask 621568   ;;  %v4965_v12 = vld [vmem:[%s7219_s8 + $0x7c] ss:$28 sps:$4 sm:$0xff]  }
 0x5b3   : > { %3321 = vperm.xlu0 %4904, %v3299_v38   ;;  %3316 = vperm.xlu1 %4905, %v3298_v57   ;;  %vm7541_vm2 = vmmov %vm7540_vm0  ;;  %v4959_v38 = vld [vmem:[%s7219_s8 + $0x8] ss:$28 sps:$4 sm:$0xff]  }
 0x5b4   : > { %3581 = vmatprep.subr.bf16.mxu1 %v2849_v8  ;;  %3559 = vmatmul.mubr.bf16.gmra.mrb[28].mxu1 %v4958_v40 }
 0x5b5   : > { %3582 = vmatpush1.bf16.msra.mxu1 %v2848_v1  ;;  %v6826_v24 = vpop.permute.xlu0 %3002  ;;  %v2857_v37 = vpop.permute.xlu1 %2856  ;;  %3601 = vmatprep.mubr.bf16.mxu1 %v4961_v61 }
 0x5b6   : > { %v2861_v46 = vsel %vm7533_vm5, %v2857_v37, %v7532_v56  ;;  %v2860_v34 = vsel %vm7535_vm6, %v7534_v3, %v2857_v37  ;;  %vm7542_vm5 = vcmask 613376  }
 0x5b7   : > { %3331 = vperm.xlu0 %4904, %v3301_v0   ;;  %3326 = vperm.xlu1 %4905, %v3300_v29   ;;  %vm7543_vm6 = vmmov %vm7542_vm5 }
 0x5b8   : > { %3583 = vmatprep.subr.bf16.mxu1 %v2861_v46  ;;  %v4968_v46 = vld [vmem:[%s7219_s8 + $0xb4] ss:$28 sps:$4 sm:$0xff]  }
 0x5b9   : > { %3584 = vmatpush1.bf16.msra.mxu1 %v2860_v34  ;;  %v2869_v7 = vpop.permute.xlu0 %2868  ;;  %v6838_v54 = vpop.permute.xlu1 %2998 }
 0x5ba   : > { %v2873_v44 = vsel %vm7536_vm7, %v2869_v7, %v6583_v11  ;;  %v2872_v13 = vsel %vm7538_vm8, %v7537_v32, %v2869_v7  ;;  %vm7544_vm7 = vcmask 605184  }
 0x5bb   : > { %3341 = vperm.xlu0 %4904, %v3303_v17   ;;  %3336 = vperm.xlu1 %4905, %v3302_v25   ;;  %vm7545_vm8 = vmmov %vm7544_vm7 }
 0x5bc   : > { %3585 = vmatprep.subr.bf16.mxu1 %v2873_v44 }
 0x5bd   : > { %3586 = vmatpush1.bf16.msra.mxu1 %v2872_v13  ;;  %v6850_v49 = vpop.permute.xlu0 %3010  ;;  %v2881_v43 = vpop.permute.xlu1 %2880  ;;  %v4973_v13 = vld [vmem:[%s7219_s8 + $0x14] ss:$28 sps:$4 sm:$0xff]  }
 0x5be   : > { %v2885_v11 = vsel %vm7540_vm0, %v2881_v43, %v6592_v19  ;;  %v2884_v9 = vsel %vm7541_vm2, %v6602_v42, %v2881_v43  ;;  %vm7546_vm0 = vcmask 515072  }
 0x5bf   : > { %3878 = vperm.xlu0 %4904, %v3870_v39   ;;  %3873 = vperm.xlu1 %4905, %v3869_v21   ;;  %vm7547_vm2 = vmmov %vm7546_vm0 }
 0x5c0   : > { %3587 = vmatprep.subr.bf16.mxu1 %v2885_v11 }
 0x5c1   : > { %3588 = vmatpush1.bf16.msra.mxu1 %v2884_v9  ;;  %v2893_v15 = vpop.permute.xlu0 %2892  ;;  %v6856_v30 = vpop.permute.xlu1 %3014 }
 0x5c2   : > { %v2897_v4 = vsel %vm7542_vm5, %v2893_v15, %v6622_v36  ;;  %v2896_v35 = vsel %vm7543_vm6, %v6612_v48, %v2893_v15  ;;  %vm7548_vm5 = vcmask 506880  }
 0x5c3   : > { %3589 = vmatprep.subr.bf16.mxu1 %v2897_v4  ;;  %vm7549_vm6 = vmmov %vm7548_vm5 }
 0x5c5   : > { %3590 = vmatpush1.bf16.msra.mxu1 %v2896_v35  ;;  %v6862_v26 = vpop.permute.xlu0 %3026  ;;  %v2905_v19 = vpop.permute.xlu1 %2904 }
 0x5c6   : > { %v2909_v42 = vsel %vm7544_vm7, %v2905_v19, %v6632_v5  ;;  %v2908_v50 = vsel %vm7545_vm8, %v6642_v53, %v2905_v19  ;;  %vm7550_vm7 = vcmask 498688  }
 0x5c7   : > { %3591 = vmatprep.subr.bf16.mxu1 %v2909_v42  ;;  %vm7551_vm8 = vmmov %vm7550_vm7 }
 0x5c9   : > { %3592 = vmatpush1.bf16.msra.mxu1 %v2908_v50  ;;  %v2917_v28 = vpop.permute.xlu0 %2916  ;;  %v6868_v55 = vpop.permute.xlu1 %3022 }
 0x5ca   : > { %v2921_v36 = vsel %vm1251_vm14, %v2917_v28, %v6662_v18  ;;  %v2920_v48 = vsel %vm1251_vm14, %v6652_v31, %v2917_v28 }
 0x5cb   : > { %3593 = vmatprep.subr.bf16.mxu1 %v2921_v36 }
 0x5cd   : > { %3594 = vmatpush1.bf16.msra.mxu1 %v2920_v48  ;;  %v6874_v63 = vpop.permute.xlu0 %3034  ;;  %v2929_v33 = vpop.permute.xlu1 %2928 }
 0x5ce   : > { %v2933_v5 = vsel %vm7546_vm0, %v2929_v33, %v6672_v27  ;;  %v2932_v53 = vsel %vm7547_vm2, %v6682_v2, %v2929_v33  ;;  %vm7552_vm0 = vcmask 490496  }
 0x5cf   : > { %3595 = vmatprep.subr.bf16.mxu1 %v2933_v5  ;;  %vm7553_vm2 = vmmov %vm7552_vm0 }
 0x5d1   : > { %3596 = vmatpush1.bf16.msra.mxu1 %v2932_v53  ;;  %v2941_v45 = vpop.permute.xlu0 %2940  ;;  %v6880_v62 = vpop.permute.xlu1 %3038 }
 0x5d2   : > { %v2945_v18 = vsel %vm7548_vm5, %v2941_v45, %v6702_v6  ;;  %v2944_v31 = vsel %vm7549_vm6, %v6692_v58, %v2941_v45  ;;  %v4962_v58 = vld [vmem:[%s7219_s8 + $0x44] ss:$28 sps:$4 sm:$0xff]   ;;  %vm7554_vm5 = vcmask 482304  }
 0x5d3   : > { %3597 = vmatprep.subr.bf16.mxu1 %v2945_v18  ;;  %vm7555_vm6 = vmmov %vm7554_vm5 }
 0x5d5   : > { %3598 = vmatpush1.bf16.msra.mxu1 %v2944_v31  ;;  %v6886_v10 = vpop.permute.xlu0 %3050  ;;  %v2953_v52 = vpop.permute.xlu1 %2952 }
 0x5d6   : > { %v2957_v27 = vsel %vm7550_vm7, %v2953_v52, %v6712_v23  ;;  %v2956_v2 = vsel %vm7551_vm8, %v6725_v22, %v2953_v52  ;;  %vm7556_vm7 = vcmask 474112  }
 0x5d7   : > { %3599 = vmatprep.subr.bf16.mxu1 %v2957_v27  ;;  %vm7557_vm8 = vmmov %vm7556_vm7 }
 0x5d9   : > { %3600 = vmatpush1.bf16.msra.mxu1 %v2956_v2  ;;  %v2965_v6 = vpop.permute.xlu0 %2964  ;;  %v3047_v57 = vpop.permute.xlu1 %3046 }
 0x5da   : > { %v2968_v40 = vsel %vm7552_vm0, %v6738_v59, %v2965_v6  ;;  %v2969_v23 = vsel %vm7553_vm2, %v2965_v6, %v6751_v14  ;;  %v4964_v59 = vld [vmem:[%s7219_s8 + $0x40] ss:$28 sps:$4 sm:$0xff]   ;;  %vm7558_vm0 = vcmask 392192  }
 0x5db   : > { %3642 = vmatprep.subr.bf16.mxu1 %v2969_v23  ;;  %vm7559_vm2 = vmmov %vm7558_vm0 }
 0x5dc   : > { %3602 = vmatmul.mubr.bf16.vlgmr.msra.gmra.mrb[16].mxu1 %v4959_v38 }
 0x5dd   : > { %3643 = vmatpush1.bf16.msra.mxu1 %v2968_v40  ;;  %v3059_v22 = vpop.permute.xlu0 %3058  ;;  %v2977_v20 = vpop.permute.xlu1 %2976  ;;  %3611 = vmatprep.mubr.bf16.mxu1 %v4962_v58 }
 0x5de   : > { %v2980_v61 = vsel %vm7554_vm5, %v6777_v60, %v2977_v20  ;;  %v2981_v47 = vsel %vm7555_vm6, %v2977_v20, %v6764_v51  ;;  %vm7560_vm5 = vcmask 384000  }
 0x5df   : > { %3644 = vmatprep.subr.bf16.mxu1 %v2981_v47  ;;  %vm7561_vm6 = vmmov %vm7560_vm5 }
 0x5e1   : > { %3645 = vmatpush1.bf16.msra.mxu1 %v2980_v61  ;;  %v2989_v8 = vpop.permute.xlu0 %2988  ;;  %v3063_v14 = vpop.permute.xlu1 %3062 }
 0x5e2   : > { %v2992_v1 = vsel %vm7556_vm7, %v6796_v41, %v2989_v8  ;;  %v2993_v60 = vsel %vm7557_vm8, %v2989_v8, %v6811_v16  ;;  %v4967_v41 = vld [vmem:[%s7219_s8 + $0x78] ss:$28 sps:$4 sm:$0xff]   ;;  %vm7562_vm7 = vcmask 375808   ;;  %v4974_v8 = vld [vmem:[%s7219_s8 + $0x4c] ss:$28 sps:$4 sm:$0xff]  }
 0x5e3   : > { %3646 = vmatprep.subr.bf16.mxu1 %v2993_v60  ;;  %vm7563_vm8 = vmmov %vm7562_vm7 }
 0x5e4   : > { %3612 = vmatmul.mubr.bf16.gmra.mrb[20].mxu1 %v4964_v59  ;;  %v4971_v59 = vld [vmem:[%s7219_s8 + $0x10] ss:$28 sps:$4 sm:$0xff]  }
 0x5e5   : > { %3647 = vmatpush1.bf16.msra.mxu1 %v2992_v1  ;;  %v3075_v51 = vpop.permute.xlu0 %3074  ;;  %v3001_v0 = vpop.permute.xlu1 %3000  ;;  %3621 = vmatprep.mubr.bf16.mxu1 %v4965_v12 }
 0x5e6   : > { %v3004_v29 = vsel %vm7558_vm0, %v6838_v54, %v3001_v0  ;;  %v3005_v37 = vsel %vm7559_vm2, %v3001_v0, %v6826_v24  ;;  %v4970_v54 = vld [vmem:[%s7219_s8 + $0xb0] ss:$28 sps:$4 sm:$0xff]   ;;  %vm7564_vm0 = vcmask 367616   ;;  %v4977_v0 = vld [vmem:[%s7219_s8 + $0x84] ss:$28 sps:$4 sm:$0xff]  }
 0x5e7   : > { %3648 = vmatprep.subr.bf16.mxu1 %v3005_v37  ;;  %vm7565_vm2 = vmmov %vm7564_vm0  ;;  %v4980_v37 = vld [vmem:[%s7219_s8 + $0xbc] ss:$28 sps:$4 sm:$0xff]  }
 0x5e9   : > { %3649 = vmatpush1.bf16.msra.mxu1 %v3004_v29  ;;  %v3013_v56 = vpop.permute.xlu0 %3012  ;;  %v3071_v16 = vpop.permute.xlu1 %3070  ;;  %v4979_v29 = vld [vmem:[%s7219_s8 + $0x80] ss:$28 sps:$4 sm:$0xff]  }
 0x5ea   : > { %v3016_v3 = vsel %vm7560_vm5, %v6850_v49, %v3013_v56  ;;  %v3017_v34 = vsel %vm7561_vm6, %v3013_v56, %v6856_v30  ;;  %vm7566_vm5 = vcmask 359424   ;;  %v7580_v56 = vmov 0  }
 0x5eb   : > { %3650 = vmatprep.subr.bf16.mxu1 %v3017_v34  ;;  %vm7567_vm6 = vmmov %vm7566_vm5  ;;  %v4986_v34 = vld [vmem:[%s7219_s8 + $0xc0] ss:$28 sps:$4 sm:$0xff]  }
 0x5ec   : > { %3622 = vmatmul.mubr.bf16.gmra.mrb[24].mxu1 %v4967_v41  ;;  %v4982_v41 = vld [vmem:[%s7219_s8 + $0xb8] ss:$28 sps:$4 sm:$0xff]  }
 0x5ed   : > { %3651 = vmatpush1.bf16.msra.mxu1 %v3016_v3  ;;  %v3083_v24 = vpop.permute.xlu0 %3082  ;;  %v3025_v17 = vpop.permute.xlu1 %3024  ;;  %3631 = vmatprep.mubr.bf16.mxu1 %v4968_v46  ;;  %v4984_v46 = vld [vmem:[%s7219_s8 + $0x50] ss:$28 sps:$4 sm:$0xff]   ;;  %v4985_v3 = vld [vmem:[%s7219_s8 + $0x88] ss:$28 sps:$4 sm:$0xff]  }
 0x5ee   : > { %v3028_v25 = vsel %vm7562_vm7, %v6868_v55, %v3025_v17  ;;  %v3029_v7 = vsel %vm7563_vm8, %v3025_v17, %v6862_v26  ;;  %vm7568_vm7 = vcmask 351232  }
 0x5ef   : > { %3652 = vmatprep.subr.bf16.mxu1 %v3029_v7  ;;  %vm7569_vm8 = vmmov %vm7568_vm7 }
 0x5f1   : > { %3653 = vmatpush1.bf16.msra.mxu1 %v3028_v25  ;;  %v3037_v44 = vpop.permute.xlu0 %3036  ;;  %v3087_v32 = vpop.permute.xlu1 %3086 }
 0x5f2   : > { %v3040_v39 = vsel %vm7564_vm0, %v6874_v63, %v3037_v44  ;;  %v3041_v21 = vsel %vm7565_vm2, %v3037_v44, %v6880_v62  ;;  %vm7570_vm0 = vcmask 261120  }
 0x5f3   : > { %3654 = vmatprep.subr.bf16.mxu1 %v3041_v21  ;;  %vm7571_vm2 = vmmov %vm7570_vm0 }
 0x5f4   : > { %3632 = vmatmul.mubr.bf16.gmra.mrb[28].mxu1 %v4970_v54 }
 0x5f5   : > { %3655 = vmatpush1.bf16.msra.mxu1 %v3040_v39  ;;  %v3099_v49 = vpop.permute.xlu0 %3098  ;;  %v3049_v43 = vpop.permute.xlu1 %3048  ;;  %3674 = vmatprep.mubr.bf16.mxu1 %v4973_v13 }
 0x5f6   : > { %v3052_v11 = vsel %vm7566_vm5, %v3047_v57, %v3049_v43  ;;  %v3053_v9 = vsel %vm7567_vm6, %v3049_v43, %v6886_v10  ;;  %vm7572_vm5 = vcmask 252928  }
 0x5f7   : > { %3656 = vmatprep.subr.bf16.mxu1 %v3053_v9  ;;  %vm7573_vm6 = vmmov %vm7572_vm5 }
 0x5f9   : > { %3657 = vmatpush1.bf16.msra.mxu1 %v3052_v11  ;;  %v3061_v15 = vpop.permute.xlu0 %3060  ;;  %v3095_v30 = vpop.permute.xlu1 %3094 }
 0x5fa   : > { %v3064_v4 = vsel %vm7568_vm7, %v3059_v22, %v3061_v15  ;;  %v3065_v35 = vsel %vm7569_vm8, %v3061_v15, %v3063_v14  ;;  %vm7576_vm8 = vcmask 236544  }
 0x5fb   : > { %3658 = vmatprep.subr.bf16.mxu1 %v3065_v35 }
 0x5fd   : > { %3659 = vmatpush1.bf16.msra.mxu1 %v3064_v4  ;;  %v3107_v26 = vpop.permute.xlu0 %3106  ;;  %v3073_v19 = vpop.permute.xlu1 %3072 }
 0x5fe   : > { %v3076_v42 = vsel %vm1420_vm12, %v3071_v16, %v3073_v19  ;;  %v3077_v50 = vsel %vm1420_vm12, %v3073_v19, %v3075_v51  ;;  %vm7574_vm12 = vcmask 244736   ;;  %v4976_v51 = vld [vmem:[%s7219_s8 + $0x48] ss:$28 sps:$4 sm:$0xff]   ;;  %v4983_v16 = vld [vmem:[%s7219_s8 + $0x18] ss:$28 sps:$4 sm:$0xff]  }
 0x5ff   : > { %3660 = vmatprep.subr.bf16.mxu1 %v3077_v50  ;;  %vm7575_vm7 = vmmov %vm7574_vm12 }
 0x601   : > { %3661 = vmatpush1.bf16.msra.mxu1 %v3076_v42  ;;  %v3085_v28 = vpop.permute.xlu0 %3084  ;;  %v3111_v55 = vpop.permute.xlu1 %3110 }
 0x602   : > { %v3088_v36 = vsel %vm7570_vm0, %v3083_v24, %v3085_v28  ;;  %v3089_v48 = vsel %vm7571_vm2, %v3085_v28, %v3087_v32  ;;  %vm7577_vm0 = vmmov %vm7576_vm8  ;;  %vm7578_vm2 = vcmask 220160  }
 0x603   : > { %3662 = vmatprep.subr.bf16.mxu1 %v3089_v48 }
 0x605   : > { %3663 = vmatpush1.bf16.msra.mxu1 %v3088_v36  ;;  %v3123_v63 = vpop.permute.xlu0 %3122  ;;  %v3097_v33 = vpop.permute.xlu1 %3096 }
 0x606   : > { %v3100_v5 = vsel %vm7572_vm5, %v3095_v30, %v3097_v33  ;;  %v3101_v53 = vsel %vm7573_vm6, %v3097_v33, %v3099_v49  ;;  %vm7579_vm5 = vmmov %vm7578_vm2 }
 0x607   : > { %3664 = vmatprep.subr.bf16.mxu1 %v3101_v53 }
 0x609   : > { %3665 = vmatpush1.bf16.msra.mxu1 %v3100_v5  ;;  %v3109_v45 = vpop.permute.xlu0 %3108  ;;  %v3119_v62 = vpop.permute.xlu1 %3118 }
 0x60a   : > { %v3112_v18 = vsel %vm7574_vm12, %v3107_v26, %v3109_v45  ;;  %v3113_v31 = vsel %vm7575_vm7, %v3109_v45, %v3111_v55  ;;  %vm7598_vm12 = vcmask 777216  }
 0x60b   : > { %3666 = vmatprep.subr.bf16.mxu1 %v3113_v31  ;;  %vm7599_vm7 = vmmov %vm7598_vm12 }
 0x60d   : > { %3667 = vmatpush1.bf16.msra.mxu1 %v3112_v18  ;;  %v3131_v10 = vpop.permute.xlu0 %3130  ;;  %v3121_v52 = vpop.permute.xlu1 %3120 }
 0x60e   : > { %v3124_v27 = vsel %vm7576_vm8, %v3119_v62, %v3121_v52  ;;  %v3125_v2 = vsel %vm7577_vm0, %v3121_v52, %v3123_v63  ;;  %vm7600_vm8 = vcmask 769024  }
 0x60f   : > { %3668 = vmatprep.subr.bf16.mxu1 %v3125_v2  ;;  %vm7601_vm0 = vmmov %vm7600_vm8 }
 0x611   : > { %3669 = vmatpush1.bf16.msra.mxu1 %v3124_v27  ;;  %v3133_v38 = vpop.permute.xlu0 %3132  ;;  %v3135_v6 = vpop.permute.xlu1 %3134 }
 0x612   : > { %v3136_v57 = vsel %vm1485_vm1, %v3131_v10, %v3133_v38  ;;  %v3137_v58 = vsel %vm1485_vm1, %v3133_v38, %v3135_v6  ;;  %vm3887_vm1 = vcmask 277640  }
 0x613   : > { %3670 = vmatprep.subr.bf16.mxu1 %v3137_v58  ;;  %3888 = vst.msk [vmem:[#allocation4 + $0x10] sm:$0xff] %vm3887_vm1, %v7580_v56 }
 0x615   : > { %3671 = vmatpush1.bf16.msra.mxu1 %v3136_v57  ;;  %v3147_v40 = vpop.permute.xlu0 %3146  ;;  %v3145_v23 = vpop.permute.xlu1 %3144 }
 0x616   : > { %v3149_v22 = vsel %vm7578_vm2, %v3145_v23, %v3147_v40  ;;  %vm7609_vm2 = vmmov %vm7601_vm0 }
 0x617   : > { %3672 = vmatprep.subr.bf16.mxu1 %v3149_v22 }
 0x619   : > { %v3157_v20 = vpop.permute.xlu0 %3156  ;;  %v3143_v61 = vpop.permute.xlu1 %3142 }
 0x61a   : > { %v3148_v47 = vsel %vm7579_vm5, %v3143_v61, %v3145_v23 }
 0x61b   : > { %3673 = vmatpush1.bf16.msra.mxu1 %v3148_v47 }
 0x61d   : > { %v3155_v14 = vpop.permute.xlu0 %3154  ;;  %v3159_v12 = vpop.permute.xlu1 %3158 }
 0x61e   : > { %v3160_v1 = vsel %vm1511_vm15, %v3155_v14, %v3157_v20  ;;  %3675 = vmatmul.mubr.bf16.vlgmr.msra.gmra.mrb[16].mxu1 %v4971_v59  ;;  %v3161_v60 = vsel %vm1511_vm15, %v3157_v20, %v3159_v12  ;;  %vm3885_vm15 = vcmask 138240  }
 0x61f   : > { %3715 = vmatprep.subr.bf16.mxu1 %v3161_v60  ;;  %3684 = vmatprep.mubr.bf16.mxu1 %v4974_v8  ;;  %3886 = vst.msk [vmem:[#allocation4] sm:$0xff] %vm3885_vm15, %v7580_v56 }
 0x620   : > { %3716 = vmatpush1.bf16.msra.mxu1 %v3160_v1 }
 0x626   : > { %3685 = vmatmul.mubr.bf16.gmra.mrb[20].mxu1 %v4976_v51 }
 0x627   : > { %3694 = vmatprep.mubr.bf16.mxu1 %v4977_v0 }
 0x62e   : > { %3695 = vmatmul.mubr.bf16.gmra.mrb[24].mxu1 %v4979_v29  ;;  %v3307_v24 = vpop.permute.xlu1 %3306  ;;  %v3312_v54 = vpop.permute.xlu0 %3311 }
 0x62f   : > { %3704 = vmatprep.mubr.bf16.mxu1 %v4980_v37 }
 0x632   : > { %v3317_v30 = vpop.permute.xlu1 %3316  ;;  %v3322_v42 = vpop.permute.xlu0 %3321 }
 0x636   : > { %3705 = vmatmul.mubr.bf16.gmra.mrb[28].mxu1 %v4982_v41  ;;  %v3327_v62 = vpop.permute.xlu1 %3326  ;;  %v3332_v27 = vpop.permute.xlu0 %3331 }
 0x637   : > { %3747 = vmatprep.mubr.bf16.mxu1 %v7580_v56 }
 0x63a   : > { %v3337_v47 = vpop.permute.xlu1 %3336  ;;  %v3342_v1 = vpop.permute.xlu0 %3341 }
 0x63e   : > { %4698 = vmatmul.mubr.msk.bf16.vlgmr.msra.gmra.mrb[16].mxu1 %vm1836_vm13, %v4983_v16 }
 0x63f   : > { %3757 = vmatprep.mubr.bf16.mxu1 %v7580_v56 }
 0x646   : > { %4699 = vmatmul.mubr.msk.bf16.gmra.mrb[20].mxu1 %vm1836_vm13, %v4984_v46 }
 0x647   : > { %3767 = vmatprep.mubr.bf16.mxu1 %v7580_v56 }
 0x64e   : > { %4700 = vmatmul.mubr.msk.bf16.gmra.mrb[24].mxu1 %vm1836_vm13, %v4985_v3 }
 0x64f   : > { %3777 = vmatprep.mubr.bf16.mxu1 %v7580_v56 }
 0x656   : > { %4701 = vmatmul.mubr.msk.bf16.gmra.mrb[28].mxu1 %vm1836_vm13, %v4986_v34 }
 0x711   : > { %v3749_v17 = vpop.f32.mrb[16].mxu1 }
 0x712   : > { %v4748_v25 = vadd.f32 %v3749_v17, %v3307_v24  ;;  %v3751_v7 = vpop.f32.mrb[17].mxu1  ;;  %v4987_v17 = vld [vmem:[%s7581_s2] sm:$0xff]  }
 0x713   : > { %v4749_v44 = vadd.f32 %v3751_v7, %v3307_v24  ;;  %v3753_v32 = vpop.f32.mrb[18].mxu1  ;;  %v7582_v7 = vld [vmem:[#allocation11_spill] sm:$0xff] }
 0x714   : > { %v4750_v13 = vadd.f32 %v3753_v32, %v3312_v54  ;;  %v3755_v39 = vpop.f32.mrb[19].mxu1  ;;  %v3788_v49 = vmax.f32 %v4748_v25, 0.0  ;;  %v7583_v32 = vld [vmem:[#allocation12_spill] sm:$0xff] }
 0x715   : > { %v4751_v21 = vadd.f32 %v3755_v39, %v3312_v54  ;;  %v3789_v11 = vmax.f32 %v4749_v44, 0.0 }
 0x716   : > { %v3790_v43 = vmax.f32 %v4750_v13, 0.0 }
 0x717   : > { %v3791_v9 = vmax.f32 %v4751_v21, 0.0  ;;  %v7584_v21 = vld [vmem:[#allocation13_spill] sm:$0xff] }
 0x718   : > { %v3806_v15 = vpack.c.bf16 %v3790_v43, %v3788_v49 }
 0x719   : > { %v3807_v4 = vpack.c.bf16 %v3791_v9, %v3789_v11  ;;  %v3759_v35 = vpop.f32.mrb[20].mxu1  ;;  %v3879_v11 = vpop.permute.xlu0 %3878 }
 0x71a   : > { %v4752_v26 = vadd.f32 %v3759_v35, %v3317_v30  ;;  %v3761_v19 = vpop.f32.mrb[21].mxu1  ;;  %v3874_v9 = vpop.permute.xlu1 %3873 }
 0x71b   : > { %v4753_v50 = vadd.f32 %v3761_v19, %v3317_v30  ;;  %v3763_v28 = vpop.f32.mrb[22].mxu1  ;;  %3822 = vmatprep.subr.bf16.mxu0 %v3807_v4 }
 0x71c   : > { %v4754_v55 = vadd.f32 %v3763_v28, %v3322_v42  ;;  %v3765_v36 = vpop.f32.mrb[23].mxu1  ;;  %3823 = vmatpush1.bf16.msra.mxu0 %v3806_v15  ;;  %v3792_v63 = vmax.f32 %v4752_v26, 0.0  ;;  %v7585_v15 = vld [vmem:[#allocation14_spill] sm:$0xff]  ;;  %v7587_v28 = vld [vmem:[#allocation8_spill] sm:$0xff] }
 0x71d   : > { %v4755_v48 = vadd.f32 %v3765_v36, %v3322_v42  ;;  %v3793_v5 = vmax.f32 %v4753_v50, 0.0  ;;  %v3909_v50 = vld [vmem:[%s7586_s23] ss:$4 sm:$0x7] }
 0x71e   : > { %v3794_v33 = vmax.f32 %v4754_v55, 0.0  ;;  %v3918_v55 = vrot.slane %v3909_v50, %v7587_v28 }
 0x71f   : > { %v3795_v53 = vmax.f32 %v4755_v48, 0.0  ;;  %v4704_v48 = vld [vmem:[%s7586_s23 + $0x1] ss:$4 sm:$0x7] }
 0x720   : > { %v3808_v45 = vpack.c.bf16 %v3794_v33, %v3792_v63  ;;  %v3927_v36 = vpack.c.bf16 %v3918_v55, %v3918_v55  ;;  %v4705_v63 = vld [vmem:[%s7586_s23 + $0x2] ss:$4 sm:$0x7]  ;;  %v4244_v55 = vld [vmem:[%s7586_s23] ss:$4 sm:$0x7] }
 0x721   : > { %v3809_v18 = vpack.c.bf16 %v3795_v53, %v3793_v5  ;;  %v3769_v31 = vpop.f32.mrb[24].mxu1  ;;  %v7588_v33 = vld [vmem:[#allocation9_spill] sm:$0xff] }
 0x722   : > { %v4756_v10 = vadd.f32 %v3769_v31, %v3327_v62  ;;  %v3771_v52 = vpop.f32.mrb[25].mxu1  ;;  %v3959_v5 = vrot.slane %v4704_v48, %v7588_v33  ;;  %v4004_v53 = vrot.slane %v4705_v63, %v7588_v33 }
 0x723   : > { %v4757_v2 = vadd.f32 %v3771_v52, %v3327_v62  ;;  %v3773_v38 = vpop.f32.mrb[26].mxu1  ;;  %3824 = vmatprep.subr.bf16.mxu0 %v3809_v18  ;;  %v3937_v62 = vpack.i.b16 %v3927_v36, %v3927_v36  ;;  %v4242_v36 = vld [vmem:[%s517_s13] sm:$0x77] }
 0x724   : > { %v4758_v6 = vadd.f32 %v3773_v38, %v3332_v27  ;;  %v3775_v57 = vpop.f32.mrb[27].mxu1  ;;  %3825 = vmatpush1.bf16.msra.mxu0 %v3808_v45  ;;  %v3796_v40 = vmax.f32 %v4756_v10, 0.0  ;;  %v3914_v45 = vrot.slane %v3909_v50, %v7588_v33  ;;  %v3971_v18 = vpack.c.bf16 %v3959_v5, %v3959_v5  ;;  %v4243_v5 = vld [vmem:[%s517_s13 + $0x8] sm:$0x7] }
 0x725   : > { %v4759_v58 = vadd.f32 %v3775_v57, %v3332_v27  ;;  %v3797_v22 = vmax.f32 %v4757_v2, 0.0  ;;  %v4016_v31 = vpack.c.bf16 %v4004_v53, %v4004_v53  ;;  %v3942_v52 = vrot.slane %v3937_v62, %v7588_v33  ;;  %v7589_v2 = vld [vmem:[#allocation10_spill] sm:$0xff] }
 0x726   : > { %v3798_v23 = vmax.f32 %v4758_v6, 0.0  ;;  %v3926_v10 = vpack.c.bf16 %v3914_v45, %v3914_v45  ;;  %v4012_v38 = vrot.slane %v4705_v63, %v7589_v2  ;;  %v3975_v57 = vpack.i.b16 %v3971_v18, %v3971_v18 }
 0x727   : > { %v3799_v20 = vmax.f32 %v4759_v58, 0.0  ;;  %v4020_v58 = vpack.i.b16 %v4016_v31, %v4016_v31  ;;  %v4249_v62 = vrot.slane %v4244_v55, %v7588_v33  ;;  %v4253_v18 = vrot.slane %v4244_v55, %v7587_v28 }
 0x728   : > { %v3810_v61 = vpack.c.bf16 %v3798_v23, %v3796_v40  ;;  %v3930_v40 = vpack.i.b16 %v3926_v10, %v3926_v10  ;;  %v3967_v23 = vrot.slane %v4704_v48, %v7589_v2 }
 0x729   : > { %v3811_v59 = vpack.c.bf16 %v3799_v20, %v3797_v22  ;;  %v3779_v8 = vpop.f32.mrb[28].mxu1 }
 0x72a   : > { %v4760_v14 = vadd.f32 %v3779_v8, %v3337_v47  ;;  %v3781_v12 = vpop.f32.mrb[29].mxu1  ;;  %v4025_v8 = vrot.slane %v4020_v58, %v7588_v33 }
 0x72b   : > { %v4761_v60 = vadd.f32 %v3781_v12, %v3337_v47  ;;  %v3783_v51 = vpop.f32.mrb[30].mxu1  ;;  %3826 = vmatprep.subr.bf16.mxu0 %v3811_v59  ;;  %v3922_v47 = vrot.slane %v3909_v50, %v7589_v2  ;;  %v3980_v59 = vrot.slane %v3975_v57, %v7588_v33  ;;  %v3973_v12 = vpack.c.bf16 %v3967_v23, %v3967_v23 }
 0x72c   : > { %v4762_v0 = vadd.f32 %v3783_v51, %v3342_v1  ;;  %v3785_v29 = vpop.f32.mrb[31].mxu1  ;;  %3827 = vmatpush1.bf16.msra.mxu0 %v3810_v61  ;;  %v3800_v41 = vmax.f32 %v4760_v14, 0.0  ;;  %v4018_v61 = vpack.c.bf16 %v4012_v38, %v4012_v38  ;;  %v3935_v14 = vrot.slane %v3930_v40, %v7588_v33 }
 0x72d   : > { %v4763_v37 = vadd.f32 %v3785_v29, %v3342_v1  ;;  %v3801_v46 = vmax.f32 %v4761_v60, 0.0  ;;  %v3928_v51 = vpack.c.bf16 %v3922_v47, %v3922_v47  ;;  %v3963_v29 = vrot.slane %v4704_v48, %v7587_v28 }
 0x72e   : > { %v3802_v16 = vmax.f32 %v4762_v0, 0.0  ;;  %v4034_v60 = vpack.i.b16 %v4018_v61, %v4018_v61  ;;  %v4008_v0 = vrot.slane %v4705_v63, %v7587_v28  ;;  %v4259_v38 = vcombine.low %v4249_v62, %v4253_v18 }
 0x72f   : > { %v3803_v3 = vmax.f32 %v4763_v37, 0.0  ;;  %v4257_v40 = vrot.slane %v4244_v55, %v7589_v2 }
 0x730   : > { %v3812_v34 = vpack.c.bf16 %v3802_v16, %v3800_v41  ;;  %v7105_v58 = vmul.f32 %v4259_v38, %v4242_v36 }
 0x731   : > { %v3813_v24 = vpack.c.bf16 %v3803_v3, %v3801_v46  ;;  %v3989_v46 = vpack.i.b16 %v3973_v12, %v3973_v12  ;;  %v4017_v3 = vpack.c.bf16 %v4008_v0, %v4008_v0 }
 0x732   : > { %v7112_v23 = vcombine.high %v7105_v58, %v7105_v58 }
 0x733   : > { %3828 = vmatprep.subr.bf16.mxu0 %v3813_v24  ;;  %v3994_v24 = vrot.slane %v3989_v46, %v7588_v33 }
 0x734   : > { %3829 = vmatpush1.bf16.msra.mxu0 %v3812_v34  ;;  %v4039_v34 = vrot.slane %v4034_v60, %v7588_v33 }
 0x737   : > { %4703 = vmatmul.mubr.msk.bf16.vlgmr.msra.gmra.mrb[20].mxu0 %vm1251_vm14, %v4987_v17  ;;  %vm3902_vm14 = vcmask 1047688   ;;  %v3944_v17 = vpack.i.b16 %v3928_v51, %v3928_v51 }
 0x80a   : > { %v3856_v25 = vpop.f32.mrb[20].mxu0 }
 0x80b   : > { %v3865_v54 = vadd.f32 %v3856_v25, %v7582_v7  ;;  %v3858_v44 = vpop.f32.mrb[21].mxu0  ;;  %v3972_v25 = vpack.c.bf16 %v3963_v29, %v3963_v29 }
 0x80c   : > { %v3866_v13 = vadd.f32 %v3858_v44, %v7583_v32  ;;  %v3860_v39 = vpop.f32.mrb[22].mxu0 }
 0x80d   : > { %v3867_v49 = vadd.f32 %v3860_v39, %v7584_v21  ;;  %v3862_v43 = vpop.f32.mrb[23].mxu0  ;;  %v3881_v4 = vadd.f32 %v3874_v9, %v3865_v54  ;;  %v4027_v54 = vpack.i.b16 %v4017_v3, %v4017_v3  ;;  %v3982_v39 = vpack.i.b16 %v3972_v25, %v3972_v25 }
 0x80e   : > { %v3868_v30 = vadd.f32 %v3862_v43, %v7585_v15  ;;  %v3882_v26 = vadd.f32 %v3874_v9, %v3866_v13  ;;  %v3949_v13 = vrot.slane %v3944_v17, %v7588_v33  ;;  %v4990_v15 = vld [vmem:[%s7592_s19 + $0x4] ss:$8 sps:$4 sm:$0xff]  }
 0x80f   : > { %v3883_v35 = vadd.f32 %v3879_v11, %v3867_v49  ;;  %v4032_v49 = vrot.slane %v4027_v54, %v7588_v33  ;;  %v3987_v43 = vrot.slane %v3982_v39, %v7588_v33  ;;  %4708 = vmatprep.mubr.msk.bf16.mxu1 %vm1836_vm13, %v4990_v15  ;;  %vm7596_vm13 = vcmask 785408  }
 0x810   : > { %v3884_v19 = vadd.f32 %v3879_v11, %v3868_v30  ;;  %v4171_v30 = vld [vmem:[%s7593_s18 + $0x8] sm:$0xff]  ;;  %vm7597_vm6 = vmmov %vm7596_vm13 }
 0x811   : > { %v3889_v42 = vpack.c.bf16 %v3883_v35, %v3881_v4  ;;  %v4170_v4 = vld [vmem:[%s7594_s25] sm:$0xff] }
 0x812   : > { %v3890_v56 = vpack.c.bf16 %v3884_v19, %v3882_v26  ;;  %v4709_v35 = vld [vmem:[%s7586_s23 + $0x1] ss:$4 sm:$0x7] }
 0x813   : > { %3893 = vrot.lane.b32.xlu1 %v3889_v42, %s5053_s6  ;;  %v4268_v26 = vrot.slane %v4709_v35, %v7588_v33  ;;  %v4272_v19 = vrot.slane %v4709_v35, %v7587_v28  ;;  %v4710_v42 = vld [vmem:[%s7586_s23 + $0x2] ss:$4 sm:$0x7]  ;;  %v4276_v63 = vrot.slane %v4709_v35, %v7589_v2 }
 0x814   : > { %3895 = vrot.lane.b32.xlu0 %v3890_v56, %s5053_s6  ;;  %v4287_v56 = vrot.slane %v4710_v42, %v7588_v33  ;;  %v4291_v50 = vrot.slane %v4710_v42, %v7587_v28 }
 0x815   : > { %v4278_v48 = vcombine.low %v4268_v26, %v4272_v19  ;;  %v4281_v10 = vmul.f32 %v4276_v63, %v4243_v5 }
 0x816   : > { %v4297_v53 = vcombine.low %v4287_v56, %v4291_v50  ;;  %v4988_v50 = vld [vmem:[%s7592_s19] ss:$8 sps:$4 sm:$0xff]  }
 0x817   : > { %v4280_v45 = vmul.f32 %v4278_v48, %v4242_v36 }
 0x819   : > { %v4326_v31 = vcombine.high %v4280_v45, %v4280_v45 }
 0x885   : > { %v3894_v27 = vpop.permute.xlu1 %3893 }
 0x886   : > { %3903 = vst.msk [vmem:[#allocation4] sm:$0xff] %vm3902_vm14, %v3894_v27  ;;  %v3896_v6 = vpop.permute.xlu0 %3895 }
 0x887   : > { %v3898_v22 = vsel %vm3885_vm15, %v3894_v27, %v3896_v6  ;;  %3905 = vst.msk [vmem:[#allocation4 + $0x10] sm:$0xff] %vm3885_vm15, %v3896_v6  ;;  %v4295_v27 = vrot.slane %v4710_v42, %v7589_v2 }
 0x888   : > { %v3951_v20 = vmul.bf16 %v3942_v52, %v3898_v22  ;;  %v4041_v11 = vmul.bf16 %v4032_v49, %v3898_v22  ;;  %v3996_v9 = vmul.bf16 %v3987_v43, %v3898_v22  ;;  %v4299_v52 = vmul.f32 %v4297_v53, %v4242_v36 }
 0x889   : > { %v4300_v57 = vmul.f32 %v4295_v27, %v4243_v5  ;;  %v4262_v22 = vmul.f32 %v4257_v40, %v4243_v5 }
 0x88a   : > { %4194 = vmatprep.subr.bf16.mxu1 %v3951_v20  ;;  %v4352_v6 = vcombine.high %v4299_v52, %v4299_v52 }
 0x88d   : > { %v3906_v1 = vld [vmem:[#allocation4] sm:$0xff] }
 0x88e   : > { %v3995_v37 = vmul.bf16 %v3980_v59, %v3906_v1  ;;  %v4040_v41 = vmul.bf16 %v4025_v8, %v3906_v1  ;;  %v3950_v16 = vmul.bf16 %v3935_v14, %v3906_v1  ;;  %v3908_v7 = vld [vmem:[#allocation4 + $0x10] sm:$0xff] }
 0x88f   : > { %v4042_v44 = vmul.bf16 %v4039_v34, %v3908_v7  ;;  %v3997_v32 = vmul.bf16 %v3994_v24, %v3908_v7  ;;  %v3952_v21 = vmul.bf16 %v3949_v13, %v3908_v7 }
 0x890   : > { %4048 = vrot.lane.b32.xlu1 %v3995_v37, %s7455_s1  ;;  %4063 = vrot.lane.b32.xlu0 %v4040_v41, %s7454_s4 }
 0x891   : > { %4195 = vmatpush1.bf16.msra.mxu1 %v3950_v16 }
 0x894   : > { %4078 = vrot.lane.b32.xlu1 %v3950_v16, %s7459_s10  ;;  %4090 = vrot.lane.b32.xlu0 %v3995_v37, %s7410_s17 }
 0x898   : > { %4067 = vrot.lane.b32.xlu1 %v4042_v44, %s7454_s4  ;;  %4052 = vrot.lane.b32.xlu0 %v3997_v32, %s7455_s1 }
 0x89c   : > { %4094 = vrot.lane.b32.xlu1 %v3997_v32, %s7410_s17  ;;  %4082 = vrot.lane.b32.xlu0 %v3952_v21, %s7459_s10 }
 0x8a0   : > { %4065 = vrot.lane.b32.xlu0 %v4041_v11, %s7454_s4  ;;  %4050 = vrot.lane.b32.xlu1 %v3996_v9, %s7455_s1 }
 0x8a4   : > { %4106 = vrot.lane.b32.xlu0 %v4042_v44, %s7590_s24  ;;  %4102 = vrot.lane.b32.xlu1 %v4040_v41, %s7590_s24 }
 0x8a8   : > { %4092 = vrot.lane.b32.xlu0 %v3996_v9, %s7410_s17  ;;  %4080 = vrot.lane.b32.xlu1 %v3951_v20, %s7459_s10 }
 0x8ac   : > { %4114 = vrot.lane.b32.xlu0 %v3950_v16, %s7416_s26  ;;  %4118 = vrot.lane.b32.xlu1 %v3952_v21, %s7416_s26 }
 0x8b0   : > { %4116 = vrot.lane.b32.xlu0 %v3951_v20, %s7416_s26  ;;  %4104 = vrot.lane.b32.xlu1 %v4041_v11, %s7590_s24 }
 0x8b4   : > { %4130 = vrot.lane.b32.xlu0 %v3997_v32, %s7413_s21  ;;  %4126 = vrot.lane.b32.xlu1 %v3995_v37, %s7413_s21 }
 0x8b8   : > { %4140 = vrot.lane.b32.xlu0 %v4041_v11, %s7417_s22  ;;  %4128 = vrot.lane.b32.xlu1 %v3996_v9, %s7413_s21 }
 0x8bc   : > { %4138 = vrot.lane.b32.xlu0 %v4040_v41, %s7417_s22  ;;  %4142 = vrot.lane.b32.xlu1 %v4042_v44, %s7417_s22 }
 0x8c0   : > { %4179 = vperm.xlu0 %4904, %v4171_v30   ;;  %4174 = vperm.xlu1 %4905, %v4170_v4  }
 0x8c4   : > { %4327 = vrot.lane.b32.xlu1 %v4280_v45, %s7455_s1  ;;  %4329 = vrot.lane.b32.xlu0 %v4326_v31, %s7455_s1 }
 0x8c8   : > { %4331 = vrot.lane.b32.xlu1 %v4281_v10, %s7455_s1  ;;  %4353 = vrot.lane.b32.xlu0 %v4299_v52, %s7454_s4  ;;  %s7603_s1 = sld [smem:[#allocation38_spill]] }
 0x8cc   : > { %4355 = vrot.lane.b32.xlu1 %v4352_v6, %s7454_s4  ;;  %4357 = vrot.lane.b32.xlu0 %v4300_v57, %s7454_s4 }
 0x8d0   : > { %4377 = vrot.lane.b32.xlu1 %v7105_v58, %s7459_s10  ;;  %4379 = vrot.lane.b32.xlu0 %v7112_v23, %s7459_s10 }
 0x8d4   : > { %4381 = vrot.lane.b32.xlu1 %v4262_v22, %s7459_s10  ;;  %4400 = vrot.lane.b32.xlu0 %v4280_v45, %s7410_s17 }
 0x8d8   : > { %4402 = vrot.lane.b32.xlu1 %v4326_v31, %s7410_s17  ;;  %4404 = vrot.lane.b32.xlu0 %v4281_v10, %s7410_s17 }
 0x8dc   : > { %4423 = vrot.lane.b32.xlu1 %v4299_v52, %s7590_s24  ;;  %4425 = vrot.lane.b32.xlu0 %v4352_v6, %s7590_s24 }
 0x8e0   : > { %4427 = vrot.lane.b32.xlu1 %v4300_v57, %s7590_s24  ;;  %4446 = vrot.lane.b32.xlu0 %v7105_v58, %s7416_s26 }
 0x8e4   : > { %4448 = vrot.lane.b32.xlu1 %v7112_v23, %s7416_s26  ;;  %4450 = vrot.lane.b32.xlu0 %v4262_v22, %s7416_s26 }
 0x8e8   : > { %4469 = vrot.lane.b32.xlu1 %v4280_v45, %s7413_s21  ;;  %4471 = vrot.lane.b32.xlu0 %v4326_v31, %s7413_s21 }
 0x8ec   : > { %4473 = vrot.lane.b32.xlu1 %v4281_v10, %s7413_s21  ;;  %4492 = vrot.lane.b32.xlu0 %v4299_v52, %s7417_s22 }
 0x8f0   : > { %4494 = vrot.lane.b32.xlu1 %v4352_v6, %s7417_s22  ;;  %4496 = vrot.lane.b32.xlu0 %v4300_v57, %s7417_s22  ;;  %s4714_s22 = sshll.u32 %s7591_s3, 3 }
 0x8f1   : > { %s522_s10 = scalar_lea.vmem %s7603_s1, %s4714_s22  ;;  %s527_s18 = scalar_lea.vmem %s7610_s28, %s4714_s22 }
 0x902   : > { %v4049_v20 = vpop.permute.xlu1 %4048  ;;  %v4064_v61 = vpop.permute.xlu0 %4063 }
 0x906   : > { %v4079_v47 = vpop.permute.xlu1 %4078  ;;  %v4091_v59 = vpop.permute.xlu0 %4090 }
 0x90a   : > { %v4068_v8 = vpop.permute.xlu1 %4067  ;;  %v4053_v14 = vpop.permute.xlu0 %4052 }
 0x90e   : > { %v4095_v12 = vpop.permute.xlu1 %4094  ;;  %v4083_v1 = vpop.permute.xlu0 %4082 }
 0x912   : > { %v4051_v60 = vpop.permute.xlu1 %4050  ;;  %v4066_v51 = vpop.permute.xlu0 %4065 }
 0x913   : > { %v4054_v0 = vsel %vm882_vm3, %v4049_v20, %v4051_v60  ;;  %v4055_v29 = vsel %vm882_vm3, %v4051_v60, %v4053_v14  ;;  %v4070_v37 = vsel %vm898_vm4, %v4066_v51, %v4068_v8  ;;  %v4069_v46 = vsel %vm898_vm4, %v4064_v61, %v4066_v51  ;;  %v7602_v61 = vld [vmem:[#allocation7_spill] sm:$0xff] }
 0x914   : > { %4196 = vmatprep.subr.bf16.mxu1 %v4055_v29 }
 0x915   : > { %4197 = vmatpush1.bf16.msra.mxu1 %v4054_v0  ;;  %v4344_v0 = vsub.s32 5, %v7602_v61 }
 0x916   : > { %v4103_v41 = vpop.permute.xlu1 %4102  ;;  %4198 = vmatprep.subr.bf16.mxu1 %v4070_v37  ;;  %v4107_v16 = vpop.permute.xlu0 %4106  ;;  %v7162_v37 = vsub.s32 3, %v7602_v61 }
 0x919   : > { %4199 = vmatpush1.bf16.msra.mxu1 %v4069_v46  ;;  %v4370_v46 = vsub.s32 6, %v7602_v61 }
 0x91a   : > { %v4081_v3 = vpop.permute.xlu1 %4080  ;;  %v4093_v34 = vpop.permute.xlu0 %4092 }
 0x91b   : > { %v4084_v24 = vsel %vm978_vm9, %v4079_v47, %v4081_v3  ;;  %v4085_v17 = vsel %vm978_vm9, %v4081_v3, %v4083_v1  ;;  %v4097_v25 = vsel %vm991_vm10, %v4093_v34, %v4095_v12  ;;  %v4096_v44 = vsel %vm991_vm10, %v4091_v59, %v4093_v34 }
 0x91c   : > { %4200 = vmatprep.subr.bf16.mxu1 %v4085_v17  ;;  %v4318_v47 = vsub.s32 4, %v7602_v61  ;;  %v4394_v17 = vsub.s32 7, %v7602_v61 }
 0x91d   : > { %4201 = vmatpush1.bf16.msra.mxu1 %v4084_v24 }
 0x91e   : > { %v4119_v7 = vpop.permute.xlu1 %4118  ;;  %4202 = vmatprep.subr.bf16.mxu1 %v4097_v25  ;;  %v4115_v54 = vpop.permute.xlu0 %4114 }
 0x921   : > { %4203 = vmatpush1.bf16.msra.mxu1 %v4096_v44 }
 0x922   : > { %v4105_v32 = vpop.permute.xlu1 %4104  ;;  %v4117_v13 = vpop.permute.xlu0 %4116 }
 0x923   : > { %v4108_v39 = vsel %vm1004_vm11, %v4103_v41, %v4105_v32  ;;  %v4109_v21 = vsel %vm1004_vm11, %v4105_v32, %v4107_v16  ;;  %v4121_v49 = vsel %vm7596_vm13, %v4117_v13, %v4119_v7  ;;  %v4120_v9 = vsel %vm7597_vm6, %v4115_v54, %v4117_v13 }
 0x924   : > { %4204 = vmatprep.subr.bf16.mxu1 %v4109_v21 }
 0x925   : > { %4205 = vmatpush1.bf16.msra.mxu1 %v4108_v39 }
 0x926   : > { %v4127_v43 = vpop.permute.xlu1 %4126  ;;  %4206 = vmatprep.subr.bf16.mxu1 %v4121_v49  ;;  %v4131_v11 = vpop.permute.xlu0 %4130 }
 0x929   : > { %4207 = vmatpush1.bf16.msra.mxu1 %v4120_v9 }
 0x92a   : > { %v4129_v15 = vpop.permute.xlu1 %4128  ;;  %v4141_v30 = vpop.permute.xlu0 %4140 }
 0x92b   : > { %v4132_v4 = vsel %vm7598_vm12, %v4127_v43, %v4129_v15  ;;  %v4133_v35 = vsel %vm7599_vm7, %v4129_v15, %v4131_v11 }
 0x92c   : > { %4208 = vmatprep.subr.bf16.mxu1 %v4133_v35 }
 0x92d   : > { %4209 = vmatpush1.bf16.msra.mxu1 %v4132_v4 }
 0x92e   : > { %v4143_v26 = vpop.permute.xlu1 %4142  ;;  %v4139_v19 = vpop.permute.xlu0 %4138 }
 0x92f   : > { %v4144_v42 = vsel %vm7600_vm8, %v4139_v19, %v4141_v30  ;;  %v4145_v56 = vsel %vm7601_vm0, %v4141_v30, %v4143_v26 }
 0x930   : > { %4210 = vmatprep.subr.bf16.mxu1 %v4145_v56 }
 0x931   : > { %4211 = vmatpush1.bf16.msra.mxu1 %v4144_v42 }
 0x934   : > { %4227 = vmatmul.mubr.bf16.vlgmr.msra.gmra.mrb[32].mxu1 %v4988_v50 }
 0x93f   : > { %v4175_v55 = vpop.permute.xlu1 %4174  ;;  %v4180_v36 = vpop.permute.xlu0 %4179 }
 0x943   : > { %v4328_v48 = vpop.permute.xlu1 %4327  ;;  %v4330_v63 = vpop.permute.xlu0 %4329 }
 0x944   : > { %v4334_v3 = vsel %vm882_vm3, %v4328_v48, %v4330_v63 }
 0x947   : > { %v4332_v5 = vpop.permute.xlu1 %4331  ;;  %v4354_v53 = vpop.permute.xlu0 %4353 }
 0x948   : > { %v4335_v34 = vsel %vm882_vm3, %v4330_v63, %v4332_v5  ;;  %vm7604_vm3 = vmmov %vm7597_vm6 }
 0x94b   : > { %v4356_v45 = vpop.permute.xlu1 %4355  ;;  %v4358_v62 = vpop.permute.xlu0 %4357 }
 0x94c   : > { %v4360_v32 = vsel %vm898_vm4, %v4354_v53, %v4356_v45  ;;  %v4361_v13 = vsel %vm898_vm4, %v4356_v45, %v4358_v62  ;;  %vm7605_vm4 = vmmov %vm7604_vm3 }
 0x94f   : > { %v4378_v18 = vpop.permute.xlu1 %4377  ;;  %v4380_v31 = vpop.permute.xlu0 %4379 }
 0x950   : > { %v4384_v49 = vsel %vm978_vm9, %v4378_v18, %v4380_v31 }
 0x953   : > { %v4382_v10 = vpop.permute.xlu1 %4381  ;;  %v4401_v52 = vpop.permute.xlu0 %4400 }
 0x954   : > { %v4385_v26 = vsel %vm978_vm9, %v4380_v31, %v4382_v10  ;;  %vm7606_vm9 = vmmov %vm7599_vm7 }
 0x957   : > { %v4403_v27 = vpop.permute.xlu1 %4402  ;;  %v4405_v38 = vpop.permute.xlu0 %4404 }
 0x958   : > { %v4408_v53 = vsel %vm991_vm10, %v4403_v27, %v4405_v38 }
 0x95b   : > { %v4424_v6 = vpop.permute.xlu1 %4423  ;;  %v4426_v57 = vpop.permute.xlu0 %4425 }
 0x95f   : > { %v4428_v40 = vpop.permute.xlu1 %4427  ;;  %v4447_v22 = vpop.permute.xlu0 %4446 }
 0x960   : > { %v4431_v61 = vsel %vm1004_vm11, %v4426_v57, %v4428_v40 }
 0x963   : > { %v7155_v20 = vpop.permute.xlu1 %4448  ;;  %v7158_v59 = vpop.permute.xlu0 %4450 }
 0x967   : > { %v4470_v16 = vpop.permute.xlu1 %4469  ;;  %v4472_v24 = vpop.permute.xlu0 %4471 }
 0x968   : > { %v4476_v40 = vsel %vm7606_vm9, %v4470_v16, %v4472_v24 }
 0x96b   : > { %v4474_v19 = vpop.permute.xlu1 %4473  ;;  %v4493_v48 = vpop.permute.xlu0 %4492 }
 0xa07   : > { %v4228_v8 = vpop.f32.mrb[32].mxu1 }
 0xa08   : > { %v4229_v14 = vadd.f32 %v4228_v8, %v4175_v55  ;;  %v4230_v12 = vpop.f32.mrb[33].mxu1 }
 0xa09   : > { %v4231_v1 = vadd.f32 %v4230_v12, %v4175_v55  ;;  %v4232_v60 = vpop.f32.mrb[34].mxu1  ;;  %v4407_v55 = vsel %vm991_vm10, %v4401_v52, %v4403_v27  ;;  %vm7607_vm10 = vmmov %vm7599_vm7 }
 0xa0a   : > { %v4319_v51 = vrot.slane %v4229_v14, %v4318_v47  ;;  %v4234_v29 = vpop.f32.mrb[35].mxu1  ;;  %v4345_v7 = vrot.slane %v4229_v14, %v4344_v0  ;;  %v4304_v54 = vrot.slane %v4229_v14, %v7162_v37  ;;  %v4371_v43 = vrot.slane %v4229_v14, %v4370_v46 }
 0xa0b   : > { %v4323_v41 = vrot.slane %v4231_v1, %v4318_v47  ;;  %v4308_v44 = vrot.slane %v4231_v1, %v7162_v37  ;;  %v4349_v21 = vrot.slane %v4231_v1, %v4344_v0  ;;  %v4233_v11 = vadd.f32 %v4232_v60, %v4180_v36  ;;  %v4495_v60 = vpop.permute.xlu1 %4494 }
 0xa0c   : > { %v4338_v25 = vmul.f32 %v4334_v3, %v4319_v51  ;;  %v4312_v9 = vmul.f32 %v4304_v54, %v7105_v58  ;;  %v4375_v15 = vrot.slane %v4231_v1, %v4370_v46  ;;  %v4235_v30 = vadd.f32 %v4234_v29, %v4180_v36 }
 0xa0d   : > { %v4339_v39 = vmul.f32 %v4335_v34, %v4323_v41  ;;  %v4239_v4 = vcombine.low %v4229_v14, %v4231_v1  ;;  %v4313_v35 = vmul.f32 %v7112_v23, %v4308_v44  ;;  %v4364_v56 = vmul.f32 %v4360_v32, %v4345_v7 }
 0xa0e   : > { %v4340_v42 = vadd.f32 %v4338_v25, %v4312_v9  ;;  %v4395_v50 = vrot.slane %v4229_v14, %v4394_v17  ;;  %v4365_v63 = vmul.f32 %v4361_v13, %v4349_v21  ;;  %v4399_v5 = vrot.slane %v4231_v1, %v4394_v17 }
 0xa0f   : > { %4241 = vst [vmem:[%s522_s10] sm:$0x77] %v4239_v4  ;;  %v4341_v58 = vadd.f32 %v4339_v39, %v4313_v35  ;;  %v4418_v36 = vrot.slane %v4233_v11, %v7588_v33  ;;  %v4388_v62 = vmul.f32 %v4384_v49, %v4371_v43  ;;  %v4430_v23 = vsel %vm1004_vm11, %v4424_v6, %v4426_v57  ;;  %vm7608_vm11 = vmmov %vm7601_vm0 }
 0xa10   : > { %v4366_v45 = vadd.f32 %v4364_v56, %v4340_v42  ;;  %v4422_v18 = vrot.slane %v4235_v30, %v7588_v33  ;;  %v4389_v10 = vmul.f32 %v4385_v26, %v4375_v15  ;;  %v4441_v52 = vrot.slane %v4233_v11, %v7587_v28 }
 0xa11   : > { %v4367_v31 = vadd.f32 %v4365_v63, %v4341_v58  ;;  %v4411_v8 = vmul.f32 %v4407_v55, %v4395_v50  ;;  %v4453_v14 = vsel %vm7604_vm3, %v4447_v22, %v7155_v20  ;;  %v4445_v27 = vrot.slane %v4235_v30, %v7587_v28  ;;  %v4497_v22 = vpop.permute.xlu0 %4496 }
 0xa12   : > { %v4390_v47 = vadd.f32 %v4388_v62, %v4366_v45  ;;  %v4412_v12 = vmul.f32 %v4408_v53, %v4399_v5  ;;  %v4454_v6 = vsel %vm7605_vm4, %v7155_v20, %v7158_v59  ;;  %v4434_v33 = vmul.f32 %v4430_v23, %v4418_v36 }
 0xa13   : > { %v4391_v38 = vadd.f32 %v4389_v10, %v4367_v31  ;;  %v4464_v1 = vrot.slane %v4233_v11, %v7589_v2  ;;  %v4435_v51 = vmul.f32 %v4431_v61, %v4422_v18  ;;  %v4468_v0 = vrot.slane %v4235_v30, %v7589_v2 }
 0xa14   : > { %v4413_v57 = vadd.f32 %v4411_v8, %v4390_v47  ;;  %v4477_v28 = vsel %vm7607_vm10, %v4472_v24, %v4474_v19  ;;  %v4457_v41 = vmul.f32 %v4453_v14, %v4441_v52  ;;  %v4487_v3 = vrot.slane %v4233_v11, %v7162_v37 }
 0xa15   : > { %v4414_v29 = vadd.f32 %v4412_v12, %v4391_v38  ;;  %v4458_v20 = vmul.f32 %v4454_v6, %v4445_v27  ;;  %v4499_v59 = vsel %vm7608_vm11, %v4493_v48, %v4495_v60  ;;  %v4491_v17 = vrot.slane %v4235_v30, %v7162_v37 }
 0xa16   : > { %v4436_v46 = vadd.f32 %v4434_v33, %v4413_v57  ;;  %v4480_v16 = vmul.f32 %v4476_v40, %v4464_v1  ;;  %v4500_v7 = vsel %vm7609_vm2, %v4495_v60, %v4497_v22  ;;  %v4481_v54 = vmul.f32 %v4477_v28, %v4468_v0 }
 0xa17   : > { %v4437_v34 = vadd.f32 %v4435_v51, %v4414_v29  ;;  %v4503_v32 = vmul.f32 %v4499_v59, %v4487_v3  ;;  %v4504_v13 = vmul.f32 %v4500_v7, %v4491_v17 }
 0xa18   : > { %v4459_v25 = vadd.f32 %v4457_v41, %v4436_v46 }
 0xa19   : > { %v4460_v2 = vadd.f32 %v4458_v20, %v4437_v34 }
 0xa1a   : > { %v4482_v44 = vadd.f32 %v4480_v16, %v4459_v25 }
 0xa1b   : > { %v4483_v24 = vadd.f32 %v4481_v54, %v4460_v2 }
 0xa1c   : > { %v4505_v39 = vadd.f32 %v4503_v32, %v4482_v44 }
 0xa1d   : > { %v4506_v21 = vadd.f32 %v4504_v13, %v4483_v24 }
 0xa1f   : > { %v4509_v49 = vcombine.low %v4505_v39, %v4506_v21 }
 0xa21   : > { %4511 = vst [vmem:[%s527_s18] sm:$0x77] %v4509_v49 }
 0xa22 PF: > { %s7611_s0 = sld [smem:[#allocation5_spill]] }
 0xa28   : > { %s26_s18 = sadd.s32 1, %s7611_s0  }
 0xa29   : > { %p23_p4 = scmp.ge.s32.totalorder %s26_s18, 4  }
 0xa2b   :  { %25 = sbr.rel (!%p23_p4) target bundleno = 15 (0xf), region = 129 }

</bundles_post_ra>
